<compile_context>
chip_gen: v5e
topology: v5e:2x2
jax: 0.10.0
libtpu: 0.0.40
codegen_flags: <defaults>
</compile_context>

<pallas_src>
import functools

import jax
import jax.numpy as jnp
from jax import lax
from jax.experimental import pallas as pl
from jax.experimental.pallas import tpu as pltpu

VMEM = pltpu.MemorySpace.VMEM

HIDDEN = 768          # hard-wired in the PyTorch module (proj_t / dense / LayerNorm1)
EMBED = 30            # projection dim of proj_t / proj_a
LN_EPS = 1e-12


# ---------------------------------------------------------------------------
# Single fused kernel: proj_t + norm + proj_a + cross-attn stand-in +
# self-similarity fusion + mask/softmax + residual + dense + BertLayerNorm.
# Everything lives in VMEM; no grid (whole problem fits on-chip at these sizes).
# ---------------------------------------------------------------------------
def _fused_forward_kernel(hid_ref, audio_ref, mask_ref, maskt_ref,
                          wt_ref, wa_ref, wq_ref, wk_ref, wv_ref,
                          wdT_ref, bd_ref, gamma_ref, beta_ref,
                          out_ref, tatt_ref, fatt_ref,
                          *, audio_w, text_w, fusion_bias, eps, attn_scale):
    B, S, H = hid_ref.shape
    Sa = audio_ref.shape[1]
    FD = audio_ref.shape[2]
    E = wt_ref.shape[1]

    hid = hid_ref[...]                                   # (B, S, H) f32
    hid2 = hid.reshape(B * S, H)

    # --- proj_t (Conv1d k=1, no bias): batch folded into M for the MXU -------
    text2 = jnp.dot(hid2, wt_ref[...],
                    preferred_element_type=jnp.float32)  # (B*S, E)

    # --- global scaling: text / sqrt(||flatten(text)||_2), done in VMEM ------
    sq = jnp.sum(text2 * text2, axis=1, keepdims=True)   # (B*S, 1) lane reduce
    sq = jnp.sum(sq, axis=0, keepdims=True)              # (1, 1)   sublane reduce
    inv_w = lax.rsqrt(jnp.sqrt(sq))                      # 1 / sqrt(||.||_2)
    text2 = text2 * inv_w
    text = text2.reshape(B, S, E)

    # --- proj_a (Conv1d k=1, no bias) ----------------------------------------
    aud2 = jnp.dot(audio_ref[...].reshape(B * Sa, FD), wa_ref[...],
                   preferred_element_type=jnp.float32)   # (B*Sa, E)

    # --- GatedTransformer stand-in -------------------------------------------
    # TODO(synk): GatedTransformer(embed_dim=30, num_heads=5, layers=5) was not
    # provided; approximated with a single deterministic cross-attention block
    # (text queries, audio keys/values) so the output shape is (B, S, 30).
    q = jnp.dot(text2, wq_ref[...],
                preferred_element_type=jnp.float32).reshape(B, S, E)
    k = jnp.dot(aud2, wk_ref[...],
                preferred_element_type=jnp.float32).reshape(B, Sa, E)
    v = jnp.dot(aud2, wv_ref[...],
                preferred_element_type=jnp.float32).reshape(B, Sa, E)
    logits = jnp.einsum("bqd,bkd->bqk", q, k,
                        preferred_element_type=jnp.float32) * attn_scale
    logits = logits - jnp.max(logits, axis=-1, keepdims=True)
    el = jnp.exp(logits)
    attn = el * pl.reciprocal(jnp.sum(el, axis=-1, keepdims=True), approx=True)
    audio_out = jnp.einsum("bqk,bkd->bqd", attn, v,
                           preferred_element_type=jnp.float32)   # (B, S, E)

    # --- self-similarity attentions + ReLU (write outputs immediately) -------
    text_att1 = jnp.maximum(
        jnp.einsum("bqd,bkd->bqk", text, text,
                   preferred_element_type=jnp.float32), 0.0)     # (B, S, S)
    tatt_ref[...] = text_att1

    audio_att = jnp.maximum(
        jnp.einsum("bqd,bkd->bqk", audio_out, audio_out,
                   preferred_element_type=jnp.float32), 0.0)     # (B, S, S)

    # --- weighted fusion ------------------------------------------------------
    fusion = text_w * text_att1 + audio_w * audio_att + fusion_bias
    fatt_ref[...] = jnp.maximum(fusion, 0.0)

    # --- additive masks (row + column), softmax over last dim ----------------
    # (Reference adds both attention_mask (B,1,S) and its permute (B,S,1);
    #  softmax is applied to the pre-ReLU fusion_att, as in the PyTorch code.)
    fa = fusion + mask_ref[...] + maskt_ref[...]
    fa = fa - jnp.max(fa, axis=-1, keepdims=True)
    ef = jnp.exp(fa)
    p = ef * pl.reciprocal(jnp.sum(ef, axis=-1, keepdims=True), approx=True)
    # dropout1 (p=0.3): identity in eval mode

    # --- fusion_data = softmax @ hidden + hidden (residual) ------------------
    fusion_data = jnp.einsum("bqk,bkd->bqd", p, hid,
                             preferred_element_type=jnp.float32) + hid

    # --- dense 768->768: M = B*S, bf16 operands, f32 accumulation ------------
    dense = jnp.dot(fusion_data.reshape(B * S, H).astype(jnp.bfloat16),
                    wdT_ref[...],
                    preferred_element_type=jnp.float32) + bd_ref[...]
    # dropout(hidden_dropout_prob): identity in eval mode

    # --- BertLayerNorm (TF style, eps inside the sqrt) ------------------------
    u = jnp.mean(dense, axis=-1, keepdims=True)
    d = dense - u
    s = jnp.mean(d * d, axis=-1, keepdims=True)
    xn = d * lax.rsqrt(s + eps)
    out = gamma_ref[...] * xn + beta_ref[...]
    out_ref[...] = out.reshape(B, S, H)


# ---------------------------------------------------------------------------
# Parameter init (deterministic, mirrors module __init__ shapes)
# ---------------------------------------------------------------------------
def init_params(key, fusion_dim):
    ks = jax.random.split(key, 6)
    sc = 0.02
    p = {
        # Conv1d(768, 30, k=1, bias=False) weight (30, 768, 1) stored as (768, 30)
        "w_proj_t": sc * jax.random.normal(ks[0], (HIDDEN, EMBED), jnp.float32),
        # Conv1d(fusion_dim, 30, k=1, bias=False) stored as (fusion_dim, 30)
        "w_proj_a": sc * jax.random.normal(ks[1], (fusion_dim, EMBED), jnp.float32),
        # cross-attention stand-in weights for GatedTransformer(embed_dim=30)
        "wq": sc * jax.random.normal(ks[2], (EMBED, EMBED), jnp.float32),
        "wk": sc * jax.random.normal(ks[3], (EMBED, EMBED), jnp.float32),
        "wv": sc * jax.random.normal(ks[4], (EMBED, EMBED), jnp.float32),
        # nn.Linear(768, 768): weight stored pre-transposed (W.T), bf16 for the MXU
        "wd_T": (sc * jax.random.normal(ks[5], (HIDDEN, HIDDEN), jnp.float32)
                 ).astype(jnp.bfloat16),
        "bd": jnp.zeros((1, HIDDEN), jnp.float32),
        # BertLayerNorm(768)
        "ln_gamma": jnp.ones((1, HIDDEN), jnp.float32),
        "ln_beta": jnp.zeros((1, HIDDEN), jnp.float32),
        # scalar parameters, filled exactly as in __init__
        "audio_weight_1": 1.0,
        "text_weight_1": 1.0,
        "fusion_bias": 0.0,
    }
    return p


# ---------------------------------------------------------------------------
# Forward pass: one fused pallas_call, everything resident in VMEM.
# ---------------------------------------------------------------------------
def bert_finetun_noal_forward(params, hidden_states, audio_data, attention_mask):
    B, S, H = hidden_states.shape

    # attention_mask: (B, 1, 1, S) additive mask
    mask_row = attention_mask[:, 0]              # (B, 1, S)
    mask_col = attention_mask[:, 0, 0, :, None]  # (B, S, 1)  (== permute(0, 2, 1))

    kern = functools.partial(
        _fused_forward_kernel,
        audio_w=float(params["audio_weight_1"]),
        text_w=float(params["text_weight_1"]),
        fusion_bias=float(params["fusion_bias"]),
        eps=LN_EPS,
        attn_scale=float(EMBED) ** -0.5,
    )

    out_shapes = (
        jax.ShapeDtypeStruct((B, S, H), jnp.float32),   # hidden_states_new
        jax.ShapeDtypeStruct((B, S, S), jnp.float32),   # text_att1
        jax.ShapeDtypeStruct((B, S, S), jnp.float32),   # fusion_att1
    )

    n_inputs = 13
    return pl.pallas_call(
        kern,
        out_shape=out_shapes,
        in_specs=[pl.BlockSpec(memory_space=VMEM)] * n_inputs,
        out_specs=tuple(pl.BlockSpec(memory_space=VMEM) for _ in range(3)),
    )(hidden_states, audio_data, mask_row, mask_col,
      params["w_proj_t"], params["w_proj_a"],
      params["wq"], params["wk"], params["wv"],
      params["wd_T"], params["bd"],
      params["ln_gamma"], params["ln_beta"])


if __name__ == "__main__":
    key = jax.random.PRNGKey(0)
    B, S, Sa, FUSION_DIM = 2, 8, 8, 64

    k1, k2, kp = jax.random.split(key, 3)
    hidden_states = jax.random.normal(k1, (B, S, HIDDEN), jnp.float32)
    audio_data = jax.random.normal(k2, (B, Sa, FUSION_DIM), jnp.float32)

    # BERT-style additive attention mask: (B, 1, 1, S), 0 = keep, -10000 = masked
    valid = jnp.arange(S)[None, :] < jnp.array([S, S - 2])[:, None]
    attention_mask = jnp.where(valid, 0.0, -10000.0).astype(jnp.float32)[:, None, None, :]

    params = init_params(kp, FUSION_DIM)

    hidden_new, text_att1, fusion_att1 = bert_finetun_noal_forward(
        params, hidden_states, audio_data, attention_mask)
    jax.block_until_ready((hidden_new, text_att1, fusion_att1))

    assert hidden_new.shape == (B, S, HIDDEN)
    assert text_att1.shape == (B, S, S)
    assert fusion_att1.shape == (B, S, S)
    print("KERNEL_OK")
</pallas_src>

<mosaic_0001>
module attributes {stable_mosaic.version = 11 : i64} {
  func.func @_fused_forward_kernel(%arg0: memref<2x8x768xf32, #tpu.memory_space<vmem>>, %arg1: memref<2x8x64xf32, #tpu.memory_space<vmem>>, %arg2: memref<2x1x8xf32, #tpu.memory_space<vmem>>, %arg3: memref<2x8x1xf32, #tpu.memory_space<vmem>>, %arg4: memref<768x30xf32, #tpu.memory_space<vmem>>, %arg5: memref<64x30xf32, #tpu.memory_space<vmem>>, %arg6: memref<30x30xf32, #tpu.memory_space<vmem>>, %arg7: memref<30x30xf32, #tpu.memory_space<vmem>>, %arg8: memref<30x30xf32, #tpu.memory_space<vmem>>, %arg9: memref<768x768xbf16, #tpu.memory_space<vmem>>, %arg10: memref<1x768xf32, #tpu.memory_space<vmem>>, %arg11: memref<1x768xf32, #tpu.memory_space<vmem>>, %arg12: memref<1x768xf32, #tpu.memory_space<vmem>>, %arg13: memref<2x8x768xf32, #tpu.memory_space<vmem>>, %arg14: memref<2x8x8xf32, #tpu.memory_space<vmem>>, %arg15: memref<2x8x8xf32, #tpu.memory_space<vmem>>) attributes {dimension_semantics = [], scalar_prefetch = 0 : i64, scratch_operands = 0 : i64, tpu.core_type = #tpu.core_type<tc>} {
    %c0 = arith.constant 0 : index
    %c0_0 = arith.constant 0 : index
    %c0_1 = arith.constant 0 : index
    %0 = vector.load %arg0[%c0, %c0_0, %c0_1] : memref<2x8x768xf32, #tpu.memory_space<vmem>>, vector<2x8x768xf32>
    %1 = vector.shape_cast %0 : vector<2x8x768xf32> to vector<16x768xf32>
    %c0_2 = arith.constant 0 : index
    %c0_3 = arith.constant 0 : index
    %2 = vector.load %arg4[%c0_2, %c0_3] : memref<768x30xf32, #tpu.memory_space<vmem>>, vector<768x30xf32>
    %cst = arith.constant dense<0.000000e+00> : vector<16x30xf32>
    %3 = tpu.matmul %1, %2, %cst {dimension_numbers = #tpu.dot_dimension_numbers<[1], [0], [0], [1], [0, 0, 1, 1], [], []>} : vector<16x768xf32>, vector<768x30xf32>, vector<16x30xf32> -> vector<16x30xf32>
    %4 = arith.mulf %3, %3 : vector<16x30xf32>
    %cst_4 = arith.constant dense<0.000000e+00> : vector<16xf32>
    %5 = vector.multi_reduction <add>, %4, %cst_4 [1] : vector<16x30xf32> to vector<16xf32>
    %6 = vector.shape_cast %5 : vector<16xf32> to vector<16x1xf32>
    %cst_5 = arith.constant dense<0.000000e+00> : vector<1xf32>
    %7 = vector.multi_reduction <add>, %6, %cst_5 [0] : vector<16x1xf32> to vector<1xf32>
    %8 = vector.shape_cast %7 : vector<1xf32> to vector<1x1xf32>
    %9 = math.sqrt %8 : vector<1x1xf32>
    %10 = math.rsqrt %9 : vector<1x1xf32>
    %11 = vector.broadcast %10 : vector<1x1xf32> to vector<16x30xf32>
    %12 = arith.mulf %3, %11 : vector<16x30xf32>
    %13 = vector.shape_cast %12 : vector<16x30xf32> to vector<2x8x30xf32>
    %c0_6 = arith.constant 0 : index
    %c0_7 = arith.constant 0 : index
    %c0_8 = arith.constant 0 : index
    %14 = vector.load %arg1[%c0_6, %c0_7, %c0_8] : memref<2x8x64xf32, #tpu.memory_space<vmem>>, vector<2x8x64xf32>
    %15 = vector.shape_cast %14 : vector<2x8x64xf32> to vector<16x64xf32>
    %c0_9 = arith.constant 0 : index
    %c0_10 = arith.constant 0 : index
    %16 = vector.load %arg5[%c0_9, %c0_10] : memref<64x30xf32, #tpu.memory_space<vmem>>, vector<64x30xf32>
    %cst_11 = arith.constant dense<0.000000e+00> : vector<16x30xf32>
    %17 = tpu.matmul %15, %16, %cst_11 {dimension_numbers = #tpu.dot_dimension_numbers<[1], [0], [0], [1], [0, 0, 1, 1], [], []>} : vector<16x64xf32>, vector<64x30xf32>, vector<16x30xf32> -> vector<16x30xf32>
    %c0_12 = arith.constant 0 : index
    %c0_13 = arith.constant 0 : index
    %18 = vector.load %arg6[%c0_12, %c0_13] : memref<30x30xf32, #tpu.memory_space<vmem>>, vector<30x30xf32>
    %cst_14 = arith.constant dense<0.000000e+00> : vector<16x30xf32>
    %19 = tpu.matmul %12, %18, %cst_14 {dimension_numbers = #tpu.dot_dimension_numbers<[1], [0], [0], [1], [0, 0, 1, 1], [], []>} : vector<16x30xf32>, vector<30x30xf32>, vector<16x30xf32> -> vector<16x30xf32>
    %20 = vector.shape_cast %19 : vector<16x30xf32> to vector<2x8x30xf32>
    %c0_15 = arith.constant 0 : index
    %c0_16 = arith.constant 0 : index
    %21 = vector.load %arg7[%c0_15, %c0_16] : memref<30x30xf32, #tpu.memory_space<vmem>>, vector<30x30xf32>
    %cst_17 = arith.constant dense<0.000000e+00> : vector<16x30xf32>
    %22 = tpu.matmul %17, %21, %cst_17 {dimension_numbers = #tpu.dot_dimension_numbers<[1], [0], [0], [1], [0, 0, 1, 1], [], []>} : vector<16x30xf32>, vector<30x30xf32>, vector<16x30xf32> -> vector<16x30xf32>
    %23 = vector.shape_cast %22 : vector<16x30xf32> to vector<2x8x30xf32>
    %c0_18 = arith.constant 0 : index
    %c0_19 = arith.constant 0 : index
    %24 = vector.load %arg8[%c0_18, %c0_19] : memref<30x30xf32, #tpu.memory_space<vmem>>, vector<30x30xf32>
    %cst_20 = arith.constant dense<0.000000e+00> : vector<16x30xf32>
    %25 = tpu.matmul %17, %24, %cst_20 {dimension_numbers = #tpu.dot_dimension_numbers<[1], [0], [0], [1], [0, 0, 1, 1], [], []>} : vector<16x30xf32>, vector<30x30xf32>, vector<16x30xf32> -> vector<16x30xf32>
    %26 = vector.shape_cast %25 : vector<16x30xf32> to vector<2x8x30xf32>
    "tpu.trace_start"() <{level = 10 : i32, message = "bqd,bkd->bqk"}> : () -> ()
    %cst_21 = arith.constant dense<0.000000e+00> : vector<2x8x8xf32>
    %27 = tpu.matmul %20, %23, %cst_21 {dimension_numbers = #tpu.dot_dimension_numbers<[2], [2], [1], [1], [0, 0, 0, 1, 1, 1], [0], [0]>} : vector<2x8x30xf32>, vector<2x8x30xf32>, vector<2x8x8xf32> -> vector<2x8x8xf32>
    "tpu.trace_stop"() : () -> ()
    %cst_22 = arith.constant 0.182574183 : f32
    %28 = vector.broadcast %cst_22 : f32 to vector<2x8x8xf32>
    %29 = arith.mulf %27, %28 : vector<2x8x8xf32>
    %cst_23 = arith.constant dense<0xFF800000> : vector<2x8xf32>
    %30 = vector.multi_reduction <maximumf>, %29, %cst_23 [2] : vector<2x8x8xf32> to vector<2x8xf32>
    %31 = vector.shape_cast %30 : vector<2x8xf32> to vector<2x8x1xf32>
    %32 = vector.broadcast %31 : vector<2x8x1xf32> to vector<2x8x8xf32>
    %33 = arith.subf %29, %32 : vector<2x8x8xf32>
    %34 = math.exp %33 : vector<2x8x8xf32>
    %cst_24 = arith.constant dense<0.000000e+00> : vector<2x8xf32>
    %35 = vector.multi_reduction <add>, %34, %cst_24 [2] : vector<2x8x8xf32> to vector<2x8xf32>
    %36 = vector.shape_cast %35 : vector<2x8xf32> to vector<2x8x1xf32>
    %37 = tpu.reciprocal %36 {approx = true} : vector<2x8x1xf32> -> vector<2x8x1xf32>
    %38 = vector.broadcast %37 : vector<2x8x1xf32> to vector<2x8x8xf32>
    %39 = arith.mulf %34, %38 : vector<2x8x8xf32>
    "tpu.trace_start"() <{level = 10 : i32, message = "bqk,bkd->bqd"}> : () -> ()
    %cst_25 = arith.constant dense<0.000000e+00> : vector<2x8x30xf32>
    %40 = tpu.matmul %39, %26, %cst_25 {dimension_numbers = #tpu.dot_dimension_numbers<[2], [1], [1], [2], [0, 0, 0, 1, 1, 2], [0], [0]>} : vector<2x8x8xf32>, vector<2x8x30xf32>, vector<2x8x30xf32> -> vector<2x8x30xf32>
    "tpu.trace_stop"() : () -> ()
    "tpu.trace_start"() <{level = 10 : i32, message = "bqd,bkd->bqk"}> : () -> ()
    %cst_26 = arith.constant dense<0.000000e+00> : vector<2x8x8xf32>
    %41 = tpu.matmul %13, %13, %cst_26 {dimension_numbers = #tpu.dot_dimension_numbers<[2], [2], [1], [1], [0, 0, 0, 1, 1, 1], [0], [0]>} : vector<2x8x30xf32>, vector<2x8x30xf32>, vector<2x8x8xf32> -> vector<2x8x8xf32>
    "tpu.trace_stop"() : () -> ()
    %cst_27 = arith.constant 0.000000e+00 : f32
    %42 = vector.broadcast %cst_27 : f32 to vector<2x8x8xf32>
    %43 = arith.maximumf %41, %42 : vector<2x8x8xf32>
    %c0_28 = arith.constant 0 : index
    %c0_29 = arith.constant 0 : index
    %c0_30 = arith.constant 0 : index
    %44 = vector.load %arg14[%c0_28, %c0_29, %c0_30] : memref<2x8x8xf32, #tpu.memory_space<vmem>>, vector<2x8x8xf32>
    tpu.vector_store %arg14[%c0_28, %c0_29, %c0_30], %43 {strides = array<i32>} : memref<2x8x8xf32, #tpu.memory_space<vmem>>, vector<2x8x8xf32>,
    "tpu.trace_start"() <{level = 10 : i32, message = "bqd,bkd->bqk"}> : () -> ()
    %cst_31 = arith.constant dense<0.000000e+00> : vector<2x8x8xf32>
    %45 = tpu.matmul %40, %40, %cst_31 {dimension_numbers = #tpu.dot_dimension_numbers<[2], [2], [1], [1], [0, 0, 0, 1, 1, 1], [0], [0]>} : vector<2x8x30xf32>, vector<2x8x30xf32>, vector<2x8x8xf32> -> vector<2x8x8xf32>
    "tpu.trace_stop"() : () -> ()
    %cst_32 = arith.constant 0.000000e+00 : f32
    %46 = vector.broadcast %cst_32 : f32 to vector<2x8x8xf32>
    %47 = arith.maximumf %45, %46 : vector<2x8x8xf32>
    %cst_33 = arith.constant 1.000000e+00 : f32
    %48 = vector.broadcast %cst_33 : f32 to vector<2x8x8xf32>
    %49 = arith.mulf %48, %43 : vector<2x8x8xf32>
    %cst_34 = arith.constant 1.000000e+00 : f32
    %50 = vector.broadcast %cst_34 : f32 to vector<2x8x8xf32>
    %51 = arith.mulf %50, %47 : vector<2x8x8xf32>
    %52 = arith.addf %49, %51 : vector<2x8x8xf32>
    %cst_35 = arith.constant 0.000000e+00 : f32
    %53 = vector.broadcast %cst_35 : f32 to vector<2x8x8xf32>
    %54 = arith.addf %52, %53 : vector<2x8x8xf32>
    %cst_36 = arith.constant 0.000000e+00 : f32
    %55 = vector.broadcast %cst_36 : f32 to vector<2x8x8xf32>
    %56 = arith.maximumf %54, %55 : vector<2x8x8xf32>
    %c0_37 = arith.constant 0 : index
    %c0_38 = arith.constant 0 : index
    %c0_39 = arith.constant 0 : index
    %57 = vector.load %arg15[%c0_37, %c0_38, %c0_39] : memref<2x8x8xf32, #tpu.memory_space<vmem>>, vector<2x8x8xf32>
    tpu.vector_store %arg15[%c0_37, %c0_38, %c0_39], %56 {strides = array<i32>} : memref<2x8x8xf32, #tpu.memory_space<vmem>>, vector<2x8x8xf32>,
    %c0_40 = arith.constant 0 : index
    %c0_41 = arith.constant 0 : index
    %c0_42 = arith.constant 0 : index
    %58 = vector.load %arg2[%c0_40, %c0_41, %c0_42] : memref<2x1x8xf32, #tpu.memory_space<vmem>>, vector<2x1x8xf32>
    %59 = vector.broadcast %58 : vector<2x1x8xf32> to vector<2x8x8xf32>
    %60 = arith.addf %54, %59 : vector<2x8x8xf32>
    %c0_43 = arith.constant 0 : index
    %c0_44 = arith.constant 0 : index
    %c0_45 = arith.constant 0 : index
    %61 = vector.load %arg3[%c0_43, %c0_44, %c0_45] : memref<2x8x1xf32, #tpu.memory_space<vmem>>, vector<2x8x1xf32>
    %62 = vector.broadcast %61 : vector<2x8x1xf32> to vector<2x8x8xf32>
    %63 = arith.addf %60, %62 : vector<2x8x8xf32>
    %cst_46 = arith.constant dense<0xFF800000> : vector<2x8xf32>
    %64 = vector.multi_reduction <maximumf>, %63, %cst_46 [2] : vector<2x8x8xf32> to vector<2x8xf32>
    %65 = vector.shape_cast %64 : vector<2x8xf32> to vector<2x8x1xf32>
    %66 = vector.broadcast %65 : vector<2x8x1xf32> to vector<2x8x8xf32>
    %67 = arith.subf %63, %66 : vector<2x8x8xf32>
    %68 = math.exp %67 : vector<2x8x8xf32>
    %cst_47 = arith.constant dense<0.000000e+00> : vector<2x8xf32>
    %69 = vector.multi_reduction <add>, %68, %cst_47 [2] : vector<2x8x8xf32> to vector<2x8xf32>
    %70 = vector.shape_cast %69 : vector<2x8xf32> to vector<2x8x1xf32>
    %71 = tpu.reciprocal %70 {approx = true} : vector<2x8x1xf32> -> vector<2x8x1xf32>
    %72 = vector.broadcast %71 : vector<2x8x1xf32> to vector<2x8x8xf32>
    %73 = arith.mulf %68, %72 : vector<2x8x8xf32>
    "tpu.trace_start"() <{level = 10 : i32, message = "bqk,bkd->bqd"}> : () -> ()
    %cst_48 = arith.constant dense<0.000000e+00> : vector<2x8x768xf32>
    %74 = tpu.matmul %73, %0, %cst_48 {dimension_numbers = #tpu.dot_dimension_numbers<[2], [1], [1], [2], [0, 0, 0, 1, 1, 2], [0], [0]>} : vector<2x8x8xf32>, vector<2x8x768xf32>, vector<2x8x768xf32> -> vector<2x8x768xf32>
    "tpu.trace_stop"() : () -> ()
    %75 = arith.addf %74, %0 : vector<2x8x768xf32>
    %76 = vector.shape_cast %75 : vector<2x8x768xf32> to vector<16x768xf32>
    %77 = arith.truncf %76 : vector<16x768xf32> to vector<16x768xbf16>
    %c0_49 = arith.constant 0 : index
    %c0_50 = arith.constant 0 : index
    %78 = vector.load %arg9[%c0_49, %c0_50] : memref<768x768xbf16, #tpu.memory_space<vmem>>, vector<768x768xbf16>
    %cst_51 = arith.constant dense<0.000000e+00> : vector<16x768xf32>
    %79 = tpu.matmul %77, %78, %cst_51 {dimension_numbers = #tpu.dot_dimension_numbers<[1], [0], [0], [1], [0, 0, 1, 1], [], []>} : vector<16x768xbf16>, vector<768x768xbf16>, vector<16x768xf32> -> vector<16x768xf32>
    %c0_52 = arith.constant 0 : index
    %c0_53 = arith.constant 0 : index
    %80 = vector.load %arg10[%c0_52, %c0_53] : memref<1x768xf32, #tpu.memory_space<vmem>>, vector<1x768xf32>
    %81 = vector.broadcast %80 : vector<1x768xf32> to vector<16x768xf32>
    %82 = arith.addf %79, %81 : vector<16x768xf32>
    %cst_54 = arith.constant dense<0.000000e+00> : vector<16xf32>
    %83 = vector.multi_reduction <add>, %82, %cst_54 [1] : vector<16x768xf32> to vector<16xf32>
    %84 = vector.shape_cast %83 : vector<16xf32> to vector<16x1xf32>
    %cst_55 = arith.constant 7.680000e+02 : f32
    %85 = vector.broadcast %cst_55 : f32 to vector<16x1xf32>
    %86 = arith.divf %84, %85 : vector<16x1xf32>
    %87 = vector.broadcast %86 : vector<16x1xf32> to vector<16x768xf32>
    %88 = arith.subf %82, %87 : vector<16x768xf32>
    %89 = arith.mulf %88, %88 : vector<16x768xf32>
    %cst_56 = arith.constant dense<0.000000e+00> : vector<16xf32>
    %90 = vector.multi_reduction <add>, %89, %cst_56 [1] : vector<16x768xf32> to vector<16xf32>
    %91 = vector.shape_cast %90 : vector<16xf32> to vector<16x1xf32>
    %cst_57 = arith.constant 7.680000e+02 : f32
    %92 = vector.broadcast %cst_57 : f32 to vector<16x1xf32>
    %93 = arith.divf %91, %92 : vector<16x1xf32>
    %cst_58 = arith.constant 9.99999996E-13 : f32
    %94 = vector.broadcast %cst_58 : f32 to vector<16x1xf32>
    %95 = arith.addf %93, %94 : vector<16x1xf32>
    %96 = math.rsqrt %95 : vector<16x1xf32>
    %97 = vector.broadcast %96 : vector<16x1xf32> to vector<16x768xf32>
    %98 = arith.mulf %88, %97 : vector<16x768xf32>
    %c0_59 = arith.constant 0 : index
    %c0_60 = arith.constant 0 : index
    %99 = vector.load %arg11[%c0_59, %c0_60] : memref<1x768xf32, #tpu.memory_space<vmem>>, vector<1x768xf32>
    %100 = vector.broadcast %99 : vector<1x768xf32> to vector<16x768xf32>
    %101 = arith.mulf %100, %98 : vector<16x768xf32>
    %c0_61 = arith.constant 0 : index
    %c0_62 = arith.constant 0 : index
    %102 = vector.load %arg12[%c0_61, %c0_62] : memref<1x768xf32, #tpu.memory_space<vmem>>, vector<1x768xf32>
    %103 = vector.broadcast %102 : vector<1x768xf32> to vector<16x768xf32>
    %104 = arith.addf %101, %103 : vector<16x768xf32>
    %105 = vector.shape_cast %104 : vector<16x768xf32> to vector<2x8x768xf32>
    %c0_63 = arith.constant 0 : index
    %c0_64 = arith.constant 0 : index
    %c0_65 = arith.constant 0 : index
    %106 = vector.load %arg13[%c0_63, %c0_64, %c0_65] : memref<2x8x768xf32, #tpu.memory_space<vmem>>, vector<2x8x768xf32>
    tpu.vector_store %arg13[%c0_63, %c0_64, %c0_65], %105 {strides = array<i32>} : memref<2x8x768xf32, #tpu.memory_space<vmem>>, vector<2x8x768xf32>,
    return
  }
}

</mosaic_0001>

<bundles_post_ra>
// kernel: tpu_custom_call.1
= control target key start
LH: loop header
LB: loop body
LE: loop exit
PB: predicated region body
PF: predicated region fallthrough
CT: control target
= control target key end

     0   :  { %21 = vsyncpa [#allocation3], 0  ;;  %s6251_s0 = inlined_call_operand.hbm [shape: f32[2,8,768], index: 0, kind: input, shape index: {}]   ;;  %s6252_s1 = inlined_call_operand.hbm [shape: f32[2,8,64], index: 1, kind: input, shape index: {}]   ;;  %s6253_s2 = inlined_call_operand.hbm [shape: f32[2,1,8], index: 2, kind: input, shape index: {}]   ;;  %s6254_s3 = inlined_call_operand.vmem [shape: f32[2,8,1], index: 3, kind: input, shape index: {}]   ;;  %s6255_s4 = inlined_call_operand.vmem [shape: f32[768,30], index: 4, kind: input, shape index: {}]   ;;  %s6256_s5 = inlined_call_operand.vmem [shape: f32[64,30], index: 5, kind: input, shape index: {}]   ;;  %s6257_s6 = inlined_call_operand.hbm [shape: f32[30,30], index: 6, kind: input, shape index: {}]   ;;  %s6258_s7 = inlined_call_operand.hbm [shape: f32[30,30], index: 7, kind: input, shape index: {}]   ;;  %s6259_s8 = inlined_call_operand.hbm [shape: f32[30,30], index: 8, kind: input, shape index: {}]   ;;  %s6260_s9 = inlined_call_operand.hbm [shape: bf16[768,768], index: 9, kind: input, shape index: {}]   ;;  %s6261_s10 = inlined_call_operand.hbm [shape: f32[1,768], index: 10, kind: input, shape index: {}]   ;;  %s6262_s11 = inlined_call_operand.hbm [shape: f32[1,768], index: 11, kind: input, shape index: {}]   ;;  %s6263_s12 = inlined_call_operand.hbm [shape: f32[1,768], index: 12, kind: input, shape index: {}]   ;;  %s6264_s13 = inlined_call_operand.hbm [shape: f32[2,8,768], index: 13, kind: output, shape index: {0}]   ;;  %s6265_s14 = inlined_call_operand.hbm [shape: f32[2,8,8], index: 14, kind: output, shape index: {1}]   ;;  %s6266_s15 = inlined_call_operand.hbm [shape: f32[2,8,8], index: 15, kind: output, shape index: {2}]  }
   0x1   :  { %22 = vsyncpa [#allocation6], 0 }
   0x2   :  { %23 = vsyncpa [#allocation9], 0 }
   0x3   :  { %24 = vsyncpa [#allocation12], 0 }
   0x4   :  { %25 = vsyncpa [#allocation15], 0 }
   0x5   :  { %26 = vsyncpa [#allocation18], 0 }
   0x6   :  { %27 = vsyncpa [#allocation4], 0  ;;  %s46_s20 = sshll.u32 %s6252_s1, 4  ;;  %s47_s20 = int_to_ptr.hbm [resolvable:$true] %s46_s20 }
   0x7   :  { %28 = vsyncpa [#allocation21], 0  ;;  %s5485_s21 = smov [#allocation5]   ;;  %s78_s25 = sshll.u32 %s6257_s6, 4  ;;  %s79_s25 = int_to_ptr.hbm [resolvable:$true] %s78_s25 }
   0x8   :  { %s48_s22 = sshll.u32 %s5485_s21, 4  ;;  %s5486_s26 = smov 128   ;;  %s49_s22 = int_to_ptr.vmem [resolvable:$true] %s48_s22 }
   0x9   :  { %s5487_s27 = smov 8   ;;  %s5488_s28 = smov [#allocation8]  }
   0xa   :  { %54 = dma.hbm_to_vmem [thread:$0]  %s47_s20, 256, %s49_s22, [#allocation6], %s5486_s26, %s5486_s26, %s5487_s27  }
   0xb   :  { %s80_s29 = sshll.u32 %s5488_s28, 4  ;;  %s104_s16 = sshll.u32 %s6259_s8, 4  ;;  %s81_s29 = int_to_ptr.vmem [resolvable:$true] %s80_s29  ;;  %s105_s16 = int_to_ptr.hbm [resolvable:$true] %s104_s16 }
   0xc   :  { %86 = dma.hbm_to_vmem [thread:$0]  %s79_s25, 512, %s81_s29, [#allocation9], %s5486_s26, %s5486_s26, %s5487_s27  }
   0xd   :  { %s131_s18 = sshll.u32 %s6261_s10, 4  ;;  %s5489_s19 = smov [#allocation11]   ;;  %s132_s18 = int_to_ptr.hbm [resolvable:$true] %s131_s18 }
   0xe   :  { %s106_s21 = sshll.u32 %s5489_s19, 4  ;;  %s5490_s20 = smov [#allocation14]   ;;  %s107_s21 = int_to_ptr.vmem [resolvable:$true] %s106_s21 }
   0xf   :  { %112 = dma.hbm_to_vmem [thread:$0]  %s105_s16, 512, %s107_s21, [#allocation12], %s5486_s26, %s5486_s26, %s5487_s27  }
  0x10   :  { %s133_s8 = sshll.u32 %s5490_s20, 4  ;;  %s33_s24 = sshll.u32 %s6251_s0, 4  ;;  %s134_s8 = int_to_ptr.vmem [resolvable:$true] %s133_s8  ;;  %s34_s24 = int_to_ptr.hbm [resolvable:$true] %s33_s24 }
  0x11   :  { %136 = dma.hbm_to_vmem [thread:$0]  %s132_s18, 96, %s134_s8, [#allocation15]  }
  0x12   :  { %s5491_s25 = smov [#allocation2]   ;;  %s59_s30 = sshll.u32 %s6253_s2, 4  ;;  %s60_s30 = int_to_ptr.hbm [resolvable:$true] %s59_s30 }
  0x13   :  { %s35_s28 = sshll.u32 %s5491_s25, 4  ;;  %s5492_s1 = smov 768   ;;  %s36_s28 = int_to_ptr.vmem [resolvable:$true] %s35_s28 }
  0x14   :  { %s5493_s6 = smov 48   ;;  %s5494_s16 = smov [#allocation7]  }
  0x15   :  { %41 = dma.hbm_to_vmem [thread:$0]  %s34_s24, 1536, %s36_s28, [#allocation3], %s5492_s1, %s5492_s1, %s5493_s6  }
  0x16   :  { %s61_s17 = sshll.u32 %s5494_s16, 4  ;;  %s5495_s0 = smov 16   ;;  %s62_s17 = int_to_ptr.vmem [resolvable:$true] %s61_s17 }
  0x17   :  { %s5496_s19 = smov 1   ;;  %s91_s20 = sshll.u32 %s6258_s7, 4  ;;  %s92_s20 = int_to_ptr.hbm [resolvable:$true] %s91_s20 }
  0x18   :  { %67 = dma.hbm_to_vmem [thread:$0]  %s60_s30, 32, %s62_s17, [#allocation6], %s5495_s0, %s5495_s0, %s5496_s19  }
  0x19   :  { %s5497_s8 = smov [#allocation10]   ;;  %s117_s25 = sshll.u32 %s6260_s9, 4  ;;  %s118_s25 = int_to_ptr.hbm [resolvable:$true] %s117_s25 }
  0x1a   :  { %s93_s2 = sshll.u32 %s5497_s8, 4  ;;  %s5498_s24 = smov [#allocation13]   ;;  %s94_s2 = int_to_ptr.vmem [resolvable:$true] %s93_s2 }
  0x1b   :  { %99 = dma.hbm_to_vmem [thread:$0]  %s92_s20, 512, %s94_s2, [#allocation9], %s5486_s26, %s5486_s26, %s5487_s27  }
  0x1c   :  { %s119_s28 = sshll.u32 %s5498_s24, 4  ;;  %s5499_s10 = smov 384   ;;  %s120_s28 = int_to_ptr.vmem [resolvable:$true] %s119_s28 }
  0x1d   :  { %s5500_s29 = smov 24   ;;  %s142_s16 = sshll.u32 %s6262_s11, 4  ;;  %s143_s16 = int_to_ptr.hbm [resolvable:$true] %s142_s16 }
  0x1e   :  { %125 = dma.hbm_to_vmem [thread:$0]  %s118_s25, 36864, %s120_s28, [#allocation12], %s5499_s10, %s5499_s10, %s5500_s29  }
  0x1f   :  { %s5501_s17 = smov [#allocation16]   ;;  %s153_s18 = sshll.u32 %s6263_s12, 4  ;;  %s154_s18 = int_to_ptr.hbm [resolvable:$true] %s153_s18 }
  0x20   :  { %s144_s0 = sshll.u32 %s5501_s17, 4  ;;  %s5502_s21 = smov [#allocation17]   ;;  %s145_s0 = int_to_ptr.vmem [resolvable:$true] %s144_s0 }
  0x21   :  { %147 = dma.hbm_to_vmem [thread:$0]  %s143_s16, 96, %s145_s0, [#allocation15]  }
  0x22   :  { %s155_s20 = sshll.u32 %s5502_s21, 4  ;;  %s156_s20 = int_to_ptr.vmem [resolvable:$true] %s155_s20 }
  0x23   :  { %158 = dma.hbm_to_vmem [thread:$0]  %s154_s18, 96, %s156_s20, [#allocation18]  }
  0x24   :  { %5469 = dma.done.wait [#allocation3], 1536  }
  0x25   :  { %5470 = vsyncadd [#allocation3], 4294965760 }
  0x26   :  { %5471 = dma.done.wait [#allocation6], 288  }
  0x27   :  { %5472 = vsyncadd [#allocation6], 4294967008 }
  0x28   :  { %5473 = dma.done.wait [#allocation9], 1024  }
  0x29   :  { %5474 = vsyncadd [#allocation9], 4294966272 }
  0x2a   :  { %5475 = dma.done.wait [#allocation12], 37376  }
  0x2b   :  { %5476 = vsyncadd [#allocation12], 4294929920 }
  0x2c   :  { %5477 = dma.done.wait [#allocation15], 192  }
  0x2d   :  { %5478 = vsyncadd [#allocation15], 4294967104 }
  0x2e   :  { %5479 = dma.done.wait [#allocation18], 96  }
  0x2f   :  { %5480 = vsyncadd [#allocation18], 4294967200  ;;  %v226_v0 = vld [vmem:[%s6255_s4 + $0x78] sm:$0xff]  ;;  %v225_v1 = vld [vmem:[%s6255_s4 + $0x70] sm:$0xff]  ;;  %vm495_vm0 = vcmask 523264   ;;  %vm535_vm1 = vcmask 1045504  }
  0x30   :  { %v242_v2 = vld [vmem:[%s6255_s4 + $0xf8] sm:$0xff]  ;;  %307 = vmatpush.msra.mxu0 %v226_v0  ;;  %v241_v3 = vld [vmem:[%s6255_s4 + $0xf0] sm:$0xff]  ;;  %v224_v4 = vld [vmem:[%s6255_s4 + $0x68] sm:$0xff]  ;;  %vm447_vm2 = vcmask 244736   ;;  %vm682_vm8 = vcmask 64512   ;;  %s3575_s2 = sshll.u32 %s6265_s14, 4  ;;  %s3576_s2 = int_to_ptr.hbm [resolvable:$true] %s3575_s2 }
  0x31   :  { %330 = vmatpush.msra.mxu1 %v242_v2  ;;  %v240_v5 = vld [vmem:[%s6255_s4 + $0xe8] sm:$0xff]  ;;  %v258_v6 = vld [vmem:[%s6255_s4 + $0x178] sm:$0xff]  ;;  %v223_v7 = vld [vmem:[%s6255_s4 + $0x60] sm:$0xff]  ;;  %s5506_s22 = smov [#allocation22]   ;;  %s3588_s28 = sshll.u32 %s6266_s15, 4  ;;  %s3589_s28 = int_to_ptr.hbm [resolvable:$true] %s3588_s28 }
  0x32   :  { %308 = vmatpush.msra.mxu0 %v225_v1  ;;  %v239_v8 = vld [vmem:[%s6255_s4 + $0xe0] sm:$0xff]  ;;  %353 = vmatpush.msra.mxu2 %v258_v6  ;;  %v257_v9 = vld [vmem:[%s6255_s4 + $0x170] sm:$0xff]  ;;  %v222_v10 = vld [vmem:[%s6255_s4 + $0x58] sm:$0xff]  ;;  %s3586_s23 = sshll.u32 %s5506_s22, 4  ;;  %s5507_s14 = smov [#allocation19]   ;;  %s3587_s23 = int_to_ptr.vmem [resolvable:$true] %s3586_s23 }
  0x33   :  { %331 = vmatpush.msra.mxu1 %v241_v3  ;;  %v274_v11 = vld [vmem:[%s6255_s4 + $0x1f8] sm:$0xff]  ;;  %v256_v13 = vld [vmem:[%s6255_s4 + $0x168] sm:$0xff]  ;;  %v273_v14 = vld [vmem:[%s6255_s4 + $0x1f0] sm:$0xff]  ;;  %s3560_s15 = sshll.u32 %s5507_s14, 4  ;;  %s3562_s10 = sshll.u32 %s6264_s13, 4  ;;  %s3561_s15 = int_to_ptr.vmem [resolvable:$true] %s3560_s15  ;;  %s3563_s10 = int_to_ptr.hbm [resolvable:$true] %s3562_s10 }
  0x34   :  { %309 = vmatpush.msra.mxu0 %v224_v4  ;;  %v238_v12 = vld [vmem:[%s6255_s4 + $0xd8] sm:$0xff]  ;;  %354 = vmatpush.msra.mxu2 %v257_v9  ;;  %v255_v15 = vld [vmem:[%s6255_s4 + $0x160] sm:$0xff]  ;;  %v272_v16 = vld [vmem:[%s6255_s4 + $0x1e8] sm:$0xff] }
  0x35   :  { %332 = vmatpush.msra.mxu1 %v240_v5  ;;  %376 = vmatpush.msra.mxu3 %v274_v11  ;;  %v221_v17 = vld [vmem:[%s6255_s4 + $0x50] sm:$0xff]  ;;  %v254_v19 = vld [vmem:[%s6255_s4 + $0x158] sm:$0xff]  ;;  %v271_v20 = vld [vmem:[%s6255_s4 + $0x1e0] sm:$0xff] }
  0x36   :  { %310 = vmatpush.msra.mxu0 %v223_v7  ;;  %v237_v18 = vld [vmem:[%s6255_s4 + $0xd0] sm:$0xff]  ;;  %355 = vmatpush.msra.mxu2 %v256_v13  ;;  %v220_v21 = vld [vmem:[%s6255_s4 + $0x48] sm:$0xff]  ;;  %v270_v24 = vld [vmem:[%s6255_s4 + $0x1d8] sm:$0xff] }
  0x37   :  { %333 = vmatpush.msra.mxu1 %v239_v8  ;;  %377 = vmatpush.msra.mxu3 %v273_v14  ;;  %v236_v22 = vld [vmem:[%s6255_s4 + $0xc8] sm:$0xff]  ;;  %v253_v23 = vld [vmem:[%s6255_s4 + $0x150] sm:$0xff]  ;;  %v219_v25 = vld [vmem:[%s6255_s4 + $0x40] sm:$0xff] }
  0x38   :  { %311 = vmatpush.msra.mxu0 %v222_v10  ;;  %356 = vmatpush.msra.mxu2 %v255_v15  ;;  %v235_v26 = vld [vmem:[%s6255_s4 + $0xc0] sm:$0xff]  ;;  %v252_v27 = vld [vmem:[%s6255_s4 + $0x148] sm:$0xff]  ;;  %v269_v28 = vld [vmem:[%s6255_s4 + $0x1d0] sm:$0xff] }
  0x39   :  { %334 = vmatpush.msra.mxu1 %v238_v12  ;;  %378 = vmatpush.msra.mxu3 %v272_v16  ;;  %v218_v29 = vld [vmem:[%s6255_s4 + $0x38] sm:$0xff]  ;;  %v251_v31 = vld [vmem:[%s6255_s4 + $0x140] sm:$0xff]  ;;  %v268_v32 = vld [vmem:[%s6255_s4 + $0x1c8] sm:$0xff] }
  0x3a   :  { %312 = vmatpush.msra.mxu0 %v221_v17  ;;  %357 = vmatpush.msra.mxu2 %v254_v19  ;;  %v234_v30 = vld [vmem:[%s6255_s4 + $0xb8] sm:$0xff]  ;;  %v217_v33 = vld [vmem:[%s6255_s4 + $0x30] sm:$0xff]  ;;  %v267_v36 = vld [vmem:[%s6255_s4 + $0x1c0] sm:$0xff] }
  0x3b   :  { %335 = vmatpush.msra.mxu1 %v237_v18  ;;  %379 = vmatpush.msra.mxu3 %v271_v20  ;;  %v233_v34 = vld [vmem:[%s6255_s4 + $0xb0] sm:$0xff]  ;;  %v250_v35 = vld [vmem:[%s6255_s4 + $0x138] sm:$0xff]  ;;  %v216_v37 = vld [vmem:[%s6255_s4 + $0x28] sm:$0xff] }
  0x3c   :  { %313 = vmatpush.msra.mxu0 %v220_v21  ;;  %358 = vmatpush.msra.mxu2 %v253_v23  ;;  %v232_v38 = vld [vmem:[%s6255_s4 + $0xa8] sm:$0xff]  ;;  %v249_v39 = vld [vmem:[%s6255_s4 + $0x130] sm:$0xff]  ;;  %v266_v40 = vld [vmem:[%s6255_s4 + $0x1b8] sm:$0xff] }
  0x3d   :  { %336 = vmatpush.msra.mxu1 %v236_v22  ;;  %380 = vmatpush.msra.mxu3 %v270_v24  ;;  %v215_v41 = vld [vmem:[%s6255_s4 + $0x20] sm:$0xff]  ;;  %v248_v43 = vld [vmem:[%s6255_s4 + $0x128] sm:$0xff]  ;;  %v265_v44 = vld [vmem:[%s6255_s4 + $0x1b0] sm:$0xff] }
  0x3e   :  { %314 = vmatpush.msra.mxu0 %v219_v25  ;;  %359 = vmatpush.msra.mxu2 %v252_v27  ;;  %v231_v42 = vld [vmem:[%s6255_s4 + $0xa0] sm:$0xff]  ;;  %v214_v45 = vld [vmem:[%s6255_s4 + $0x18] sm:$0xff]  ;;  %v264_v48 = vld [vmem:[%s6255_s4 + $0x1a8] sm:$0xff] }
  0x3f   :  { %337 = vmatpush.msra.mxu1 %v235_v26  ;;  %381 = vmatpush.msra.mxu3 %v269_v28  ;;  %v230_v46 = vld [vmem:[%s6255_s4 + $0x98] sm:$0xff]  ;;  %v247_v47 = vld [vmem:[%s6255_s4 + $0x120] sm:$0xff]  ;;  %v213_v49 = vld [vmem:[%s6255_s4 + $0x10] sm:$0xff] }
  0x40   :  { %315 = vmatpush.msra.mxu0 %v218_v29  ;;  %360 = vmatpush.msra.mxu2 %v251_v31  ;;  %v229_v50 = vld [vmem:[%s6255_s4 + $0x90] sm:$0xff]  ;;  %v246_v51 = vld [vmem:[%s6255_s4 + $0x118] sm:$0xff]  ;;  %v263_v52 = vld [vmem:[%s6255_s4 + $0x1a0] sm:$0xff] }
  0x41   :  { %338 = vmatpush.msra.mxu1 %v234_v30  ;;  %382 = vmatpush.msra.mxu3 %v268_v32  ;;  %v212_v53 = vld [vmem:[%s6255_s4 + $0x8] sm:$0xff]  ;;  %v245_v55 = vld [vmem:[%s6255_s4 + $0x110] sm:$0xff]  ;;  %v262_v56 = vld [vmem:[%s6255_s4 + $0x198] sm:$0xff] }
  0x42   :  { %316 = vmatpush.msra.mxu0 %v217_v33  ;;  %361 = vmatpush.msra.mxu2 %v250_v35  ;;  %v228_v54 = vld [vmem:[%s6255_s4 + $0x88] sm:$0xff]  ;;  %v211_v57 = vld [vmem:[%s6255_s4] sm:$0xff]  ;;  %v290_v59 = vld [vmem:[%s6255_s4 + $0x278] sm:$0xff] }
  0x43   :  { %339 = vmatpush.msra.mxu1 %v233_v34  ;;  %383 = vmatpush.msra.mxu3 %v267_v36  ;;  %v227_v58 = vld [vmem:[%s6255_s4 + $0x80] sm:$0xff]  ;;  %v306_v60 = vld [vmem:[%s6255_s4 + $0x2f8] sm:$0xff]  ;;  %v244_v61 = vld [vmem:[%s6255_s4 + $0x108] sm:$0xff] }
  0x44   :  { %317 = vmatpush.msra.mxu0 %v216_v37  ;;  %362 = vmatpush.msra.mxu2 %v249_v39  ;;  %v261_v62 = vld [vmem:[%s6255_s4 + $0x190] sm:$0xff]  ;;  %v243_v1 = vld [vmem:[%s6255_s4 + $0x100] sm:$0xff]  ;;  %v260_v2 = vld [vmem:[%s6255_s4 + $0x188] sm:$0xff] }
  0x45   :  { %340 = vmatpush.msra.mxu1 %v232_v38  ;;  %384 = vmatpush.msra.mxu3 %v266_v40  ;;  %v289_v63 = vld [vmem:[%s6255_s4 + $0x270] sm:$0xff]  ;;  %v288_v3 = vld [vmem:[%s6255_s4 + $0x268] sm:$0xff]  ;;  %v259_v6 = vld [vmem:[%s6255_s4 + $0x180] sm:$0xff] }
  0x46   :  { %318 = vmatpush.msra.mxu0 %v215_v41  ;;  %363 = vmatpush.msra.mxu2 %v248_v43  ;;  %v305_v0 = vld [vmem:[%s6255_s4 + $0x2f0] sm:$0xff]  ;;  %v304_v4 = vld [vmem:[%s6255_s4 + $0x2e8] sm:$0xff]  ;;  %v287_v7 = vld [vmem:[%s6255_s4 + $0x260] sm:$0xff] }
  0x47   :  { %341 = vmatpush.msra.mxu1 %v231_v42  ;;  %385 = vmatpush.msra.mxu3 %v265_v44  ;;  %v5840_v5 = vld [vmem:[#allocation2 + $0x10] sm:$0xff]  ;;  %v303_v8 = vld [vmem:[%s6255_s4 + $0x2e0] sm:$0xff]  ;;  %v5851_v9 = vld [vmem:[#allocation2 + $0x18] sm:$0xff] }
  0x48   :  { %319 = vmatpush.msra.mxu0 %v214_v45  ;;  %364 = vmatpush.msra.mxu2 %v247_v47  ;;  %v5853_v10 = vld [vmem:[#allocation2] sm:$0xff]  ;;  %v286_v11 = vld [vmem:[%s6255_s4 + $0x258] sm:$0xff]  ;;  %v5862_v13 = vld [vmem:[#allocation2 + $0x8] sm:$0xff] }
  0x49   :  { %342 = vmatpush.msra.mxu1 %v230_v46  ;;  %386 = vmatpush.msra.mxu3 %v264_v48  ;;  %v302_v12 = vld [vmem:[%s6255_s4 + $0x2d8] sm:$0xff]  ;;  %v285_v14 = vld [vmem:[%s6255_s4 + $0x250] sm:$0xff]  ;;  %v284_v18 = vld [vmem:[%s6255_s4 + $0x248] sm:$0xff] }
  0x4a   :  { %320 = vmatpush.msra.mxu0 %v213_v49  ;;  %365 = vmatpush.msra.mxu2 %v246_v51  ;;  %v301_v15 = vld [vmem:[%s6255_s4 + $0x2d0] sm:$0xff]  ;;  %v494_v16 = vld [vmem:[%s6256_s5 + $0x38] sm:$0xff]  ;;  %v300_v19 = vld [vmem:[%s6255_s4 + $0x2c8] sm:$0xff] }
  0x4b   :  { %343 = vmatpush.msra.mxu1 %v229_v50  ;;  %387 = vmatpush.msra.mxu3 %v263_v52  ;;  %v493_v17 = vld [vmem:[%s6256_s5 + $0x30] sm:$0xff]  ;;  %v5885_v20 = vld [vmem:[#allocation2 + $0x40] sm:$0xff]  ;;  %v5893_v23 = vld [vmem:[#allocation2 + $0x48] sm:$0xff] }
  0x4c   :  { %321 = vmatpush.msra.mxu0 %v212_v53  ;;  %366 = vmatpush.msra.mxu2 %v245_v55  ;;  %v283_v21 = vld [vmem:[%s6255_s4 + $0x240] sm:$0xff]  ;;  %v5895_v24 = vld [vmem:[#allocation2 + $0x30] sm:$0xff]  ;;  %v282_v25 = vld [vmem:[%s6255_s4 + $0x238] sm:$0xff] }
  0x4d   :  { %344 = vmatpush.msra.mxu1 %v228_v54  ;;  %388 = vmatpush.msra.mxu3 %v262_v56  ;;  %v299_v22 = vld [vmem:[%s6255_s4 + $0x2c0] sm:$0xff]  ;;  %v298_v26 = vld [vmem:[%s6255_s4 + $0x2b8] sm:$0xff]  ;;  %v492_v28 = vld [vmem:[%s6256_s5 + $0x28] sm:$0xff] }
  0x4e   :  { %322 = vmatpush.msra.mxu0 %v211_v57  ;;  %367 = vmatpush.msra.mxu2 %v244_v61  ;;  %v5904_v27 = vld [vmem:[#allocation2 + $0x38] sm:$0xff]  ;;  %v281_v29 = vld [vmem:[%s6255_s4 + $0x230] sm:$0xff]  ;;  %v491_v31 = vld [vmem:[%s6256_s5 + $0x20] sm:$0xff] }
  0x4f   :  { %345 = vmatpush.msra.mxu1 %v227_v58  ;;  %389 = vmatpush.msra.mxu3 %v261_v62  ;;  %v297_v30 = vld [vmem:[%s6255_s4 + $0x2b0] sm:$0xff]  ;;  %v280_v32 = vld [vmem:[%s6255_s4 + $0x228] sm:$0xff]  ;;  %v490_v34 = vld [vmem:[%s6256_s5 + $0x18] sm:$0xff] }
  0x50   :  { %399 = vmatpush.msrb.mxu0 %v290_v59  ;;  %368 = vmatpush.msra.mxu2 %v243_v1  ;;  %v296_v33 = vld [vmem:[%s6255_s4 + $0x2a8] sm:$0xff]  ;;  %v279_v35 = vld [vmem:[%s6255_s4 + $0x220] sm:$0xff]  ;;  %v489_v37 = vld [vmem:[%s6256_s5 + $0x10] sm:$0xff] }
  0x51   :  { %422 = vmatpush.msrb.mxu1 %v306_v60  ;;  %390 = vmatpush.msra.mxu3 %v260_v2  ;;  %v295_v36 = vld [vmem:[%s6255_s4 + $0x2a0] sm:$0xff]  ;;  %v278_v38 = vld [vmem:[%s6255_s4 + $0x218] sm:$0xff]  ;;  %v488_v40 = vld [vmem:[%s6256_s5 + $0x8] sm:$0xff] }
  0x52   :  { %400 = vmatpush.msrb.mxu0 %v289_v63  ;;  %369 = vmatmul.f32.vlgmr.msra.gmra.mxu2 %v5840_v5  ;;  %v294_v39 = vld [vmem:[%s6255_s4 + $0x298] sm:$0xff]  ;;  %v277_v41 = vld [vmem:[%s6255_s4 + $0x210] sm:$0xff]  ;;  %v487_v43 = vld [vmem:[%s6256_s5] sm:$0xff] }
  0x53   :  { %423 = vmatpush.msrb.mxu1 %v305_v0  ;;  %391 = vmatpush.msra.mxu3 %v259_v6  ;;  %v293_v42 = vld [vmem:[%s6255_s4 + $0x290] sm:$0xff]  ;;  %v276_v44 = vld [vmem:[%s6255_s4 + $0x208] sm:$0xff]  ;;  %v485_v46 = vld [vmem:[#allocation5] sm:$0xff] }
  0x54   :  { %401 = vmatpush.msrb.mxu0 %v288_v3  ;;  %392 = vmatmul.f32.vlgmr.msra.gmra.mxu3 %v5851_v9  ;;  %v292_v45 = vld [vmem:[%s6255_s4 + $0x288] sm:$0xff]  ;;  %v275_v47 = vld [vmem:[%s6255_s4 + $0x200] sm:$0xff]  ;;  %v5976_v52 = vld [vmem:[#allocation2 + $0x50] sm:$0xff] }
  0x55   :  { %424 = vmatpush.msrb.mxu1 %v304_v4  ;;  %323 = vmatmul.f32.vlgmr.msra.gmra.mxu0 %v5853_v10  ;;  %v291_v48 = vld [vmem:[%s6255_s4 + $0x280] sm:$0xff]  ;;  %v5971_v50 = vld [vmem:[#allocation2 + $0x28] sm:$0xff]  ;;  %v5978_v53 = vld [vmem:[#allocation2 + $0x58] sm:$0xff] }
  0x56   :  { %402 = vmatpush.msrb.mxu0 %v287_v7  ;;  %346 = vmatmul.f32.vlgmr.msra.gmra.mxu1 %v5862_v13  ;;  %v5969_v49 = vld [vmem:[#allocation2 + $0x20] sm:$0xff]  ;;  %v486_v51 = vld [vmem:[#allocation5 + $0x8] sm:$0xff]  ;;  %v562_v60 = vld [vmem:[#allocation10] sm:$0xff] }
  0x57   :  { %425 = vmatpush.msrb.mxu1 %v303_v8  ;;  %510 = vmatpush.msrb.mxu2 %v494_v16  ;;  %v565_v56 = vld [vmem:[#allocation10 + $0x18] sm:$0x3f]  ;;  %v564_v57 = vld [vmem:[#allocation10 + $0x10] sm:$0xff]  ;;  %v563_v59 = vld [vmem:[#allocation10 + $0x8] sm:$0xff] }
  0x58   :  { %403 = vmatpush.msrb.mxu0 %v286_v11 }
  0x59   :  { %426 = vmatpush.msrb.mxu1 %v302_v12  ;;  %511 = vmatpush.msrb.mxu2 %v493_v17 }
  0x5a   :  { %404 = vmatpush.msrb.mxu0 %v285_v14  ;;  %372 = vmatmul.f32.gmra.mxu2 %v5885_v20 }
  0x5b   :  { %427 = vmatpush.msrb.mxu1 %v301_v15  ;;  %512 = vmatpush.msrb.mxu2 %v492_v28 }
  0x5c   :  { %405 = vmatpush.msrb.mxu0 %v284_v18  ;;  %395 = vmatmul.f32.gmra.mxu3 %v5893_v23 }
  0x5d   :  { %428 = vmatpush.msrb.mxu1 %v300_v19  ;;  %326 = vmatmul.f32.gmra.mxu0 %v5895_v24 }
  0x5e   :  { %406 = vmatpush.msrb.mxu0 %v283_v21  ;;  %349 = vmatmul.f32.gmra.mxu1 %v5904_v27 }
  0x5f   :  { %429 = vmatpush.msrb.mxu1 %v299_v22  ;;  %513 = vmatpush.msrb.mxu2 %v491_v31  ;;  %v527_v31 = vld [vmem:[#allocation8 + $0x10] sm:$0xff] }
  0x60   :  { %407 = vmatpush.msrb.mxu0 %v282_v25 }
  0x61   :  { %430 = vmatpush.msrb.mxu1 %v298_v26  ;;  %514 = vmatpush.msrb.mxu2 %v490_v34 }
  0x62   :  { %408 = vmatpush.msrb.mxu0 %v281_v29 }
  0x63   :  { %431 = vmatpush.msrb.mxu1 %v297_v30  ;;  %515 = vmatpush.msrb.mxu2 %v489_v37  ;;  %v528_v30 = vld [vmem:[#allocation8 + $0x18] sm:$0x3f] }
  0x64   :  { %409 = vmatpush.msrb.mxu0 %v280_v32  ;;  %3617 = vmatpush.msk.msrb.mxu3 %vm535_vm1, %v528_v30  ;;  %v526_v32 = vld [vmem:[#allocation8 + $0x8] sm:$0xff] }
  0x65   :  { %432 = vmatpush.msrb.mxu1 %v296_v33  ;;  %516 = vmatpush.msrb.mxu2 %v488_v40  ;;  %v525_v33 = vld [vmem:[#allocation8] sm:$0xff] }
  0x66   :  { %410 = vmatpush.msrb.mxu0 %v279_v35  ;;  %552 = vmatpush.msrb.mxu3 %v527_v31 }
  0x67   :  { %433 = vmatpush.msrb.mxu1 %v295_v36  ;;  %517 = vmatpush.msrb.mxu2 %v487_v43 }
  0x68   :  { %411 = vmatpush.msrb.mxu0 %v278_v38  ;;  %3615 = vmatmul.msk.f32.vlgmr.msrb.gmra.mxu2 %vm495_vm0, %v485_v46 }
  0x69   :  { %434 = vmatpush.msrb.mxu1 %v294_v39  ;;  %3620 = vmatpush.msk.msra.mxu2 %vm535_vm1, %v565_v56  ;;  %v601_v56 = vld [vmem:[#allocation11 + $0x18] sm:$0x3f] }
  0x6a   :  { %412 = vmatpush.msrb.mxu0 %v277_v41  ;;  %553 = vmatpush.msrb.mxu3 %v526_v32 }
  0x6b   :  { %435 = vmatpush.msrb.mxu1 %v293_v42  ;;  %588 = vmatpush.msra.mxu2 %v564_v57  ;;  %v600_v57 = vld [vmem:[#allocation11 + $0x10] sm:$0xff] }
  0x6c   :  { %413 = vmatpush.msrb.mxu0 %v276_v44  ;;  %554 = vmatpush.msrb.mxu3 %v525_v33 }
  0x6d   :  { %436 = vmatpush.msrb.mxu1 %v292_v45  ;;  %589 = vmatpush.msra.mxu2 %v563_v59 }
  0x6e   :  { %414 = vmatpush.msrb.mxu0 %v275_v47  ;;  %3623 = vmatpush.msk.msra.mxu3 %vm535_vm1, %v601_v56 }
  0x6f   :  { %437 = vmatpush.msrb.mxu1 %v291_v48  ;;  %415 = vmatmul.f32.vlgmr.msrb.gmra.mxu0 %v5969_v49 }
  0x70   :  { %438 = vmatmul.f32.vlgmr.msrb.gmra.mxu1 %v5971_v50  ;;  %3616 = vmatmul.msk.f32.gmra.mxu2 %vm495_vm0, %v486_v51 }
  0x71   :  { %590 = vmatpush.msra.mxu2 %v562_v60  ;;  %v599_v60 = vld [vmem:[#allocation11 + $0x8] sm:$0xff]  ;;  %618 = vmatpush.msra.mxu3 %v600_v57 }
  0x73   :  { %619 = vmatpush.msra.mxu3 %v599_v60  ;;  %v5118_v60 = vld [vmem:[#allocation7 + $0x1] ss:$0 sm:$0xff] }
  0x77   :  { %418 = vmatmul.f32.gmra.mxu0 %v5976_v52 }
  0x78   :  { %441 = vmatmul.f32.gmra.mxu1 %v5978_v53 }
  0xd2   :  { %v324_v54 = vpop.f32.mrf.mxu0 }
  0xd3   :  { %v347_v55 = vpop.f32.mrf.mxu1 }
  0xd4   :  { %v348_v62 = vadd.f32 %v347_v55, %v324_v54 }
  0xd5   :  { %v370_v58 = vpop.f32.mrf.mxu2 }
  0xd6   :  { %v371_v1 = vadd.f32 %v370_v58, %v348_v62  ;;  %v598_v62 = vld [vmem:[#allocation11] sm:$0xff] }
  0xd7   :  { %v393_v0 = vpop.f32.mrf.mxu3  ;;  %620 = vmatpush.msra.mxu3 %v598_v62 }
  0xd8   :  { %v394_v3 = vadd.f32 %v393_v0, %v371_v1 }
  0xda   :  { %v327_v61 = vpop.f32.mrf.mxu0 }
  0xdb   :  { %v350_v63 = vpop.f32.mrf.mxu1 }
  0xdc   :  { %v351_v4 = vadd.f32 %v350_v63, %v327_v61 }
  0xdd   :  { %v373_v2 = vpop.f32.mrf.mxu2 }
  0xde   :  { %v374_v11 = vadd.f32 %v373_v2, %v351_v4 }
  0xdf   :  { %v396_v14 = vpop.f32.mrf.mxu3 }
  0xe0   :  { %v397_v17 = vadd.f32 %v396_v14, %v374_v11 }
  0xeb   :  { %v5986_v15 = vpop.f32.mrf.mxu2 }
  0xec   :  { %v416_v6 = vpop.f32.mrf.mxu0  ;;  %3621 = vmatmul.msk.f32.vlgmr.msra.gmra.mxu2 %vm447_vm2, %v5986_v15 }
  0xed   :  { %v439_v7 = vpop.f32.mrf.mxu1  ;;  %v417_v8 = vadd.f32 %v416_v6, %v394_v3 }
  0xef   :  { %v5984_v12 = vadd.f32 %v439_v7, %v417_v8 }
  0xf1   :  { %v445_v16 = vmul.f32 %v5984_v12, %v5984_v12 }
  0xf3   :  { %v448_v18 = vsel %vm447_vm2, %v445_v16, 0.0  ;;  %v5993_v26 = vpop.f32.mrf.mxu2 }
  0xf4   :  { %v419_v19 = vpop.f32.mrf.mxu0  ;;  %449 = vadd.xlane.f32.xlu0 %v448_v18  ;;  %3622 = vmatmul.msk.f32.gmra.mxu2 %vm447_vm2, %v5993_v26 }
  0xf5   :  { %v442_v21 = vpop.f32.mrf.mxu1  ;;  %v420_v22 = vadd.f32 %v419_v19, %v397_v17 }
  0xf7   :  { %v443_v25 = vadd.f32 %v442_v21, %v420_v22 }
  0xf9   :  { %v446_v28 = vmul.f32 %v443_v25, %v443_v25 }
  0xfb   :  { %v451_v29 = vsel %vm447_vm2, %v446_v28, 0.0 }
  0xfc   :  { %452 = vadd.xlane.f32.xlu0 %v451_v29 }
 0x167   :  { %v450_v34 = vpop.xlane.xlu0 %449 }
 0x16f   :  { %v453_v35 = vpop.xlane.xlu0 %452  ;;  %v592_v39 = vpop.f32.mrf.mxu2 }
 0x170   :  { %v454_v36 = vadd.f32 %v453_v35, %v450_v34  ;;  %3626 = vmatpush.xpose.msk.msra.mxu0 %vm447_vm2, %v592_v39 }
 0x172   :  { %v455_v37 = vrot.slane %v454_v36, 4 }
 0x174   :  { %v456_v38 = vadd.f32 %v455_v37, %v454_v36 }
 0x176   :  { %v457_v40 = vrot.slane %v456_v38, 2 }
 0x177   :  { %v595_v44 = vpop.f32.mrf.mxu2 }
 0x178   :  { %v458_v41 = vadd.f32 %v457_v40, %v456_v38  ;;  %3628 = vmatpush.xpose.msk.msra.mxu1 %vm447_vm2, %v595_v44  ;;  %v5503_v44 = vmov 0  }
 0x179   :  { %5115 = vset.pattern.permute.xlu0 %v5503_v44  ;;  %5116 = vset.pattern.permute.xlu1 %v5503_v44  ;;  %v4885_v44 = vld [vmem:[#allocation13 + $0x284] sm:$0xf0] }
 0x17a   :  { %v459_v42 = vrot.slane %v458_v41, 1 }
 0x17c   :  { %v460_v43 = vadd.f32 %v459_v42, %v458_v41  ;;  %v861_v42 = vld [vmem:[%s6254_s3] sm:$0xff] }
 0x17d   :  { %865 = vperm.xlu0 %5115, %v861_v42  }
 0x17e   :  { %5119 = vrsqrt.f32 %v460_v43  ;;  %vm468_vm3 = vcmp.eq.f32.partialorder %v460_v43, inf  ;;  %v471_v58 = vand.u32 2147483648, %v460_v43  ;;  %vm470_vm4 = vcmp.eq.f32.partialorder %v460_v43, 0.0 }
 0x184   :  { %v5120_v45 = vpop.eup %5119 }
 0x185   :  { %v462_v46 = vmul.f32 %v5120_v45, %v460_v43 }
 0x187   :  { %v463_v47 = vmul.f32 %v5120_v45, %v462_v46 }
 0x189   :  { %v464_v48 = vmul.f32 0.5, %v463_v47 }
 0x18b   :  { %v465_v51 = vsub.f32 1.5, %v464_v48 }
 0x18d   :  { %v466_v54 = vmul.f32 %v5120_v45, %v465_v51  ;;  %v5117_v51 = vld [vmem:[#allocation7] ss:$0 sm:$0xff] }
 0x18f   :  { %v467_v55 = vmul.f32 %v466_v54, %v460_v43 }
 0x191   :  { %v469_v59 = vsel %vm468_vm3, %v460_v43, %v467_v55  ;;  %v862_v43 = vld [vmem:[%s6254_s3 + $0x8] sm:$0xff]  ;;  %s5505_s3 = smov [#allocation20]  }
 0x192   :  { %v472_v61 = vsel %vm470_vm4, %v471_v58, %v469_v59  ;;  %s3573_s11 = sshll.u32 %s5505_s3, 4  ;;  %s3574_s11 = int_to_ptr.vmem [resolvable:$true] %s3573_s11 }
 0x193   :  { %5121 = vrsqrt.f32 %v472_v61  ;;  %vm479_vm6 = vweird.f32 %v472_v61 }
 0x199   :  { %v5122_v63 = vpop.eup %5121 }
 0x19a   :  { %v474_v0 = vmul.f32 %v5122_v63, %v472_v61  ;;  %vm480_vm5 = vweird.f32 %v5122_v63 }
 0x19b   :  { %vm481_vm7 = vmor %vm479_vm6, %vm480_vm5 }
 0x19c   :  { %v475_v1 = vmul.f32 %v5122_v63, %v474_v0 }
 0x19e   :  { %v476_v2 = vmul.f32 0.5, %v475_v1 }
 0x1a0   :  { %v477_v3 = vsub.f32 1.5, %v476_v2 }
 0x1a2   :  { %v478_v4 = vmul.f32 %v5122_v63, %v477_v3 }
 0x1a4   :  { %v482_v6 = vsel %vm481_vm7, %v5122_v63, %v478_v4 }
 0x1a5   :  { %v483_v7 = vmul.f32 %v482_v6, %v5984_v12  ;;  %v484_v8 = vmul.f32 %v482_v6, %v443_v25 }
 0x1a7   :  { %3618 = vmatmul.msk.f32.vlgmr.msrb.gmra.mxu3 %vm447_vm2, %v483_v7  ;;  %3632 = vmatpush.xpose.msk.msrb.mxu0 %vm447_vm2, %v483_v7 }
 0x1a8   :  { %3634 = vmatpush.xpose.msk.msrb.mxu1 %vm447_vm2, %v484_v8 }
 0x1af   :  { %3619 = vmatmul.msk.f32.gmra.mxu3 %vm447_vm2, %v484_v8 }
 0x1b7   :  { %3624 = vmatmul.msk.f32.vlgmr.msra.gmra.mxu3 %vm447_vm2, %v5986_v15 }
 0x1bf   :  { %3625 = vmatmul.msk.f32.gmra.mxu3 %vm447_vm2, %v5993_v26 }
 0x1ef   :  { %v866_v55 = vpop.permute.xlu0 %865 }
 0x22a   :  { %v556_v11 = vpop.f32.mrf.mxu3 }
 0x22b   :  { %3627 = vmatmul.msk.f32.vlgmr.msra.gmra.mxu0 %vm447_vm2, %v556_v11 }
 0x22c   :  { %915 = vmatpush.msra.mxu0 %v5853_v10 }
 0x232   :  { %v559_v12 = vpop.f32.mrf.mxu3 }
 0x233   :  { %3629 = vmatmul.msk.f32.vlgmr.msra.gmra.mxu1 %vm447_vm2, %v559_v12  ;;  %3633 = vmatmul.msk.f32.vlgmr.msrb.gmra.mxu0 %vm447_vm2, %v483_v7 }
 0x234   :  { %935 = vmatpush.msra.mxu1 %v5862_v13  ;;  %995 = vmatpush.msrb.mxu0 %v5969_v49 }
 0x23a   :  { %v622_v14 = vpop.f32.mrf.mxu3 }
 0x23b   :  { %723 = vmatpush.msrb.mxu2 %v622_v14  ;;  %3635 = vmatmul.msk.f32.vlgmr.msrb.gmra.mxu1 %vm447_vm2, %v484_v8 }
 0x23c   :  { %1015 = vmatpush.msrb.mxu1 %v5971_v50 }
 0x242   :  { %v625_v15 = vpop.f32.mrf.mxu3 }
 0x243   :  { %746 = vmatpush.msrb.mxu3 %v625_v15 }
 0x2a8   :  { %v651_v16 = vpop.f32.mrf.mxu0 }
 0x2a9   :  { %v680_v10 = vmul.f32 0.18257418, %v651_v16 }
 0x2ab   :  { %v683_v17 = vsel %vm682_vm8, %v680_v10, -inf }
 0x2ac   :  { %684 = vmax.xlane.f32.xlu1 %v683_v17 }
 0x2b0   :  { %v677_v18 = vpop.f32.mrf.mxu1  ;;  %v768_v19 = vpop.f32.mrf.mxu0 }
 0x2b1   :  { %v681_v21 = vmul.f32 0.18257418, %v677_v18  ;;  %v791_v13 = vmax.f32 %v768_v19, 0.0  ;;  %v3822_v18 = vld [vmem:[#allocation13 + $0x150] sm:$0xf] }
 0x2b2   :  { %v4849_v19 = vld [vmem:[#allocation13 + $0x164] sm:$0xf0] }
 0x2b3   :  { %793 = vst.msk [vmem:[#allocation20] sm:$0xff] %vm682_vm8, %v791_v13  ;;  %v686_v49 = vsel %vm682_vm8, %v681_v21, -inf }
 0x2b4   :  { %687 = vmax.xlane.f32.xlu1 %v686_v49  ;;  %v4206_v49 = vld [vmem:[#allocation13 + $0x450] sm:$0xf] }
 0x2b8   :  { %v788_v22 = vpop.f32.mrf.mxu1 }
 0x2b9   :  { %v792_v25 = vmax.f32 %v788_v22, 0.0  ;;  %v4945_v22 = vld [vmem:[#allocation13 + $0x464] sm:$0xf0] }
 0x2bb   :  { %794 = vst.msk [vmem:[#allocation20 + $0x8] sm:$0xff] %vm682_vm8, %v792_v25 }
 0x2bc   :  { %3581 = dma.vmem_to_hbm [thread:$0]  %s3574_s11, 256, %s3576_s2, [#allocation21], %s5486_s26, %s5486_s26, %s5487_s27  }
 0x2cd   :  { %870 = vperm.xlu1 %5116, %v862_v43   ;;  %v3966_v43 = vld [vmem:[#allocation13 + $0x270] sm:$0xf] }
 0x31f   :  { %v685_v50 = vpop.xlane.xlu1 %684 }
 0x320   :  { %v689_v26 = vsub.f32 %v680_v10, %v685_v50  ;;  %v4993_v50 = vld [vmem:[#allocation13 + $0x5e4] sm:$0xf0] }
 0x322   :  { %v691_v28 = vmul.f32 1.442695, %v689_v26 }
 0x324   :  { %5123 = vpow2.f32 %v691_v28 }
 0x327   :  { %v688_v29 = vpop.xlane.xlu1 %687 }
 0x328   :  { %v690_v30 = vsub.f32 %v681_v21, %v688_v29  ;;  %v4014_v21 = vld [vmem:[#allocation13 + $0x2d0] sm:$0xf]  ;;  %v3823_v29 = vor.u32 %v4849_v19, %v3822_v18  ;;  %v3894_v18 = vld [vmem:[#allocation13 + $0x1e0] sm:$0xf]  ;;  %v4867_v19 = vld [vmem:[#allocation13 + $0x1f4] sm:$0xf0] }
 0x32a   :  { %v5124_v31 = vpop.eup %5123  ;;  %v693_v32 = vmul.f32 1.442695, %v690_v30 }
 0x32b   :  { %v695_v33 = vsel %vm682_vm8, %v5124_v31, 0.0 }
 0x32c   :  { %5125 = vpow2.f32 %v693_v32  ;;  %696 = vadd.xlane.f32.xlu2 %v695_v33  ;;  %v4207_v32 = vor.u32 %v4945_v22, %v4206_v49  ;;  %v3990_v33 = vld [vmem:[#allocation13 + $0x2a0] sm:$0xf]  ;;  %v4963_v22 = vld [vmem:[#allocation13 + $0x4f4] sm:$0xf0] }
 0x32d   :  { %v4278_v49 = vld [vmem:[#allocation13 + $0x4e0] sm:$0xf] }
 0x332   :  { %v5126_v34 = vpop.eup %5125 }
 0x333   :  { %v698_v35 = vsel %vm682_vm8, %v5126_v34, 0.0 }
 0x334   :  { %699 = vadd.xlane.f32.xlu2 %v698_v35  ;;  %v4182_v35 = vld [vmem:[#allocation13 + $0x420] sm:$0xf] }
 0x33f   :  { %v871_v61 = vpop.permute.xlu1 %870 }
 0x39f   :  { %v697_v36 = vpop.xlane.xlu2 %696 }
 0x3a0   :  { %5127 = vrcp.f32 %v697_v36  ;;  %v4987_v36 = vld [vmem:[#allocation13 + $0x5b4] sm:$0xf0] }
 0x3a6   :  { %v5128_v37 = vpop.eup %5127 }
 0x3a7   :  { %v703_v38 = vmul.f32 %v5128_v37, %v5124_v31  ;;  %v700_v39 = vpop.xlane.xlu2 %699  ;;  %v3798_v31 = vld [vmem:[#allocation13 + $0x120] sm:$0xf] }
 0x3a8   :  { %5129 = vrcp.f32 %v700_v39  ;;  %v3774_v39 = vld [vmem:[#allocation13 + $0xf0] sm:$0xf] }
 0x3a9   :  { %3630 = vmatmul.msk.f32.vlgmr.msrb.gmra.mxu2 %vm682_vm8, %v703_v38 }
 0x3ae   :  { %v5130_v40 = vpop.eup %5129 }
 0x3af   :  { %v704_v41 = vmul.f32 %v5130_v40, %v5126_v34  ;;  %v4891_v34 = vld [vmem:[#allocation13 + $0x2b4] sm:$0xf0]  ;;  %v4837_v40 = vld [vmem:[#allocation13 + $0x104] sm:$0xf0] }
 0x3b0   :  { %v3991_v38 = vor.u32 %v4891_v34, %v3990_v33  ;;  %v4254_v33 = vld [vmem:[#allocation13 + $0x4b0] sm:$0xf]  ;;  %v4957_v34 = vld [vmem:[#allocation13 + $0x4c4] sm:$0xf0] }
 0x3b1   :  { %3631 = vmatmul.msk.f32.vlgmr.msrb.gmra.mxu3 %vm682_vm8, %v704_v41 }
 0x42c   :  { %v725_v45 = vpop.f32.mrf.mxu2 }
 0x42d   :  { %3636 = vmatpush.xpose.msk.msra.mxu2 %vm447_vm2, %v725_v45 }
 0x430   :  { %3637 = vmatmul.msk.f32.vlgmr.msra.gmra.mxu2 %vm447_vm2, %v725_v45  ;;  %v4158_v45 = vld [vmem:[#allocation13 + $0x3f0] sm:$0xf] }
 0x431   :  { %955 = vmatpush.msrb.mxu2 %v5840_v5 }
 0x433   :  { %1038 = vmatpush.msra.mxu2 %v5895_v24 }
 0x434   :  { %v748_v46 = vpop.f32.mrf.mxu3 }
 0x435   :  { %3638 = vmatpush.xpose.msk.msra.mxu3 %vm447_vm2, %v748_v46 }
 0x438   :  { %3639 = vmatmul.msk.f32.vlgmr.msra.gmra.mxu3 %vm447_vm2, %v748_v46  ;;  %v4933_v46 = vld [vmem:[#allocation13 + $0x404] sm:$0xf0] }
 0x439   :  { %975 = vmatpush.msrb.mxu3 %v5851_v9 }
 0x43b   :  { %1058 = vmatpush.msra.mxu3 %v5904_v27 }
 0x4b3   :  { %v815_v47 = vpop.f32.mrf.mxu2 }
 0x4b4   :  { %v841_v48 = vmax.f32 %v815_v47, 0.0  ;;  %v4350_v47 = vld [vmem:[#allocation13 + $0x570] sm:$0xf] }
 0x4b6   :  { %v843_v54 = vadd.f32 %v841_v48, %v791_v13  ;;  %v4897_v13 = vld [vmem:[#allocation13 + $0x2e4] sm:$0xf0] }
 0x4b7   :  { %v4015_v30 = vor.u32 %v4897_v13, %v4014_v21  ;;  %v4981_v48 = vld [vmem:[#allocation13 + $0x584] sm:$0xf0]  ;;  %v4086_v21 = vld [vmem:[#allocation13 + $0x360] sm:$0xf]  ;;  %v4915_v13 = vld [vmem:[#allocation13 + $0x374] sm:$0xf0] }
 0x4b8   :  { %v847_v56 = vmax.f32 %v843_v54, 0.0  ;;  %v859_v5 = vadd.f32 %v5117_v51, %v843_v54  ;;  %v3775_v51 = vor.u32 %v4837_v40, %v3774_v39  ;;  %v3967_v54 = vor.u32 %v4885_v44, %v3966_v43  ;;  %v4782_v43 = vld [vmem:[#allocation13 + $0x8d0] sm:$0xf]  ;;  %v5089_v44 = vld [vmem:[#allocation13 + $0x8e4] sm:$0xf0] }
 0x4b9   :  { %v4255_v40 = vor.u32 %v4957_v34, %v4254_v33  ;;  %v3944_v33 = vld [vmem:[#allocation13 + $0x258] sm:$0xf0] }
 0x4ba   :  { %849 = vst.msk [vmem:[#allocation22] sm:$0xff] %vm682_vm8, %v847_v56  ;;  %v873_v57 = vadd.f32 %v866_v55, %v859_v5  ;;  %v3750_v55 = vld [vmem:[#allocation13 + $0xc0] sm:$0xf]  ;;  %v4831_v56 = vld [vmem:[#allocation13 + $0xd4] sm:$0xf0]  ;;  %v4159_v5 = vor.u32 %v4933_v46, %v4158_v45 }
 0x4bb   :  { %v838_v24 = vpop.f32.mrf.mxu3  ;;  %v4038_v45 = vld [vmem:[#allocation13 + $0x300] sm:$0xf]  ;;  %v4903_v46 = vld [vmem:[#allocation13 + $0x314] sm:$0xf0] }
 0x4bc   :  { %v842_v58 = vmax.f32 %v838_v24, 0.0  ;;  %v875_v59 = vsel %vm682_vm8, %v873_v57, -inf  ;;  %v3942_v24 = vld [vmem:[#allocation13 + $0x240] sm:$0xf] }
 0x4bd   :  { %876 = vmax.xlane.f32.xlu2 %v875_v59  ;;  %v4134_v59 = vld [vmem:[#allocation13 + $0x3c0] sm:$0xf] }
 0x4be   :  { %v844_v9 = vadd.f32 %v842_v58, %v792_v25  ;;  %v4398_v25 = vld [vmem:[#allocation13 + $0x5d0] sm:$0xf]  ;;  %v4879_v58 = vld [vmem:[#allocation13 + $0x254] sm:$0xf0] }
 0x4c0   :  { %v848_v62 = vmax.f32 %v844_v9, 0.0  ;;  %v860_v27 = vadd.f32 %v5118_v60, %v844_v9  ;;  %v4927_v60 = vld [vmem:[#allocation13 + $0x3d4] sm:$0xf0]  ;;  %v4326_v9 = vld [vmem:[#allocation13 + $0x540] sm:$0xf] }
 0x4c2   :  { %850 = vst.msk [vmem:[#allocation22 + $0x8] sm:$0xff] %vm682_vm8, %v848_v62  ;;  %v874_v63 = vadd.f32 %v871_v61, %v860_v27  ;;  %v4975_v61 = vld [vmem:[#allocation13 + $0x554] sm:$0xf0]  ;;  %v3751_v62 = vor.u32 %v4831_v56, %v3750_v55  ;;  %v3943_v27 = vor.u32 %v4879_v58, %v3942_v24  ;;  %v3824_v56 = vld [vmem:[#allocation13 + $0x168] sm:$0xf0]  ;;  %v4783_v58 = vor.u32 %v5089_v44, %v4782_v43 }
 0x4c3   :  { %v3920_v43 = vld [vmem:[#allocation13 + $0x228] sm:$0xf0]  ;;  %3594 = dma.vmem_to_hbm [thread:$0]  %s3587_s23, 256, %s3589_s28, [#allocation21], %s5486_s26, %s5486_s26, %s5487_s27  }
 0x4c4   :  { %v878_v0 = vsel %vm682_vm8, %v874_v63, -inf }
 0x4c5   :  { %879 = vmax.xlane.f32.xlu2 %v878_v0  ;;  %v4825_v0 = vld [vmem:[#allocation13 + $0xa4] sm:$0xf0] }
 0x530   :  { %v877_v1 = vpop.xlane.xlu2 %876 }
 0x531   :  { %v881_v2 = vsub.f32 %v873_v57, %v877_v1  ;;  %v4351_v57 = vor.u32 %v4981_v48, %v4350_v47  ;;  %v4135_v1 = vor.u32 %v4927_v60, %v4134_v59  ;;  %v4230_v47 = vld [vmem:[#allocation13 + $0x480] sm:$0xf]  ;;  %v4951_v48 = vld [vmem:[#allocation13 + $0x494] sm:$0xf0]  ;;  %v4039_v60 = vor.u32 %v4903_v46, %v4038_v45 }
 0x532   :  { %v4566_v59 = vld [vmem:[#allocation13 + $0x720] sm:$0xf]  ;;  %v5011_v46 = vld [vmem:[#allocation13 + $0x674] sm:$0xf0] }
 0x533   :  { %v883_v3 = vmul.f32 1.442695, %v881_v2  ;;  %v4327_v2 = vor.u32 %v4975_v61, %v4326_v9  ;;  %v4231_v9 = vor.u32 %v4951_v48, %v4230_v47  ;;  %v5035_v61 = vld [vmem:[#allocation13 + $0x734] sm:$0xf0]  ;;  %v4470_v45 = vld [vmem:[#allocation13 + $0x660] sm:$0xf] }
 0x534   :  { %v4662_v47 = vld [vmem:[#allocation13 + $0x7e0] sm:$0xf]  ;;  %v4471_v48 = vor.u32 %v5011_v46, %v4470_v45 }
 0x535   :  { %5131 = vpow2.f32 %v883_v3  ;;  %v3918_v3 = vld [vmem:[#allocation13 + $0x210] sm:$0xf]  ;;  %v5149_v45 = vld [vmem:[#allocation2 + $0x10] sm:$0xff] }
 0x538   :  { %v880_v4 = vpop.xlane.xlu2 %879 }
 0x539   :  { %v882_v6 = vsub.f32 %v874_v63, %v880_v4  ;;  %v3726_v63 = vld [vmem:[#allocation13 + $0x90] sm:$0xf]  ;;  %v4873_v4 = vld [vmem:[#allocation13 + $0x224] sm:$0xf0] }
 0x53b   :  { %v5132_v7 = vpop.eup %5131  ;;  %v885_v8 = vmul.f32 1.442695, %v882_v6  ;;  %v4110_v6 = vld [vmem:[#allocation13 + $0x390] sm:$0xf] }
 0x53c   :  { %v887_v11 = vsel %vm682_vm8, %v5132_v7, 0.0 }
 0x53d   :  { %5133 = vpow2.f32 %v885_v8  ;;  %888 = vadd.xlane.f32.xlu2 %v887_v11  ;;  %v4302_v8 = vld [vmem:[#allocation13 + $0x510] sm:$0xf]  ;;  %v4969_v11 = vld [vmem:[#allocation13 + $0x524] sm:$0xf0] }
 0x543   :  { %v5134_v12 = vpop.eup %5133 }
 0x544   :  { %v890_v14 = vsel %vm682_vm8, %v5134_v12, 0.0 }
 0x545   :  { %891 = vadd.xlane.f32.xlu2 %v890_v14  ;;  %v3919_v14 = vor.u32 %v4873_v4, %v3918_v3  ;;  %v4888_v3 = vld [vmem:[#allocation13 + $0x2a4] sm:$0xf]  ;;  %v3992_v4 = vld [vmem:[#allocation13 + $0x2b8] sm:$0xf0] }
 0x5b0   :  { %v889_v15 = vpop.xlane.xlu2 %888 }
 0x5b1   :  { %5135 = vrcp.f32 %v889_v15  ;;  %v3702_v15 = vld [vmem:[#allocation13 + $0x60] sm:$0xf] }
 0x5b7   :  { %v5136_v16 = vpop.eup %5135 }
 0x5b8   :  { %v895_v10 = vmul.f32 %v5136_v16, %v5132_v7  ;;  %v892_v17 = vpop.xlane.xlu2 %891  ;;  %v4921_v7 = vld [vmem:[#allocation13 + $0x3a4] sm:$0xf0]  ;;  %v4819_v16 = vld [vmem:[#allocation13 + $0x74] sm:$0xf0] }
 0x5b9   :  { %5137 = vrcp.f32 %v892_v17  ;;  %v4303_v17 = vor.u32 %v4969_v11, %v4302_v8  ;;  %v4542_v8 = vld [vmem:[#allocation13 + $0x6f0] sm:$0xf]  ;;  %v5029_v11 = vld [vmem:[#allocation13 + $0x704] sm:$0xf0] }
 0x5ba   :  { %3640 = vmatmul.msk.f32.vlgmr.msra.gmra.mxu0 %vm682_vm8, %v895_v10  ;;  %3641 = vmatmul.msk.f32.vlgmr.msra.gmra.mxu1 %vm682_vm8, %v895_v10 }
 0x5bb   :  { %3642 = vmatmul.msk.f32.vlgmr.msrb.gmra.mxu2 %vm682_vm8, %v895_v10  ;;  %3643 = vmatmul.msk.f32.vlgmr.msrb.gmra.mxu3 %vm682_vm8, %v895_v10 }
 0x5bc   :  { %1078 = vmatpush.msra.mxu0 %v5885_v20  ;;  %1098 = vmatpush.msra.mxu1 %v5893_v23  ;;  %v4843_v20 = vld [vmem:[#allocation13 + $0x134] sm:$0xf0]  ;;  %v4399_v23 = vor.u32 %v4993_v50, %v4398_v25  ;;  %v3703_v25 = vor.u32 %v4819_v16, %v3702_v15  ;;  %v3895_v50 = vor.u32 %v4867_v19, %v3894_v18  ;;  %v4834_v18 = vld [vmem:[#allocation13 + $0xf4] sm:$0xf]  ;;  %v3776_v19 = vld [vmem:[#allocation13 + $0x108] sm:$0xf0] }
 0x5bd   :  { %1118 = vmatpush.msrb.mxu2 %v5976_v52  ;;  %1138 = vmatpush.msrb.mxu3 %v5978_v53  ;;  %v4939_v52 = vld [vmem:[#allocation13 + $0x434] sm:$0xf0]  ;;  %v4374_v53 = vld [vmem:[#allocation13 + $0x5a0] sm:$0xf]  ;;  %v3799_v37 = vor.u32 %v4843_v20, %v3798_v31  ;;  %v3870_v31 = vld [vmem:[#allocation13 + $0x1b0] sm:$0xf]  ;;  %v3995_v16 = vor.u32 %v4888_v3, %v3992_v4 }
 0x5be   :  { %v4183_v41 = vor.u32 %v4939_v52, %v4182_v35  ;;  %v4375_v42 = vor.u32 %v4987_v36, %v4374_v53  ;;  %v4861_v20 = vld [vmem:[#allocation13 + $0x1c4] sm:$0xf0]  ;;  %v3654_v35 = vld [vmem:[#allocation13] sm:$0xf]  ;;  %v4807_v36 = vld [vmem:[#allocation13 + $0x14] sm:$0xf0] }
 0x5bf   :  { %v5138_v26 = vpop.eup %5137  ;;  %v3871_v53 = vor.u32 %v4861_v20, %v3870_v31  ;;  %v3752_v31 = vld [vmem:[#allocation13 + $0xd8] sm:$0xf0]  ;;  %v3872_v3 = vld [vmem:[#allocation13 + $0x1c8] sm:$0xf0] }
 0x5c0   :  { %v896_v28 = vmul.f32 %v5138_v26, %v5134_v12  ;;  %v3727_v12 = vor.u32 %v4825_v0, %v3726_v63  ;;  %v3678_v26 = vld [vmem:[#allocation13 + $0x30] sm:$0xf] }
 0x5c2   :  { %3644 = vmatmul.msk.f32.vlgmr.msrb.gmra.mxu0 %vm682_vm8, %v895_v10  ;;  %3645 = vmatmul.msk.f32.vlgmr.msrb.gmra.mxu1 %vm682_vm8, %v895_v10  ;;  %v4111_v10 = vor.u32 %v4921_v7, %v4110_v6  ;;  %v4567_v6 = vor.u32 %v5035_v61, %v4566_v59  ;;  %v4446_v59 = vld [vmem:[#allocation13 + $0x630] sm:$0xf] }
 0x5c3   :  { %3646 = vmatmul.msk.f32.vlgmr.msra.gmra.mxu2 %vm682_vm8, %v896_v28  ;;  %3647 = vmatmul.msk.f32.vlgmr.msra.gmra.mxu3 %vm682_vm8, %v896_v28 }
 0x5c4   :  { %2891 = vmatpush.bf16.msrb.mxu0 %v3823_v29  ;;  %2905 = vmatpush.bf16.msrb.mxu1 %v4015_v30  ;;  %v4087_v29 = vor.u32 %v4915_v13, %v4086_v21  ;;  %v4279_v30 = vor.u32 %v4963_v22, %v4278_v49  ;;  %v4882_v21 = vld [vmem:[#allocation13 + $0x274] sm:$0xf]  ;;  %v3779_v13 = vor.u32 %v4834_v18, %v3776_v19  ;;  %v3968_v49 = vld [vmem:[#allocation13 + $0x288] sm:$0xf0]  ;;  %v3848_v18 = vld [vmem:[#allocation13 + $0x198] sm:$0xf0] }
 0x5c5   :  { %2919 = vmatpush.bf16.msra.mxu2 %v4207_v32  ;;  %2933 = vmatpush.bf16.msra.mxu3 %v4399_v23  ;;  %v4062_v32 = vld [vmem:[#allocation13 + $0x330] sm:$0xf]  ;;  %v4909_v23 = vld [vmem:[#allocation13 + $0x344] sm:$0xf0]  ;;  %v3971_v22 = vor.u32 %v4882_v21, %v3968_v49 }
 0x5c6   :  { %v4063_v39 = vor.u32 %v4909_v23, %v4062_v32  ;;  %v4876_v23 = vld [vmem:[#allocation13 + $0x244] sm:$0xf] }
 0x5c7   :  { %v3947_v34 = vor.u32 %v4876_v23, %v3944_v33  ;;  %v5038_v33 = vld [vmem:[#allocation13 + $0x754] sm:$0xf] }
 0x5c8   :  { %2892 = vmatpush.bf16.msrb.mxu0 %v3799_v37  ;;  %2906 = vmatpush.bf16.msrb.mxu1 %v3991_v38  ;;  %v3846_v37 = vld [vmem:[#allocation13 + $0x180] sm:$0xf]  ;;  %v4855_v38 = vld [vmem:[#allocation13 + $0x194] sm:$0xf0] }
 0x5c9   :  { %2920 = vmatpush.bf16.msra.mxu2 %v4183_v41  ;;  %2934 = vmatpush.bf16.msra.mxu3 %v4375_v42  ;;  %v4590_v41 = vld [vmem:[#allocation13 + $0x750] sm:$0xf]  ;;  %v5041_v42 = vld [vmem:[#allocation13 + $0x764] sm:$0xf0]  ;;  %v3847_v55 = vor.u32 %v4855_v38, %v3846_v37 }
 0x5ca   :  { %3648 = vmatmul.msk.f32.vlgmr.msra.gmra.mxu0 %vm682_vm8, %v896_v28  ;;  %3649 = vmatmul.msk.f32.vlgmr.msra.gmra.mxu1 %vm682_vm8, %v896_v28  ;;  %v4591_v24 = vor.u32 %v5041_v42, %v4590_v41  ;;  %v5065_v37 = vld [vmem:[#allocation13 + $0x824] sm:$0xf0]  ;;  %v4870_v41 = vld [vmem:[#allocation13 + $0x214] sm:$0xf] }
 0x5cb   :  { %3650 = vmatmul.msk.f32.vlgmr.msrb.gmra.mxu2 %vm682_vm8, %v896_v28  ;;  %3651 = vmatmul.msk.f32.vlgmr.msrb.gmra.mxu3 %vm682_vm8, %v896_v28  ;;  %v4813_v28 = vld [vmem:[#allocation13 + $0x44] sm:$0xf0]  ;;  %v3923_v44 = vor.u32 %v4870_v41, %v3920_v43  ;;  %v5086_v43 = vld [vmem:[#allocation13 + $0x8d4] sm:$0xf] }
 0x5cc   :  { %2893 = vmatpush.bf16.msrb.mxu0 %v3775_v51  ;;  %2907 = vmatpush.bf16.msrb.mxu1 %v3967_v54  ;;  %v3679_v52 = vor.u32 %v4813_v28, %v3678_v26  ;;  %v4846_v51 = vld [vmem:[#allocation13 + $0x154] sm:$0xf]  ;;  %v3655_v54 = vor.u32 %v4807_v36, %v3654_v35  ;;  %v4710_v26 = vld [vmem:[#allocation13 + $0x840] sm:$0xf]  ;;  %v4494_v35 = vld [vmem:[#allocation13 + $0x690] sm:$0xf] }
 0x5cd   :  { %2921 = vmatpush.bf16.msra.mxu2 %v4159_v5  ;;  %2935 = vmatpush.bf16.msra.mxu3 %v4351_v57  ;;  %v4894_v5 = vld [vmem:[#allocation13 + $0x2d4] sm:$0xf]  ;;  %v4016_v57 = vld [vmem:[#allocation13 + $0x2e8] sm:$0xf0]  ;;  %v3827_v63 = vor.u32 %v4846_v51, %v3824_v56  ;;  %v5059_v51 = vld [vmem:[#allocation13 + $0x7f4] sm:$0xf0] }
 0x5ce   :  { %v4019_v0 = vor.u32 %v4894_v5, %v4016_v57  ;;  %v4663_v56 = vor.u32 %v5059_v51, %v4662_v47  ;;  %v4864_v57 = vld [vmem:[#allocation13 + $0x1e4] sm:$0xf]  ;;  %v5151_v51 = vld [vmem:[#allocation2 + $0x40] sm:$0xff] }
 0x5cf   :  { %v5150_v47 = vld [vmem:[#allocation2 + $0x18] sm:$0xff] }
 0x5d0   :  { %2894 = vmatpush.bf16.msrb.mxu0 %v3751_v62  ;;  %2908 = vmatpush.bf16.msrb.mxu1 %v3943_v27  ;;  %v4758_v62 = vld [vmem:[#allocation13 + $0x8a0] sm:$0xf]  ;;  %v5083_v27 = vld [vmem:[#allocation13 + $0x8b4] sm:$0xf0] }
 0x5d1   :  { %2922 = vmatpush.bf16.msra.mxu2 %v4135_v1  ;;  %2936 = vmatpush.bf16.msra.mxu3 %v4327_v2  ;;  %v4840_v1 = vld [vmem:[#allocation13 + $0x124] sm:$0xf]  ;;  %v3800_v2 = vld [vmem:[#allocation13 + $0x138] sm:$0xf0]  ;;  %v4759_v7 = vor.u32 %v5083_v27, %v4758_v62  ;;  %v5053_v62 = vld [vmem:[#allocation13 + $0x7c4] sm:$0xf0] }
 0x5d2   :  { %v3803_v15 = vor.u32 %v4840_v1, %v3800_v2  ;;  %v4858_v1 = vld [vmem:[#allocation13 + $0x1b4] sm:$0xf] }
 0x5d3   :  { %v3875_v4 = vor.u32 %v4858_v1, %v3872_v3  ;;  %v5080_v1 = vld [vmem:[#allocation13 + $0x8a4] sm:$0xf] }
 0x5d4   :  { %2895 = vmatpush.bf16.msrb.mxu0 %v3727_v12  ;;  %2909 = vmatpush.bf16.msrb.mxu1 %v3919_v14  ;;  %v4734_v12 = vld [vmem:[#allocation13 + $0x870] sm:$0xf]  ;;  %v5077_v14 = vld [vmem:[#allocation13 + $0x884] sm:$0xf0] }
 0x5d5   :  { %2923 = vmatpush.bf16.msra.mxu2 %v4111_v10  ;;  %2937 = vmatpush.bf16.msra.mxu3 %v4303_v17  ;;  %v4543_v10 = vor.u32 %v5029_v11, %v4542_v8  ;;  %v4735_v17 = vor.u32 %v5077_v14, %v4734_v12  ;;  %v4614_v8 = vld [vmem:[#allocation13 + $0x780] sm:$0xf]  ;;  %v5047_v12 = vld [vmem:[#allocation13 + $0x794] sm:$0xf0] }
 0x5d6   :  { %v4615_v14 = vor.u32 %v5047_v12, %v4614_v8  ;;  %v4978_v8 = vld [vmem:[#allocation13 + $0x574] sm:$0xf] }
 0x5d8   :  { %2896 = vmatpush.bf16.msrb.mxu0 %v3703_v25  ;;  %2910 = vmatpush.bf16.msrb.mxu1 %v3895_v50  ;;  %v4518_v25 = vld [vmem:[#allocation13 + $0x6c0] sm:$0xf]  ;;  %v5023_v50 = vld [vmem:[#allocation13 + $0x6d4] sm:$0xf0] }
 0x5d9   :  { %2924 = vmatpush.bf16.msra.mxu2 %v4087_v29  ;;  %2938 = vmatpush.bf16.msra.mxu3 %v4279_v30  ;;  %v4519_v28 = vor.u32 %v5023_v50, %v4518_v25  ;;  %v5071_v29 = vld [vmem:[#allocation13 + $0x854] sm:$0xf0]  ;;  %v4828_v30 = vld [vmem:[#allocation13 + $0xc4] sm:$0xf] }
 0x5da   :  { %v4711_v20 = vor.u32 %v5071_v29, %v4710_v26  ;;  %v3755_v32 = vor.u32 %v4828_v30, %v3752_v31  ;;  %v4942_v26 = vld [vmem:[#allocation13 + $0x454] sm:$0xf]  ;;  %v4400_v30 = vld [vmem:[#allocation13 + $0x5e8] sm:$0xf0] }
 0x5db   :  { %v4990_v29 = vld [vmem:[#allocation13 + $0x5d4] sm:$0xf] }
 0x5dc   :  { %2897 = vmatpush.bf16.msrb.mxu0 %v3679_v52  ;;  %2911 = vmatpush.bf16.msrb.mxu1 %v3871_v53  ;;  %v5017_v52 = vld [vmem:[#allocation13 + $0x6a4] sm:$0xf0]  ;;  %v4686_v53 = vld [vmem:[#allocation13 + $0x810] sm:$0xf]  ;;  %v4403_v23 = vor.u32 %v4990_v29, %v4400_v30 }
 0x5dd   :  { %2925 = vmatpush.bf16.msra.mxu2 %v4063_v39  ;;  %2939 = vmatpush.bf16.msra.mxu3 %v4255_v40  ;;  %v4495_v36 = vor.u32 %v5017_v52, %v4494_v35  ;;  %v4687_v38 = vor.u32 %v5065_v37, %v4686_v53  ;;  %v4822_v39 = vld [vmem:[#allocation13 + $0x94] sm:$0xf]  ;;  %v3728_v40 = vld [vmem:[#allocation13 + $0xa8] sm:$0xf0] }
 0x5de   :  { %v3731_v42 = vor.u32 %v4822_v39, %v3728_v40  ;;  %v5146_v52 = vld [vmem:[#allocation2 + $0x8] sm:$0xff] }
 0x5e0   :  { %2898 = vmatpush.bf16.msrb.mxu0 %v3655_v54  ;;  %2912 = vmatpush.bf16.msrb.mxu1 %v3847_v55  ;;  %v4816_v54 = vld [vmem:[#allocation13 + $0x64] sm:$0xf]  ;;  %v3704_v55 = vld [vmem:[#allocation13 + $0x78] sm:$0xf0] }
 0x5e1   :  { %2926 = vmatpush.bf16.msra.mxu2 %v4039_v60  ;;  %2940 = vmatpush.bf16.msra.mxu3 %v4231_v9  ;;  %v3707_v5 = vor.u32 %v4816_v54, %v3704_v55  ;;  %v5005_v60 = vld [vmem:[#allocation13 + $0x644] sm:$0xf0]  ;;  %v4638_v9 = vld [vmem:[#allocation13 + $0x7b0] sm:$0xf]  ;;  %v5152_v55 = vld [vmem:[#allocation2 + $0x48] sm:$0xff] }
 0x5e2   :  { %v4447_v61 = vor.u32 %v5005_v60, %v4446_v59  ;;  %v4639_v27 = vor.u32 %v5053_v62, %v4638_v9  ;;  %v4984_v59 = vld [vmem:[#allocation13 + $0x5a4] sm:$0xf]  ;;  %v4376_v60 = vld [vmem:[#allocation13 + $0x5b8] sm:$0xf0] }
 0x5e4   :  { %2947 = vmatpush.bf16.msra.mxu0 %v4591_v24  ;;  %2961 = vmatpush.bf16.msra.mxu1 %v4783_v58  ;;  %v3896_v24 = vld [vmem:[#allocation13 + $0x1f8] sm:$0xf0] }
 0x5e5   :  { %2975 = vmatpush.bf16.msrb.mxu2 %v3827_v63  ;;  %2989 = vmatpush.bf16.msrb.mxu3 %v4019_v0  ;;  %v3899_v58 = vor.u32 %v4864_v57, %v3896_v24  ;;  %v4810_v63 = vld [vmem:[#allocation13 + $0x34] sm:$0xf]  ;;  %v3680_v0 = vld [vmem:[#allocation13 + $0x48] sm:$0xf0] }
 0x5e6   :  { %v3683_v2 = vor.u32 %v4810_v63, %v3680_v0  ;;  %v5032_v63 = vld [vmem:[#allocation13 + $0x724] sm:$0xf]  ;;  %v4568_v0 = vld [vmem:[#allocation13 + $0x738] sm:$0xf0] }
 0x5e7   :  { %v4571_v12 = vor.u32 %v5032_v63, %v4568_v0  ;;  %v4472_v0 = vld [vmem:[#allocation13 + $0x678] sm:$0xf0] }
 0x5e8   :  { %2948 = vmatpush.bf16.msra.mxu0 %v4567_v6  ;;  %2962 = vmatpush.bf16.msra.mxu1 %v4759_v7  ;;  %v4422_v6 = vld [vmem:[#allocation13 + $0x600] sm:$0xf]  ;;  %v4999_v7 = vld [vmem:[#allocation13 + $0x614] sm:$0xf0] }
 0x5e9   :  { %2976 = vmatpush.bf16.msrb.mxu2 %v3803_v15  ;;  %2990 = vmatpush.bf16.msrb.mxu3 %v3995_v16  ;;  %v4423_v11 = vor.u32 %v4999_v7, %v4422_v6  ;;  %v4804_v15 = vld [vmem:[#allocation13 + $0x4] sm:$0xf]  ;;  %v3656_v16 = vld [vmem:[#allocation13 + $0x18] sm:$0xf0]  ;;  %v4930_v6 = vld [vmem:[#allocation13 + $0x3f4] sm:$0xf] }
 0x5ea   :  { %v4160_v7 = vld [vmem:[#allocation13 + $0x408] sm:$0xf0] }
 0x5ec   :  { %2949 = vmatpush.bf16.msra.mxu0 %v4543_v10  ;;  %2963 = vmatpush.bf16.msra.mxu1 %v4735_v17  ;;  %v4852_v10 = vld [vmem:[#allocation13 + $0x184] sm:$0xf]  ;;  %v3659_v17 = vor.u32 %v4804_v15, %v3656_v16  ;;  %v5026_v15 = vld [vmem:[#allocation13 + $0x6f4] sm:$0xf]  ;;  %v4544_v16 = vld [vmem:[#allocation13 + $0x708] sm:$0xf0] }
 0x5ed   :  { %2977 = vmatpush.bf16.msrb.mxu2 %v3779_v13  ;;  %2991 = vmatpush.bf16.msrb.mxu3 %v3971_v22  ;;  %v3851_v19 = vor.u32 %v4852_v10, %v3848_v18  ;;  %v5074_v10 = vld [vmem:[#allocation13 + $0x874] sm:$0xf]  ;;  %v4163_v18 = vor.u32 %v4930_v6, %v4160_v7  ;;  %v4547_v29 = vor.u32 %v5026_v15, %v4544_v16  ;;  %v4064_v7 = vld [vmem:[#allocation13 + $0x348] sm:$0xf0] }
 0x5ee   :  { %v4906_v6 = vld [vmem:[#allocation13 + $0x334] sm:$0xf]  ;;  %v4448_v16 = vld [vmem:[#allocation13 + $0x648] sm:$0xf0] }
 0x5ef   :  { %v5002_v15 = vld [vmem:[#allocation13 + $0x634] sm:$0xf] }
 0x5f0   :  { %2950 = vmatpush.bf16.msra.mxu0 %v4519_v28  ;;  %2964 = vmatpush.bf16.msra.mxu1 %v4711_v20  ;;  %v4208_v28 = vld [vmem:[#allocation13 + $0x468] sm:$0xf0] }
 0x5f1   :  { %2978 = vmatpush.bf16.msrb.mxu2 %v3755_v32  ;;  %2992 = vmatpush.bf16.msrb.mxu3 %v3947_v34  ;;  %v4211_v32 = vor.u32 %v4942_v26, %v4208_v28  ;;  %v5145_v34 = vld [vmem:[#allocation2] sm:$0xff] }
 0x5f4   :  { %2951 = vmatpush.bf16.msra.mxu0 %v4495_v36  ;;  %2965 = vmatpush.bf16.msra.mxu1 %v4687_v38  ;;  %v5147_v36 = vld [vmem:[#allocation2 + $0x30] sm:$0xff]  ;;  %v5148_v38 = vld [vmem:[#allocation2 + $0x38] sm:$0xff] }
 0x5f5   :  { %2979 = vmatpush.bf16.msrb.mxu2 %v3731_v42  ;;  %2993 = vmatpush.bf16.msrb.mxu3 %v3923_v44  ;;  %v4592_v42 = vld [vmem:[#allocation13 + $0x768] sm:$0xf0] }
 0x5f6   :  { %v4784_v44 = vld [vmem:[#allocation13 + $0x8e8] sm:$0xf0]  ;;  %v4595_v62 = vor.u32 %v5038_v33, %v4592_v42 }
 0x5f8   :  { %2952 = vmatpush.bf16.msra.mxu0 %v4471_v48  ;;  %2966 = vmatpush.bf16.msra.mxu1 %v4663_v56 }
 0x5f9   :  { %2980 = vmatpush.bf16.msrb.mxu2 %v3707_v5  ;;  %2994 = vmatpush.bf16.msrb.mxu3 %v3899_v58  ;;  %v4936_v5 = vld [vmem:[#allocation13 + $0x424] sm:$0xf]  ;;  %v4184_v58 = vld [vmem:[#allocation13 + $0x438] sm:$0xf0] }
 0x5fa   :  { %v4187_v3 = vor.u32 %v4936_v5, %v4184_v58  ;;  %v4912_v5 = vld [vmem:[#allocation13 + $0x364] sm:$0xf] }
 0x5fc   :  { %2953 = vmatpush.bf16.msra.mxu0 %v4447_v61  ;;  %2967 = vmatpush.bf16.msra.mxu1 %v4639_v27  ;;  %v4787_v27 = vor.u32 %v5086_v43, %v4784_v44  ;;  %v5014_v43 = vld [vmem:[#allocation13 + $0x694] sm:$0xf] }
 0x5fd   :  { %2981 = vmatpush.bf16.msrb.mxu2 %v3683_v2  ;;  %2995 = vmatpush.bf16.msrb.mxu3 %v3875_v4  ;;  %v4760_v2 = vld [vmem:[#allocation13 + $0x8b8] sm:$0xf0]  ;;  %v4379_v4 = vor.u32 %v4984_v59, %v4376_v60  ;;  %v5155_v44 = vld [vmem:[#allocation2 + $0x20] sm:$0xff] }
 0x5fe   :  { %v4088_v60 = vld [vmem:[#allocation13 + $0x378] sm:$0xf0] }
 0x600   :  { %2954 = vmatpush.bf16.msra.mxu0 %v4423_v11  ;;  %2968 = vmatpush.bf16.msra.mxu1 %v4615_v14  ;;  %v4352_v11 = vld [vmem:[#allocation13 + $0x588] sm:$0xf0]  ;;  %v4763_v14 = vor.u32 %v5080_v1, %v4760_v2  ;;  %v5056_v1 = vld [vmem:[#allocation13 + $0x7e4] sm:$0xf]  ;;  %v4664_v2 = vld [vmem:[#allocation13 + $0x7f8] sm:$0xf0] }
 0x601   :  { %2982 = vmatpush.bf16.msrb.mxu2 %v3659_v17  ;;  %2996 = vmatpush.bf16.msrb.mxu3 %v3851_v19  ;;  %v4736_v17 = vld [vmem:[#allocation13 + $0x888] sm:$0xf0]  ;;  %v4355_v19 = vor.u32 %v4978_v8, %v4352_v11  ;;  %v4954_v8 = vld [vmem:[#allocation13 + $0x4b4] sm:$0xf] }
 0x602   :  { %v4739_v30 = vor.u32 %v5074_v10, %v4736_v17  ;;  %v4256_v11 = vld [vmem:[#allocation13 + $0x4c8] sm:$0xf0]  ;;  %v5050_v10 = vld [vmem:[#allocation13 + $0x7b4] sm:$0xf] }
 0x603   :  { %v4640_v17 = vld [vmem:[#allocation13 + $0x7c8] sm:$0xf0] }
 0x637   :  { %v917_v21 = vpop.f32.mrf.mxu0  ;;  %v937_v13 = vpop.f32.mrf.mxu1 }
 0x638   :  { %v918_v35 = vadd.f32 %v5145_v34, %v917_v21  ;;  %v938_v53 = vadd.f32 %v5146_v52, %v937_v13  ;;  %v4924_v21 = vld [vmem:[#allocation13 + $0x3c4] sm:$0xf]  ;;  %v4136_v13 = vld [vmem:[#allocation13 + $0x3d8] sm:$0xf0] }
 0x639   :  { %v4139_v33 = vor.u32 %v4924_v21, %v4136_v13  ;;  %v5153_v52 = vld [vmem:[#allocation2 + $0x50] sm:$0xff]  ;;  %v4259_v21 = vor.u32 %v4954_v8, %v4256_v11  ;;  %v3758_v8 = vld [vmem:[#allocation13 + $0xc8] sm:$0xf] }
 0x63a   :  { %v4040_v13 = vld [vmem:[#allocation13 + $0x318] sm:$0xf0]  ;;  %v4832_v11 = vld [vmem:[#allocation13 + $0xdc] sm:$0xf0] }
 0x63e   :  { %v957_v49 = vpop.f32.mrf.mxu2  ;;  %v977_v22 = vpop.f32.mrf.mxu3 }
 0x63f   :  { %v6063_v25 = vpop.f32.mrf.mxu0  ;;  %v6065_v50 = vpop.f32.mrf.mxu1  ;;  %v958_v46 = vadd.f32 %v5149_v45, %v957_v49  ;;  %v978_v48 = vadd.f32 %v5150_v47, %v977_v22  ;;  %v4972_v49 = vld [vmem:[#allocation13 + $0x544] sm:$0xf]  ;;  %v4328_v22 = vld [vmem:[#allocation13 + $0x558] sm:$0xf0] }
 0x640   :  { %v4331_v34 = vor.u32 %v4972_v49, %v4328_v22  ;;  %v998_v45 = vadd.f32 %v5155_v44, %v6063_v25  ;;  %v4948_v49 = vld [vmem:[#allocation13 + $0x484] sm:$0xf]  ;;  %v4232_v22 = vld [vmem:[#allocation13 + $0x498] sm:$0xf0]  ;;  %v4844_v44 = vld [vmem:[#allocation13 + $0x13c] sm:$0xf0] }
 0x646   :  { %v1040_v31 = vpop.f32.mrf.mxu2  ;;  %v1060_v20 = vpop.f32.mrf.mxu3 }
 0x647   :  { %v1041_v37 = vadd.f32 %v5147_v36, %v1040_v31  ;;  %v1061_v39 = vadd.f32 %v5148_v38, %v1060_v20  ;;  %v1080_v40 = vpop.f32.mrf.mxu0  ;;  %v1100_v41 = vpop.f32.mrf.mxu1  ;;  %v5020_v31 = vld [vmem:[#allocation13 + $0x6c4] sm:$0xf]  ;;  %v4520_v20 = vld [vmem:[#allocation13 + $0x6d8] sm:$0xf0]  ;;  %v4112_v38 = vld [vmem:[#allocation13 + $0x3a8] sm:$0xf0] }
 0x648   :  { %v1081_v54 = vadd.f32 %v5151_v51, %v1080_v40  ;;  %v1101_v56 = vadd.f32 %v5152_v55, %v1100_v41  ;;  %v5154_v36 = vld [vmem:[#allocation2 + $0x58] sm:$0xff]  ;;  %v4523_v41 = vor.u32 %v5020_v31, %v4520_v20  ;;  %v5062_v51 = vld [vmem:[#allocation13 + $0x814] sm:$0xf]  ;;  %v4643_v31 = vor.u32 %v5050_v10, %v4640_v17  ;;  %v4898_v20 = vld [vmem:[#allocation13 + $0x2ec] sm:$0xf0] }
 0x649   :  { %v6067_v57 = vpack.c.bf16 %v1041_v37, %v918_v35  ;;  %v6069_v24 = vpack.c.bf16 %v1061_v39, %v938_v53  ;;  %v4918_v35 = vld [vmem:[#allocation13 + $0x394] sm:$0xf]  ;;  %v4304_v40 = vld [vmem:[#allocation13 + $0x528] sm:$0xf0]  ;;  %v4142_v10 = vld [vmem:[#allocation13 + $0x3c8] sm:$0xf] }
 0x64a   :  { %v6071_v9 = vpack.c.bf16 %v1081_v54, %v958_v46  ;;  %v6073_v61 = vpack.c.bf16 %v1101_v56, %v978_v48  ;;  %v4966_v39 = vld [vmem:[#allocation13 + $0x514] sm:$0xf]  ;;  %v4496_v48 = vld [vmem:[#allocation13 + $0x6a8] sm:$0xf0]  ;;  %v4115_v55 = vor.u32 %v4918_v35, %v4112_v38  ;;  %v4214_v35 = vld [vmem:[#allocation13 + $0x458] sm:$0xf] }
 0x64b   :  { %2899 = vmatmul.bf16.vlgmr.msrb.gmra.mxu0 %v6067_v57  ;;  %2913 = vmatmul.bf16.vlgmr.msrb.gmra.mxu1 %v6069_v24  ;;  %v5156_v46 = vld [vmem:[#allocation2 + $0x28] sm:$0xff]  ;;  %v4688_v54 = vld [vmem:[#allocation13 + $0x828] sm:$0xf0]  ;;  %v4307_v56 = vor.u32 %v4966_v39, %v4304_v40  ;;  %v4499_v25 = vor.u32 %v5014_v43, %v4496_v48  ;;  %v4994_v38 = vld [vmem:[#allocation13 + $0x5ec] sm:$0xf0] }
 0x64c   :  { %3003 = vmatpush.bf16.msrb.mxu0 %v4211_v32  ;;  %3017 = vmatpush.bf16.msrb.mxu1 %v4403_v23  ;;  %v5068_v32 = vld [vmem:[#allocation13 + $0x844] sm:$0xf]  ;;  %v4712_v23 = vld [vmem:[#allocation13 + $0x858] sm:$0xf0]  ;;  %v1018_v47 = vadd.f32 %v5156_v46, %v6065_v50  ;;  %v4691_v63 = vor.u32 %v5062_v51, %v4688_v54  ;;  %v4892_v46 = vld [vmem:[#allocation13 + $0x2bc] sm:$0xf0] }
 0x64d   :  { %2927 = vmatmul.bf16.vlgmr.msra.gmra.mxu2 %v6071_v9  ;;  %2941 = vmatmul.bf16.vlgmr.msra.gmra.mxu3 %v6073_v61  ;;  %v4715_v42 = vor.u32 %v5068_v32, %v4712_v23  ;;  %v5008_v50 = vld [vmem:[#allocation13 + $0x664] sm:$0xf]  ;;  %v4424_v23 = vld [vmem:[#allocation13 + $0x618] sm:$0xf0]  ;;  %v4190_v51 = vld [vmem:[#allocation13 + $0x428] sm:$0xf] }
 0x64e   :  { %3031 = vmatpush.bf16.msra.mxu2 %v4595_v62  ;;  %3045 = vmatpush.bf16.msra.mxu3 %v4787_v27  ;;  %v1120_v26 = vpop.f32.mrf.mxu2  ;;  %v1140_v28 = vpop.f32.mrf.mxu3  ;;  %v4960_v62 = vld [vmem:[#allocation13 + $0x4e4] sm:$0xf]  ;;  %v4280_v27 = vld [vmem:[#allocation13 + $0x4f8] sm:$0xf0]  ;;  %v4940_v54 = vld [vmem:[#allocation13 + $0x43c] sm:$0xf0] }
 0x64f   :  { %v1121_v53 = vadd.f32 %v5153_v52, %v1120_v26  ;;  %v1141_v37 = vadd.f32 %v5154_v36, %v1140_v28  ;;  %v3830_v26 = vld [vmem:[#allocation13 + $0x158] sm:$0xf]  ;;  %v4850_v28 = vld [vmem:[#allocation13 + $0x16c] sm:$0xf0]  ;;  %v4996_v32 = vld [vmem:[#allocation13 + $0x604] sm:$0xf] }
 0x650   :  { %3004 = vmatpush.bf16.msrb.mxu0 %v4187_v3  ;;  %3018 = vmatpush.bf16.msrb.mxu1 %v4379_v4  ;;  %v4091_v3 = vor.u32 %v4912_v5, %v4088_v60  ;;  %v4283_v4 = vor.u32 %v4960_v62, %v4280_v27  ;;  %v4946_v36 = vld [vmem:[#allocation13 + $0x46c] sm:$0xf0]  ;;  %v3831_v39 = vor.u32 %v4850_v28, %v3830_v26  ;;  %v3782_v62 = vld [vmem:[#allocation13 + $0xf8] sm:$0xf]  ;;  %v4928_v17 = vld [vmem:[#allocation13 + $0x3dc] sm:$0xf0] }
 0x651   :  { %v6081_v58 = vpack.c.bf16 %v1121_v53, %v998_v45  ;;  %v6083_v59 = vpack.c.bf16 %v1141_v37, %v1018_v47  ;;  %v4235_v53 = vor.u32 %v4948_v49, %v4232_v22  ;;  %v4406_v37 = vld [vmem:[#allocation13 + $0x5d8] sm:$0xf]  ;;  %v3998_v45 = vld [vmem:[#allocation13 + $0x2a8] sm:$0xf]  ;;  %v4215_v47 = vor.u32 %v4946_v36, %v4214_v35  ;;  %v4838_v27 = vld [vmem:[#allocation13 + $0x10c] sm:$0xf0] }
 0x652   :  { %3032 = vmatpush.bf16.msra.mxu2 %v4571_v12  ;;  %3046 = vmatpush.bf16.msra.mxu3 %v4763_v14  ;;  %v4475_v12 = vor.u32 %v5008_v50, %v4472_v0  ;;  %v4667_v14 = vor.u32 %v5056_v1, %v4664_v2  ;;  %v4407_v48 = vor.u32 %v4994_v38, %v4406_v37  ;;  %v4166_v1 = vld [vmem:[#allocation13 + $0x3f8] sm:$0xf]  ;;  %v4934_v2 = vld [vmem:[#allocation13 + $0x40c] sm:$0xf0]  ;;  %v3710_v35 = vld [vmem:[#allocation13 + $0x68] sm:$0xf] }
 0x653   :  { %v3999_v60 = vor.u32 %v4892_v46, %v3998_v45  ;;  %v4191_v50 = vor.u32 %v4940_v54, %v4190_v51  ;;  %v3734_v49 = vld [vmem:[#allocation13 + $0x98] sm:$0xf]  ;;  %v4826_v22 = vld [vmem:[#allocation13 + $0xac] sm:$0xf0]  ;;  %v4868_v36 = vld [vmem:[#allocation13 + $0x1fc] sm:$0xf0] }
 0x654   :  { %3005 = vmatpush.bf16.msrb.mxu0 %v4163_v18  ;;  %3019 = vmatpush.bf16.msrb.mxu1 %v4355_v19  ;;  %v4900_v18 = vld [vmem:[#allocation13 + $0x304] sm:$0xf]  ;;  %v4067_v19 = vor.u32 %v4906_v6, %v4064_v7  ;;  %v3783_v6 = vor.u32 %v4838_v27, %v3782_v62  ;;  %v3926_v26 = vld [vmem:[#allocation13 + $0x218] sm:$0xf]  ;;  %v4874_v28 = vld [vmem:[#allocation13 + $0x22c] sm:$0xf0] }
 0x655   :  { %v4043_v52 = vor.u32 %v4900_v18, %v4040_v13  ;;  %v4334_v18 = vld [vmem:[#allocation13 + $0x548] sm:$0xf]  ;;  %v3686_v45 = vld [vmem:[#allocation13 + $0x38] sm:$0xf]  ;;  %v4814_v46 = vld [vmem:[#allocation13 + $0x4c] sm:$0xf0] }
 0x656   :  { %3033 = vmatpush.bf16.msra.mxu2 %v4547_v29  ;;  %3047 = vmatpush.bf16.msra.mxu3 %v4739_v30  ;;  %v4022_v29 = vld [vmem:[#allocation13 + $0x2d8] sm:$0xf]  ;;  %v4451_v30 = vor.u32 %v5002_v15, %v4448_v16  ;;  %v4167_v15 = vor.u32 %v4934_v2, %v4166_v1  ;;  %v3687_v62 = vor.u32 %v4814_v46, %v3686_v45  ;;  %v5042_v2 = vld [vmem:[#allocation13 + $0x76c] sm:$0xf0] }
 0x657   :  { %v4023_v40 = vor.u32 %v4898_v20, %v4022_v29  ;;  %v4143_v29 = vor.u32 %v4928_v17, %v4142_v10  ;;  %v4922_v20 = vld [vmem:[#allocation13 + $0x3ac] sm:$0xf0]  ;;  %v4598_v1 = vld [vmem:[#allocation13 + $0x758] sm:$0xf]  ;;  %v4847_v10 = vld [vmem:[#allocation13 + $0x15c] sm:$0xf] }
 0x658   :  { %3006 = vmatpush.bf16.msrb.mxu0 %v4139_v33  ;;  %3020 = vmatpush.bf16.msrb.mxu1 %v4331_v34  ;;  %v5044_v33 = vld [vmem:[#allocation13 + $0x784] sm:$0xf]  ;;  %v4616_v34 = vld [vmem:[#allocation13 + $0x798] sm:$0xf0]  ;;  %v4599_v17 = vor.u32 %v5042_v2, %v4598_v1  ;;  %v4694_v1 = vld [vmem:[#allocation13 + $0x818] sm:$0xf] }
 0x659   :  { %v4619_v43 = vor.u32 %v5044_v33, %v4616_v34  ;;  %v3735_v33 = vor.u32 %v4826_v22, %v3734_v49  ;;  %v3927_v34 = vor.u32 %v4874_v28, %v3926_v26  ;;  %v4574_v26 = vld [vmem:[#allocation13 + $0x728] sm:$0xf]  ;;  %v5036_v28 = vld [vmem:[#allocation13 + $0x73c] sm:$0xf0]  ;;  %v5066_v2 = vld [vmem:[#allocation13 + $0x82c] sm:$0xf0] }
 0x65a   :  { %3034 = vmatpush.bf16.msra.mxu2 %v4523_v41  ;;  %3048 = vmatpush.bf16.msra.mxu3 %v4715_v42  ;;  %v3806_v41 = vld [vmem:[#allocation13 + $0x128] sm:$0xf]  ;;  %v4427_v42 = vor.u32 %v4996_v32, %v4424_v23  ;;  %v4310_v32 = vld [vmem:[#allocation13 + $0x518] sm:$0xf]  ;;  %v4970_v23 = vld [vmem:[#allocation13 + $0x52c] sm:$0xf0] }
 0x65b   :  { %2955 = vmatmul.bf16.vlgmr.msra.gmra.mxu0 %v6081_v58  ;;  %2969 = vmatmul.bf16.vlgmr.msra.gmra.mxu1 %v6083_v59  ;;  %v3807_v5 = vor.u32 %v4844_v44, %v3806_v41  ;;  %v4311_v38 = vor.u32 %v4970_v23, %v4310_v32  ;;  %v4286_v41 = vld [vmem:[#allocation13 + $0x4e8] sm:$0xf]  ;;  %v4841_v32 = vld [vmem:[#allocation13 + $0x12c] sm:$0xf]  ;;  %v3808_v23 = vld [vmem:[#allocation13 + $0x140] sm:$0xf0] }
 0x65c   :  { %3007 = vmatpush.bf16.msrb.mxu0 %v4115_v55  ;;  %3021 = vmatpush.bf16.msrb.mxu1 %v4307_v56  ;;  %v4382_v55 = vld [vmem:[#allocation13 + $0x5a8] sm:$0xf]  ;;  %v4988_v56 = vld [vmem:[#allocation13 + $0x5bc] sm:$0xf0] }
 0x65d   :  { %2983 = vmatmul.bf16.vlgmr.msrb.gmra.mxu2 %v6067_v57  ;;  %2997 = vmatmul.bf16.vlgmr.msrb.gmra.mxu3 %v6069_v24  ;;  %v4383_v0 = vor.u32 %v4988_v56, %v4382_v55  ;;  %v4070_v55 = vld [vmem:[#allocation13 + $0x338] sm:$0xf]  ;;  %v4910_v56 = vld [vmem:[#allocation13 + $0x34c] sm:$0xf0] }
 0x65e   :  { %3035 = vmatpush.bf16.msra.mxu2 %v4499_v25  ;;  %3049 = vmatpush.bf16.msra.mxu3 %v4691_v63  ;;  %v3974_v25 = vld [vmem:[#allocation13 + $0x278] sm:$0xf]  ;;  %v4886_v63 = vld [vmem:[#allocation13 + $0x28c] sm:$0xf0] }
 0x65f   :  { %v3975_v7 = vor.u32 %v4886_v63, %v3974_v25  ;;  %v3662_v25 = vld [vmem:[#allocation13 + $0x8] sm:$0xf]  ;;  %v4808_v63 = vld [vmem:[#allocation13 + $0x1c] sm:$0xf0] }
 0x660   :  { %3008 = vmatpush.bf16.msrb.mxu0 %v4091_v3  ;;  %3022 = vmatpush.bf16.msrb.mxu1 %v4283_v4  ;;  %v4358_v3 = vld [vmem:[#allocation13 + $0x578] sm:$0xf]  ;;  %v4982_v4 = vld [vmem:[#allocation13 + $0x58c] sm:$0xf0] }
 0x661   :  { %v4359_v16 = vor.u32 %v4982_v4, %v4358_v3  ;;  %v4071_v3 = vor.u32 %v4910_v56, %v4070_v55 }
 0x662   :  { %3036 = vmatpush.bf16.msra.mxu2 %v4475_v12  ;;  %3050 = vmatpush.bf16.msra.mxu3 %v4667_v14  ;;  %v3950_v12 = vld [vmem:[#allocation13 + $0x248] sm:$0xf]  ;;  %v4880_v14 = vld [vmem:[#allocation13 + $0x25c] sm:$0xf0] }
 0x663   :  { %v3951_v13 = vor.u32 %v4880_v14, %v3950_v12  ;;  %v4238_v12 = vld [vmem:[#allocation13 + $0x488] sm:$0xf]  ;;  %v4952_v14 = vld [vmem:[#allocation13 + $0x49c] sm:$0xf0] }
 0x664   :  { %3009 = vmatpush.bf16.msrb.mxu0 %v4067_v19  ;;  %3023 = vmatpush.bf16.msrb.mxu1 %v4259_v21  ;;  %v4976_v19 = vld [vmem:[#allocation13 + $0x55c] sm:$0xf0]  ;;  %v3759_v21 = vor.u32 %v4832_v11, %v3758_v8  ;;  %v4046_v8 = vld [vmem:[#allocation13 + $0x308] sm:$0xf]  ;;  %v4239_v22 = vor.u32 %v4952_v14, %v4238_v12  ;;  %v4695_v14 = vor.u32 %v5066_v2, %v4694_v1  ;;  %v4937_v1 = vld [vmem:[#allocation13 + $0x42c] sm:$0xf] }
 0x665   :  { %v4904_v11 = vld [vmem:[#allocation13 + $0x31c] sm:$0xf0]  ;;  %v4192_v2 = vld [vmem:[#allocation13 + $0x440] sm:$0xf0] }
 0x666   :  { %3037 = vmatpush.bf16.msra.mxu2 %v4451_v30  ;;  %3051 = vmatpush.bf16.msra.mxu3 %v4643_v31  ;;  %v4335_v30 = vor.u32 %v4976_v19, %v4334_v18  ;;  %v4118_v31 = vld [vmem:[#allocation13 + $0x398] sm:$0xf]  ;;  %v3832_v19 = vld [vmem:[#allocation13 + $0x170] sm:$0xf0]  ;;  %v4047_v49 = vor.u32 %v4904_v11, %v4046_v8  ;;  %v4871_v8 = vld [vmem:[#allocation13 + $0x21c] sm:$0xf] }
 0x667   :  { %v4119_v37 = vor.u32 %v4922_v20, %v4118_v31  ;;  %v3835_v31 = vor.u32 %v4847_v10, %v3832_v19  ;;  %v3928_v11 = vld [vmem:[#allocation13 + $0x230] sm:$0xf0]  ;;  %v4670_v10 = vld [vmem:[#allocation13 + $0x7e8] sm:$0xf] }
 0x668   :  { %3010 = vmatpush.bf16.msrb.mxu0 %v4043_v52  ;;  %3024 = vmatpush.bf16.msrb.mxu1 %v4235_v53  ;;  %v4820_v52 = vld [vmem:[#allocation13 + $0x7c] sm:$0xf0]  ;;  %v3902_v53 = vld [vmem:[#allocation13 + $0x1e8] sm:$0xf]  ;;  %v3931_v19 = vor.u32 %v4871_v8, %v3928_v11  ;;  %v5033_v8 = vld [vmem:[#allocation13 + $0x72c] sm:$0xf] }
 0x669   :  { %v3903_v44 = vor.u32 %v4868_v36, %v3902_v53  ;;  %v4550_v53 = vld [vmem:[#allocation13 + $0x6f8] sm:$0xf]  ;;  %v5030_v36 = vld [vmem:[#allocation13 + $0x70c] sm:$0xf0]  ;;  %v4576_v11 = vld [vmem:[#allocation13 + $0x740] sm:$0xf0] }
 0x66a   :  { %3038 = vmatpush.bf16.msra.mxu2 %v4427_v42  ;;  %3052 = vmatpush.bf16.msra.mxu3 %v4619_v43  ;;  %v4964_v42 = vld [vmem:[#allocation13 + $0x4fc] sm:$0xf0]  ;;  %v3711_v43 = vor.u32 %v4820_v52, %v3710_v35  ;;  %v4575_v35 = vor.u32 %v5036_v28, %v4574_v26  ;;  %v4551_v45 = vor.u32 %v5030_v36, %v4550_v53 }
 0x66b   :  { %3011 = vmatmul.bf16.vlgmr.msrb.gmra.mxu0 %v6071_v9  ;;  %3025 = vmatmul.bf16.vlgmr.msrb.gmra.mxu1 %v6073_v61  ;;  %v4287_v54 = vor.u32 %v4964_v42, %v4286_v41  ;;  %v4835_v41 = vld [vmem:[#allocation13 + $0xfc] sm:$0xf]  ;;  %v3784_v42 = vld [vmem:[#allocation13 + $0x110] sm:$0xf0] }
 0x66c   :  { %3059 = vmatpush.bf16.msra.mxu0 %v3831_v39  ;;  %3073 = vmatpush.bf16.msra.mxu1 %v4023_v40  ;;  %v4094_v39 = vld [vmem:[#allocation13 + $0x368] sm:$0xf]  ;;  %v4916_v40 = vld [vmem:[#allocation13 + $0x37c] sm:$0xf0]  ;;  %v3787_v55 = vor.u32 %v4835_v41, %v3784_v42  ;;  %v4943_v41 = vld [vmem:[#allocation13 + $0x45c] sm:$0xf] }
 0x66d   :  { %3039 = vmatmul.bf16.vlgmr.msra.gmra.mxu2 %v6081_v58  ;;  %3053 = vmatmul.bf16.vlgmr.msra.gmra.mxu3 %v6083_v59  ;;  %v4095_v51 = vor.u32 %v4916_v40, %v4094_v39  ;;  %v3811_v39 = vor.u32 %v4841_v32, %v3808_v23  ;;  %v4216_v42 = vld [vmem:[#allocation13 + $0x470] sm:$0xf0] }
 0x66e   :  { %3087 = vmatpush.bf16.msrb.mxu2 %v4215_v47  ;;  %3101 = vmatpush.bf16.msrb.mxu3 %v4407_v48  ;;  %v3878_v47 = vld [vmem:[#allocation13 + $0x1b8] sm:$0xf]  ;;  %v4862_v48 = vld [vmem:[#allocation13 + $0x1cc] sm:$0xf0] }
 0x66f   :  { %v3879_v27 = vor.u32 %v4862_v48, %v3878_v47  ;;  %v4526_v47 = vld [vmem:[#allocation13 + $0x6c8] sm:$0xf]  ;;  %v5024_v48 = vld [vmem:[#allocation13 + $0x6dc] sm:$0xf0] }
 0x670   :  { %3060 = vmatpush.bf16.msra.mxu0 %v3807_v5  ;;  %3074 = vmatpush.bf16.msra.mxu1 %v3999_v60  ;;  %v4262_v5 = vld [vmem:[#allocation13 + $0x4b8] sm:$0xf]  ;;  %v4958_v60 = vld [vmem:[#allocation13 + $0x4cc] sm:$0xf0] }
 0x671   :  { %v4263_v4 = vor.u32 %v4958_v60, %v4262_v5  ;;  %v4829_v5 = vld [vmem:[#allocation13 + $0xcc] sm:$0xf]  ;;  %v3760_v60 = vld [vmem:[#allocation13 + $0xe0] sm:$0xf0] }
 0x672   :  { %3088 = vmatpush.bf16.msrb.mxu2 %v4191_v50  ;;  %3102 = vmatpush.bf16.msrb.mxu3 %v4383_v0  ;;  %v3854_v50 = vld [vmem:[#allocation13 + $0x188] sm:$0xf]  ;;  %v4856_v0 = vld [vmem:[#allocation13 + $0x19c] sm:$0xf0] }
 0x674   :  { %3061 = vmatpush.bf16.msra.mxu0 %v3783_v6  ;;  %3075 = vmatpush.bf16.msra.mxu1 %v3975_v7  ;;  %v4790_v6 = vld [vmem:[#allocation13 + $0x8d8] sm:$0xf]  ;;  %v5090_v7 = vld [vmem:[#allocation13 + $0x8ec] sm:$0xf0] }
 0x675   :  { %v4791_v18 = vor.u32 %v5090_v7, %v4790_v6  ;;  %v4823_v6 = vld [vmem:[#allocation13 + $0x9c] sm:$0xf]  ;;  %v3736_v7 = vld [vmem:[#allocation13 + $0xb0] sm:$0xf0] }
 0x676   :  { %3089 = vmatpush.bf16.msrb.mxu2 %v4167_v15  ;;  %3103 = vmatpush.bf16.msrb.mxu3 %v4359_v16  ;;  %v3663_v15 = vor.u32 %v4808_v63, %v3662_v25  ;;  %v3855_v16 = vor.u32 %v4856_v0, %v3854_v50  ;;  %v4527_v25 = vor.u32 %v5024_v48, %v4526_v47  ;;  %v4502_v50 = vld [vmem:[#allocation13 + $0x698] sm:$0xf]  ;;  %v5018_v0 = vld [vmem:[#allocation13 + $0x6ac] sm:$0xf0]  ;;  %v4805_v47 = vld [vmem:[#allocation13 + $0xc] sm:$0xf] }
 0x677   :  { %v4503_v12 = vor.u32 %v5018_v0, %v4502_v50  ;;  %v3664_v48 = vld [vmem:[#allocation13 + $0x20] sm:$0xf0] }
 0x678   :  { %3062 = vmatpush.bf16.msra.mxu0 %v3759_v21  ;;  %3076 = vmatpush.bf16.msra.mxu1 %v3951_v13  ;;  %v4895_v21 = vld [vmem:[#allocation13 + $0x2dc] sm:$0xf]  ;;  %v4024_v13 = vld [vmem:[#allocation13 + $0x2f0] sm:$0xf0]  ;;  %v3667_v50 = vor.u32 %v4805_v47, %v3664_v48 }
 0x679   :  { %v4027_v20 = vor.u32 %v4895_v21, %v4024_v13  ;;  %v4817_v21 = vld [vmem:[#allocation13 + $0x6c] sm:$0xf]  ;;  %v3712_v13 = vld [vmem:[#allocation13 + $0x80] sm:$0xf0]  ;;  %v5063_v47 = vld [vmem:[#allocation13 + $0x81c] sm:$0xf] }
 0x67a   :  { %3090 = vmatpush.bf16.msrb.mxu2 %v4143_v29  ;;  %3104 = vmatpush.bf16.msrb.mxu3 %v4335_v30  ;;  %v4766_v29 = vld [vmem:[#allocation13 + $0x8a8] sm:$0xf]  ;;  %v5084_v30 = vld [vmem:[#allocation13 + $0x8bc] sm:$0xf0]  ;;  %v3715_v32 = vor.u32 %v4817_v21, %v3712_v13  ;;  %v4579_v21 = vor.u32 %v5033_v8, %v4576_v11  ;;  %v4696_v48 = vld [vmem:[#allocation13 + $0x830] sm:$0xf0] }
 0x67b   :  { %v4767_v52 = vor.u32 %v5084_v30, %v4766_v29  ;;  %v4454_v29 = vld [vmem:[#allocation13 + $0x638] sm:$0xf]  ;;  %v5006_v30 = vld [vmem:[#allocation13 + $0x64c] sm:$0xf0] }
 0x67c   :  { %3063 = vmatpush.bf16.msra.mxu0 %v3735_v33  ;;  %3077 = vmatpush.bf16.msra.mxu1 %v3927_v34  ;;  %v4889_v33 = vld [vmem:[#allocation13 + $0x2ac] sm:$0xf]  ;;  %v4000_v34 = vld [vmem:[#allocation13 + $0x2c0] sm:$0xf0]  ;;  %v4455_v53 = vor.u32 %v5006_v30, %v4454_v29 }
 0x67d   :  { %v4003_v40 = vor.u32 %v4889_v33, %v4000_v34  ;;  %v4811_v33 = vld [vmem:[#allocation13 + $0x3c] sm:$0xf]  ;;  %v3688_v34 = vld [vmem:[#allocation13 + $0x50] sm:$0xf0] }
 0x67e   :  { %3091 = vmatpush.bf16.msrb.mxu2 %v4119_v37  ;;  %3105 = vmatpush.bf16.msrb.mxu3 %v4311_v38  ;;  %v4742_v37 = vld [vmem:[#allocation13 + $0x878] sm:$0xf]  ;;  %v5078_v38 = vld [vmem:[#allocation13 + $0x88c] sm:$0xf0] }
 0x67f   :  { %v4743_v46 = vor.u32 %v5078_v38, %v4742_v37  ;;  %v4430_v37 = vld [vmem:[#allocation13 + $0x608] sm:$0xf]  ;;  %v5000_v38 = vld [vmem:[#allocation13 + $0x61c] sm:$0xf0] }
 0x680   :  { %3064 = vmatpush.bf16.msra.mxu0 %v3711_v43  ;;  %3078 = vmatpush.bf16.msra.mxu1 %v3903_v44  ;;  %v4883_v43 = vld [vmem:[#allocation13 + $0x27c] sm:$0xf]  ;;  %v3976_v44 = vld [vmem:[#allocation13 + $0x290] sm:$0xf0] }
 0x681   :  { %v3979_v56 = vor.u32 %v4883_v43, %v3976_v44  ;;  %v3691_v43 = vor.u32 %v4811_v33, %v3688_v34 }
 0x682   :  { %3092 = vmatpush.bf16.msrb.mxu2 %v4095_v51  ;;  %3106 = vmatpush.bf16.msrb.mxu3 %v4287_v54  ;;  %v4718_v51 = vld [vmem:[#allocation13 + $0x848] sm:$0xf]  ;;  %v5072_v54 = vld [vmem:[#allocation13 + $0x85c] sm:$0xf0] }
 0x683   :  { %v4719_v63 = vor.u32 %v5072_v54, %v4718_v51  ;;  %v4853_v51 = vld [vmem:[#allocation13 + $0x18c] sm:$0xf]  ;;  %v3856_v54 = vld [vmem:[#allocation13 + $0x1a0] sm:$0xf0] }
 0x684   :  { %3065 = vmatpush.bf16.msra.mxu0 %v3687_v62  ;;  %3079 = vmatpush.bf16.msra.mxu1 %v3879_v27  ;;  %v4877_v62 = vld [vmem:[#allocation13 + $0x24c] sm:$0xf]  ;;  %v3952_v27 = vld [vmem:[#allocation13 + $0x260] sm:$0xf0]  ;;  %v3859_v0 = vor.u32 %v4853_v51, %v3856_v54 }
 0x686   :  { %3093 = vmatpush.bf16.msrb.mxu2 %v4071_v3  ;;  %3107 = vmatpush.bf16.msrb.mxu3 %v4263_v4  ;;  %v3763_v3 = vor.u32 %v4829_v5, %v3760_v60  ;;  %v3955_v4 = vor.u32 %v4877_v62, %v3952_v27  ;;  %v5039_v5 = vld [vmem:[#allocation13 + $0x75c] sm:$0xf]  ;;  %v4219_v60 = vor.u32 %v4943_v41, %v4216_v42  ;;  %v4600_v27 = vld [vmem:[#allocation13 + $0x770] sm:$0xf0] }
 0x687   :  { %v4967_v41 = vld [vmem:[#allocation13 + $0x51c] sm:$0xf]  ;;  %v4312_v42 = vld [vmem:[#allocation13 + $0x530] sm:$0xf0] }
 0x688   :  { %3066 = vmatpush.bf16.msra.mxu0 %v3663_v15  ;;  %3080 = vmatpush.bf16.msra.mxu1 %v3855_v16  ;;  %v4478_v15 = vld [vmem:[#allocation13 + $0x668] sm:$0xf]  ;;  %v5012_v16 = vld [vmem:[#allocation13 + $0x67c] sm:$0xf0]  ;;  %v4315_v54 = vor.u32 %v4967_v41, %v4312_v42  ;;  %v3814_v41 = vld [vmem:[#allocation13 + $0x130] sm:$0xf] }
 0x689   :  { %v4479_v26 = vor.u32 %v5012_v16, %v4478_v15  ;;  %v4195_v15 = vor.u32 %v4937_v1, %v4192_v2  ;;  %v4845_v42 = vld [vmem:[#allocation13 + $0x144] sm:$0xf0] }
 0x68a   :  { %3094 = vmatpush.bf16.msrb.mxu2 %v4047_v49  ;;  %3108 = vmatpush.bf16.msrb.mxu3 %v4239_v22  ;;  %v4865_v49 = vld [vmem:[#allocation13 + $0x1ec] sm:$0xf]  ;;  %v3904_v22 = vld [vmem:[#allocation13 + $0x200] sm:$0xf0] }
 0x68b   :  { %3067 = vmatmul.bf16.vlgmr.msra.gmra.mxu0 %v6067_v57  ;;  %3081 = vmatmul.bf16.vlgmr.msra.gmra.mxu1 %v6069_v24  ;;  %v3907_v23 = vor.u32 %v4865_v49, %v3904_v22  ;;  %v5027_v49 = vld [vmem:[#allocation13 + $0x6fc] sm:$0xf]  ;;  %v4552_v22 = vld [vmem:[#allocation13 + $0x710] sm:$0xf0] }
 0x68c   :  { %3115 = vmatpush.bf16.msrb.mxu0 %v4599_v17  ;;  %3129 = vmatpush.bf16.msrb.mxu1 %v4791_v18  ;;  %v5060_v17 = vld [vmem:[#allocation13 + $0x7fc] sm:$0xf0]  ;;  %v3739_v18 = vor.u32 %v4823_v6, %v3736_v7  ;;  %v4603_v6 = vor.u32 %v5039_v5, %v4600_v27  ;;  %v4555_v33 = vor.u32 %v5027_v49, %v4552_v22  ;;  %v4961_v5 = vld [vmem:[#allocation13 + $0x4ec] sm:$0xf]  ;;  %v4851_v22 = vld [vmem:[#allocation13 + $0x174] sm:$0xf0] }
 0x68d   :  { %3095 = vmatmul.bf16.vlgmr.msrb.gmra.mxu2 %v6071_v9  ;;  %3109 = vmatmul.bf16.vlgmr.msrb.gmra.mxu3 %v6073_v61  ;;  %v4671_v28 = vor.u32 %v5060_v17, %v4670_v10  ;;  %v4931_v10 = vld [vmem:[#allocation13 + $0x3fc] sm:$0xf]  ;;  %v4168_v17 = vld [vmem:[#allocation13 + $0x410] sm:$0xf0]  ;;  %v4699_v27 = vor.u32 %v5063_v47, %v4696_v48  ;;  %v3838_v49 = vld [vmem:[#allocation13 + $0x160] sm:$0xf] }
 0x68e   :  { %3143 = vmatpush.bf16.msra.mxu2 %v3835_v31  ;;  %3157 = vmatpush.bf16.msra.mxu3 %v4027_v20  ;;  %v4646_v31 = vld [vmem:[#allocation13 + $0x7b8] sm:$0xf]  ;;  %v5054_v20 = vld [vmem:[#allocation13 + $0x7cc] sm:$0xf0]  ;;  %v4171_v29 = vor.u32 %v4931_v10, %v4168_v17  ;;  %v4941_v48 = vld [vmem:[#allocation13 + $0x444] sm:$0xf0] }
 0x68f   :  { %v4647_v36 = vor.u32 %v5054_v20, %v4646_v31  ;;  %v4925_v31 = vld [vmem:[#allocation13 + $0x3cc] sm:$0xf]  ;;  %v4144_v20 = vld [vmem:[#allocation13 + $0x3e0] sm:$0xf0]  ;;  %v4198_v47 = vld [vmem:[#allocation13 + $0x430] sm:$0xf] }
 0x690   :  { %3116 = vmatpush.bf16.msrb.mxu0 %v4575_v35  ;;  %3130 = vmatpush.bf16.msrb.mxu1 %v4767_v52  ;;  %v4859_v35 = vld [vmem:[#allocation13 + $0x1bc] sm:$0xf]  ;;  %v3880_v52 = vld [vmem:[#allocation13 + $0x1d0] sm:$0xf0] }
 0x691   :  { %v3883_v44 = vor.u32 %v4859_v35, %v3880_v52  ;;  %v5021_v35 = vld [vmem:[#allocation13 + $0x6cc] sm:$0xf]  ;;  %v4528_v52 = vld [vmem:[#allocation13 + $0x6e0] sm:$0xf0] }
 0x692   :  { %3144 = vmatpush.bf16.msra.mxu2 %v3811_v39  ;;  %3158 = vmatpush.bf16.msra.mxu3 %v4003_v40  ;;  %v4622_v39 = vld [vmem:[#allocation13 + $0x788] sm:$0xf]  ;;  %v5048_v40 = vld [vmem:[#allocation13 + $0x79c] sm:$0xf0] }
 0x694   :  { %3117 = vmatpush.bf16.msrb.mxu0 %v4551_v45  ;;  %3131 = vmatpush.bf16.msrb.mxu1 %v4743_v46  ;;  %v4991_v45 = vld [vmem:[#allocation13 + $0x5dc] sm:$0xf]  ;;  %v4408_v46 = vld [vmem:[#allocation13 + $0x5f0] sm:$0xf0] }
 0x695   :  { %v4411_v62 = vor.u32 %v4991_v45, %v4408_v46  ;;  %v5015_v45 = vld [vmem:[#allocation13 + $0x69c] sm:$0xf]  ;;  %v4504_v46 = vld [vmem:[#allocation13 + $0x6b0] sm:$0xf0] }
 0x696   :  { %3145 = vmatpush.bf16.msra.mxu2 %v3787_v55  ;;  %3159 = vmatpush.bf16.msra.mxu3 %v3979_v56  ;;  %v4431_v55 = vor.u32 %v5000_v38, %v4430_v37  ;;  %v4623_v56 = vor.u32 %v5048_v40, %v4622_v39  ;;  %v4147_v37 = vor.u32 %v4925_v31, %v4144_v20  ;;  %v4919_v39 = vld [vmem:[#allocation13 + $0x39c] sm:$0xf]  ;;  %v4120_v40 = vld [vmem:[#allocation13 + $0x3b0] sm:$0xf0]  ;;  %v4997_v31 = vld [vmem:[#allocation13 + $0x60c] sm:$0xf] }
 0x697   :  { %v4123_v51 = vor.u32 %v4919_v39, %v4120_v40  ;;  %v4432_v20 = vld [vmem:[#allocation13 + $0x620] sm:$0xf0] }
 0x698   :  { %3118 = vmatpush.bf16.msrb.mxu0 %v4527_v25  ;;  %3132 = vmatpush.bf16.msrb.mxu1 %v4719_v63  ;;  %v5087_v25 = vld [vmem:[#allocation13 + $0x8dc] sm:$0xf]  ;;  %v4792_v63 = vld [vmem:[#allocation13 + $0x8f0] sm:$0xf0]  ;;  %v4435_v39 = vor.u32 %v4997_v31, %v4432_v20  ;;  %v3934_v31 = vld [vmem:[#allocation13 + $0x220] sm:$0xf] }
 0x699   :  { %v4795_v7 = vor.u32 %v5087_v25, %v4792_v63  ;;  %v5009_v25 = vld [vmem:[#allocation13 + $0x66c] sm:$0xf]  ;;  %v4480_v63 = vld [vmem:[#allocation13 + $0x680] sm:$0xf0]  ;;  %v4875_v20 = vld [vmem:[#allocation13 + $0x234] sm:$0xf0] }
 0x69a   :  { %3146 = vmatpush.bf16.msra.mxu2 %v3763_v3  ;;  %3160 = vmatpush.bf16.msra.mxu3 %v3955_v4  ;;  %v4985_v3 = vld [vmem:[#allocation13 + $0x5ac] sm:$0xf]  ;;  %v4384_v4 = vld [vmem:[#allocation13 + $0x5c0] sm:$0xf0]  ;;  %v4483_v8 = vor.u32 %v5009_v25, %v4480_v63  ;;  %v4887_v25 = vld [vmem:[#allocation13 + $0x294] sm:$0xf0]  ;;  %v4199_v63 = vor.u32 %v4941_v48, %v4198_v47 }
 0x69b   :  { %v4387_v16 = vor.u32 %v4985_v3, %v4384_v4  ;;  %v4907_v3 = vld [vmem:[#allocation13 + $0x33c] sm:$0xf]  ;;  %v4072_v4 = vld [vmem:[#allocation13 + $0x350] sm:$0xf0]  ;;  %v4102_v48 = vld [vmem:[#allocation13 + $0x370] sm:$0xf] }
 0x69c   :  { %3119 = vmatpush.bf16.msrb.mxu0 %v4503_v12  ;;  %3133 = vmatpush.bf16.msrb.mxu1 %v4695_v14  ;;  %v5081_v12 = vld [vmem:[#allocation13 + $0x8ac] sm:$0xf]  ;;  %v4768_v14 = vld [vmem:[#allocation13 + $0x8c0] sm:$0xf0]  ;;  %v4075_v10 = vor.u32 %v4907_v3, %v4072_v4  ;;  %v4366_v3 = vld [vmem:[#allocation13 + $0x580] sm:$0xf] }
 0x69d   :  { %v4771_v13 = vor.u32 %v5081_v12, %v4768_v14  ;;  %v5003_v12 = vld [vmem:[#allocation13 + $0x63c] sm:$0xf]  ;;  %v4456_v14 = vld [vmem:[#allocation13 + $0x650] sm:$0xf0]  ;;  %v4983_v4 = vld [vmem:[#allocation13 + $0x594] sm:$0xf0] }
 0x69e   :  { %3147 = vmatpush.bf16.msra.mxu2 %v3739_v18  ;;  %3161 = vmatpush.bf16.msra.mxu3 %v3931_v19  ;;  %v4979_v18 = vld [vmem:[#allocation13 + $0x57c] sm:$0xf]  ;;  %v4360_v19 = vld [vmem:[#allocation13 + $0x590] sm:$0xf0] }
 0x69f   :  { %v4363_v30 = vor.u32 %v4979_v18, %v4360_v19  ;;  %v4901_v18 = vld [vmem:[#allocation13 + $0x30c] sm:$0xf]  ;;  %v4048_v19 = vld [vmem:[#allocation13 + $0x320] sm:$0xf0] }
 0x6a0   :  { %3120 = vmatpush.bf16.msrb.mxu0 %v4479_v26  ;;  %3134 = vmatpush.bf16.msrb.mxu1 %v4671_v28  ;;  %v5075_v26 = vld [vmem:[#allocation13 + $0x87c] sm:$0xf]  ;;  %v4744_v28 = vld [vmem:[#allocation13 + $0x890] sm:$0xf0] }
 0x6a1   :  { %v4747_v34 = vor.u32 %v5075_v26, %v4744_v28  ;;  %v4459_v26 = vor.u32 %v5003_v12, %v4456_v14  ;;  %v4833_v14 = vld [vmem:[#allocation13 + $0xe4] sm:$0xf0] }
 0x6a2   :  { %3148 = vmatpush.bf16.msra.mxu2 %v3715_v32  ;;  %3162 = vmatpush.bf16.msra.mxu3 %v3907_v23  ;;  %v4973_v32 = vld [vmem:[#allocation13 + $0x54c] sm:$0xf]  ;;  %v4336_v23 = vld [vmem:[#allocation13 + $0x560] sm:$0xf0] }
 0x6a3   :  { %v4339_v38 = vor.u32 %v4973_v32, %v4336_v23  ;;  %v5045_v32 = vld [vmem:[#allocation13 + $0x78c] sm:$0xf]  ;;  %v4624_v23 = vld [vmem:[#allocation13 + $0x7a0] sm:$0xf0] }
 0x6a4   :  { %3121 = vmatpush.bf16.msrb.mxu0 %v4455_v53  ;;  %3135 = vmatpush.bf16.msrb.mxu1 %v4647_v36  ;;  %v5069_v53 = vld [vmem:[#allocation13 + $0x84c] sm:$0xf]  ;;  %v4720_v36 = vld [vmem:[#allocation13 + $0x860] sm:$0xf0]  ;;  %v4627_v40 = vor.u32 %v5045_v32, %v4624_v23 }
 0x6a6   :  { %3149 = vmatpush.bf16.msra.mxu2 %v3691_v43  ;;  %3163 = vmatpush.bf16.msra.mxu3 %v3883_v44  ;;  %v4531_v43 = vor.u32 %v5021_v35, %v4528_v52  ;;  %v4723_v44 = vor.u32 %v5069_v53, %v4720_v36  ;;  %v4222_v35 = vld [vmem:[#allocation13 + $0x460] sm:$0xf]  ;;  %v3839_v52 = vor.u32 %v4851_v22, %v3838_v49  ;;  %v4947_v36 = vld [vmem:[#allocation13 + $0x474] sm:$0xf0]  ;;  %v4977_v49 = vld [vmem:[#allocation13 + $0x564] sm:$0xf0] }
 0x6a8   :  { %3122 = vmatpush.bf16.msrb.mxu0 %v4431_v55  ;;  %3136 = vmatpush.bf16.msrb.mxu1 %v4623_v56  ;;  %v4913_v55 = vld [vmem:[#allocation13 + $0x36c] sm:$0xf]  ;;  %v4096_v56 = vld [vmem:[#allocation13 + $0x380] sm:$0xf0] }
 0x6a9   :  { %v4099_v1 = vor.u32 %v4913_v55, %v4096_v56  ;;  %v6101_v55 = vld [vmem:[#allocation14] sm:$0x3f]  ;;  %v3815_v56 = vor.u32 %v4845_v42, %v3814_v41  ;;  %v3910_v41 = vld [vmem:[#allocation13 + $0x1f0] sm:$0xf]  ;;  %v4869_v42 = vld [vmem:[#allocation13 + $0x204] sm:$0xf0] }
 0x6aa   :  { %3150 = vmatpush.bf16.msra.mxu2 %v3667_v50  ;;  %3164 = vmatpush.bf16.msra.mxu3 %v3859_v0  ;;  %v5057_v50 = vld [vmem:[#allocation13 + $0x7ec] sm:$0xf]  ;;  %v4672_v0 = vld [vmem:[#allocation13 + $0x800] sm:$0xf0] }
 0x6ab   :  { %3123 = vmatmul.bf16.vlgmr.msrb.gmra.mxu0 %v6081_v58  ;;  %3137 = vmatmul.bf16.vlgmr.msrb.gmra.mxu1 %v6083_v59  ;;  %v4675_v11 = vor.u32 %v5057_v50, %v4672_v0  ;;  %v1439_v0 = vperm.slane %v6101_v55, 0 }
 0x6ac   :  { %3171 = vmatpush.bf16.msra.mxu0 %v4219_v60  ;;  %3185 = vmatpush.bf16.msra.mxu1 %v4411_v62  ;;  %v4288_v60 = vld [vmem:[#allocation13 + $0x500] sm:$0xf0]  ;;  %v4507_v62 = vor.u32 %v5015_v45, %v4504_v46  ;;  %v4223_v45 = vor.u32 %v4947_v36, %v4222_v35  ;;  %v4318_v35 = vld [vmem:[#allocation13 + $0x520] sm:$0xf]  ;;  %v3935_v36 = vor.u32 %v4875_v20, %v3934_v31  ;;  %v4054_v31 = vld [vmem:[#allocation13 + $0x310] sm:$0xf] }
 0x6ad   :  { %3151 = vmatmul.bf16.vlgmr.msra.gmra.mxu2 %v6067_v57  ;;  %3165 = vmatmul.bf16.vlgmr.msra.gmra.mxu3 %v6069_v24  ;;  %v4291_v2 = vor.u32 %v4961_v5, %v4288_v60  ;;  %v3790_v60 = vld [vmem:[#allocation13 + $0x100] sm:$0xf] }
 0x6ae   :  { %3199 = vmatpush.bf16.msrb.mxu2 %v4603_v6  ;;  %3213 = vmatpush.bf16.msrb.mxu3 %v4795_v7  ;;  %v4955_v6 = vld [vmem:[#allocation13 + $0x4bc] sm:$0xf]  ;;  %v4264_v7 = vld [vmem:[#allocation13 + $0x4d0] sm:$0xf0] }
 0x6af   :  { %v4267_v17 = vor.u32 %v4955_v6, %v4264_v7 }
 0x6b0   :  { %3172 = vmatpush.bf16.msra.mxu0 %v4195_v15  ;;  %3186 = vmatpush.bf16.msra.mxu1 %v4387_v16  ;;  %v5051_v15 = vld [vmem:[#allocation13 + $0x7bc] sm:$0xf]  ;;  %v4648_v16 = vld [vmem:[#allocation13 + $0x7d0] sm:$0xf0] }
 0x6b1   :  { %v4651_v28 = vor.u32 %v5051_v15, %v4648_v16  ;;  %v3958_v15 = vld [vmem:[#allocation13 + $0x250] sm:$0xf]  ;;  %v4881_v16 = vld [vmem:[#allocation13 + $0x264] sm:$0xf0] }
 0x6b2   :  { %3200 = vmatpush.bf16.msrb.mxu2 %v4579_v21  ;;  %3214 = vmatpush.bf16.msrb.mxu3 %v4771_v13  ;;  %v4949_v21 = vld [vmem:[#allocation13 + $0x48c] sm:$0xf]  ;;  %v4240_v13 = vld [vmem:[#allocation13 + $0x4a0] sm:$0xf0] }
 0x6b4   :  { %3173 = vmatpush.bf16.msra.mxu0 %v4171_v29  ;;  %3187 = vmatpush.bf16.msra.mxu1 %v4363_v30  ;;  %v4030_v29 = vld [vmem:[#allocation13 + $0x2e0] sm:$0xf]  ;;  %v4899_v30 = vld [vmem:[#allocation13 + $0x2f4] sm:$0xf0] }
 0x6b5   :  { %v4031_v53 = vor.u32 %v4899_v30, %v4030_v29  ;;  %v3742_v29 = vld [vmem:[#allocation13 + $0xa0] sm:$0xf]  ;;  %v4827_v30 = vld [vmem:[#allocation13 + $0xb4] sm:$0xf0] }
 0x6b6   :  { %3201 = vmatpush.bf16.msrb.mxu2 %v4555_v33  ;;  %3215 = vmatpush.bf16.msrb.mxu3 %v4747_v34  ;;  %v4051_v33 = vor.u32 %v4901_v18, %v4048_v19  ;;  %v4243_v34 = vor.u32 %v4949_v21, %v4240_v13  ;;  %v4367_v18 = vor.u32 %v4983_v4, %v4366_v3  ;;  %v4150_v19 = vld [vmem:[#allocation13 + $0x3d0] sm:$0xf]  ;;  %v4929_v21 = vld [vmem:[#allocation13 + $0x3e4] sm:$0xf0]  ;;  %v4078_v4 = vld [vmem:[#allocation13 + $0x340] sm:$0xf] }
 0x6b7   :  { %v4342_v13 = vld [vmem:[#allocation13 + $0x550] sm:$0xf]  ;;  %v4151_v32 = vor.u32 %v4929_v21, %v4150_v19  ;;  %v4606_v19 = vld [vmem:[#allocation13 + $0x760] sm:$0xf]  ;;  %v5043_v21 = vld [vmem:[#allocation13 + $0x774] sm:$0xf0] }
 0x6b8   :  { %3174 = vmatpush.bf16.msra.mxu0 %v4147_v37  ;;  %3188 = vmatpush.bf16.msra.mxu1 %v4339_v38  ;;  %v4414_v37 = vld [vmem:[#allocation13 + $0x5e0] sm:$0xf]  ;;  %v4995_v38 = vld [vmem:[#allocation13 + $0x5f4] sm:$0xf0]  ;;  %v4343_v23 = vor.u32 %v4977_v49, %v4342_v13 }
 0x6b9   :  { %v4415_v46 = vor.u32 %v4995_v38, %v4414_v37  ;;  %v3718_v37 = vld [vmem:[#allocation13 + $0x70] sm:$0xf] }
 0x6ba   :  { %3202 = vmatpush.bf16.msrb.mxu2 %v4531_v43  ;;  %3216 = vmatpush.bf16.msrb.mxu3 %v4723_v44  ;;  %v4006_v43 = vld [vmem:[#allocation13 + $0x2b0] sm:$0xf]  ;;  %v4893_v44 = vld [vmem:[#allocation13 + $0x2c4] sm:$0xf0] }
 0x6bb   :  { %v4007_v5 = vor.u32 %v4893_v44, %v4006_v43 }
 0x6bc   :  { %3175 = vmatpush.bf16.msra.mxu0 %v4123_v51  ;;  %3189 = vmatpush.bf16.msra.mxu1 %v4315_v54  ;;  %v4390_v51 = vld [vmem:[#allocation13 + $0x5b0] sm:$0xf]  ;;  %v4989_v54 = vld [vmem:[#allocation13 + $0x5c4] sm:$0xf0] }
 0x6bd   :  { %v4391_v50 = vor.u32 %v4989_v54, %v4390_v51  ;;  %v4917_v54 = vld [vmem:[#allocation13 + $0x384] sm:$0xf0] }
 0x6be   :  { %3203 = vmatpush.bf16.msrb.mxu2 %v4507_v62  ;;  %3217 = vmatpush.bf16.msrb.mxu3 %v4699_v27  ;;  %v4839_v62 = vld [vmem:[#allocation13 + $0x114] sm:$0xf0]  ;;  %v3982_v27 = vld [vmem:[#allocation13 + $0x280] sm:$0xf] }
 0x6bf   :  { %v3791_v6 = vor.u32 %v4839_v62, %v3790_v60  ;;  %v3983_v7 = vor.u32 %v4887_v25, %v3982_v27  ;;  %v3911_v27 = vor.u32 %v4869_v42, %v3910_v41  ;;  %v3694_v25 = vld [vmem:[#allocation13 + $0x40] sm:$0xf]  ;;  %v4032_v41 = vld [vmem:[#allocation13 + $0x2f8] sm:$0xf0] }
 0x6c0   :  { %3176 = vmatpush.bf16.msra.mxu0 %v4099_v1  ;;  %3190 = vmatpush.bf16.msra.mxu1 %v4291_v2  ;;  %v4174_v1 = vld [vmem:[#allocation13 + $0x400] sm:$0xf]  ;;  %v4935_v2 = vld [vmem:[#allocation13 + $0x414] sm:$0xf0] }
 0x6c2   :  { %3204 = vmatpush.bf16.msrb.mxu2 %v4483_v8  ;;  %3218 = vmatpush.bf16.msrb.mxu3 %v4675_v11  ;;  %v3766_v8 = vld [vmem:[#allocation13 + $0xd0] sm:$0xf] }
 0x6c4   :  { %3177 = vmatpush.bf16.msra.mxu0 %v4075_v10  ;;  %3191 = vmatpush.bf16.msra.mxu1 %v4267_v17  ;;  %v4175_v17 = vor.u32 %v4935_v2, %v4174_v1  ;;  %v3886_v1 = vld [vmem:[#allocation13 + $0x1c0] sm:$0xf]  ;;  %v4863_v2 = vld [vmem:[#allocation13 + $0x1d4] sm:$0xf0] }
 0x6c6   :  { %3205 = vmatpush.bf16.msrb.mxu2 %v4459_v26  ;;  %3219 = vmatpush.bf16.msrb.mxu3 %v4651_v28  ;;  %v3767_v26 = vor.u32 %v4833_v14, %v3766_v8  ;;  %v3959_v28 = vor.u32 %v4881_v16, %v3958_v15  ;;  %v4959_v8 = vld [vmem:[#allocation13 + $0x4d4] sm:$0xf0]  ;;  %v3670_v14 = vld [vmem:[#allocation13 + $0x10] sm:$0xf]  ;;  %v4809_v15 = vld [vmem:[#allocation13 + $0x24] sm:$0xf0] }
 0x6c7   :  { %v3862_v16 = vld [vmem:[#allocation13 + $0x190] sm:$0xf] }
 0x6c8   :  { %3178 = vmatpush.bf16.msra.mxu0 %v4051_v33  ;;  %3192 = vmatpush.bf16.msra.mxu1 %v4243_v34  ;;  %v2900_v11 = vpop.f32.mrf.mxu0  ;;  %v2914_v12 = vpop.f32.mrf.mxu1  ;;  %v4126_v33 = vld [vmem:[#allocation13 + $0x3a0] sm:$0xf]  ;;  %v4923_v34 = vld [vmem:[#allocation13 + $0x3b4] sm:$0xf0] }
 0x6c9   :  { %v2901_v10 = vadd.f32 %v2900_v11, %v1439_v0 }
 0x6ca   :  { %3206 = vmatpush.bf16.msrb.mxu2 %v4435_v39  ;;  %3220 = vmatpush.bf16.msrb.mxu3 %v4627_v40  ;;  %v4821_v40 = vld [vmem:[#allocation13 + $0x84] sm:$0xf0] }
 0x6cb   :  { %3179 = vmatmul.bf16.vlgmr.msra.gmra.mxu0 %v6071_v9  ;;  %3193 = vmatmul.bf16.vlgmr.msra.gmra.mxu1 %v6073_v61  ;;  %v2915_v22 = vadd.f32 %v2914_v12, %v2901_v10  ;;  %v3719_v62 = vor.u32 %v4821_v40, %v3718_v37  ;;  %v3887_v12 = vor.u32 %v4863_v2, %v3886_v1  ;;  %v4896_v40 = vld [vmem:[#allocation13 + $0x2e4] sm:$0xf] }
 0x6cc   :  { %3227 = vmatpush.bf16.msrb.mxu0 %v3839_v52  ;;  %3241 = vmatpush.bf16.msrb.mxu1 %v4031_v53  ;;  %v4971_v52 = vld [vmem:[#allocation13 + $0x534] sm:$0xf0]  ;;  %v3743_v53 = vor.u32 %v4827_v30, %v3742_v29  ;;  %v4798_v29 = vld [vmem:[#allocation13 + $0x8e0] sm:$0xf]  ;;  %v4607_v37 = vor.u32 %v5043_v21, %v4606_v19 }
 0x6cd   :  { %3207 = vmatmul.bf16.vlgmr.msrb.gmra.mxu2 %v6081_v58  ;;  %3221 = vmatmul.bf16.vlgmr.msrb.gmra.mxu3 %v6083_v59  ;;  %v4319_v47 = vor.u32 %v4971_v52, %v4318_v35  ;;  %v5091_v30 = vld [vmem:[#allocation13 + $0x8f4] sm:$0xf0]  ;;  %v3671_v35 = vor.u32 %v4809_v15, %v3670_v14  ;;  %v4836_v15 = vld [vmem:[#allocation13 + $0x104] sm:$0xf] }
 0x6ce   :  { %3255 = vmatpush.bf16.msra.mxu2 %v4223_v45  ;;  %3269 = vmatpush.bf16.msra.mxu3 %v4415_v46  ;;  %v4127_v46 = vor.u32 %v4923_v34, %v4126_v33  ;;  %v4953_v33 = vld [vmem:[#allocation13 + $0x4a4] sm:$0xf0] }
 0x6d0   :  { %3228 = vmatpush.bf16.msrb.mxu0 %v3815_v56  ;;  %3242 = vmatpush.bf16.msrb.mxu1 %v4007_v5  ;;  %v2902_v38 = vpop.f32.mrf.mxu0  ;;  %v2916_v39 = vpop.f32.mrf.mxu1  ;;  %v4294_v56 = vld [vmem:[#allocation13 + $0x4f0] sm:$0xf]  ;;  %v4965_v5 = vld [vmem:[#allocation13 + $0x504] sm:$0xf0] }
 0x6d1   :  { %v2903_v43 = vadd.f32 %v2902_v38, %v1439_v0  ;;  %v2928_v44 = vpop.f32.mrf.mxu2  ;;  %v2942_v45 = vpop.f32.mrf.mxu3  ;;  %v4103_v0 = vor.u32 %v4917_v54, %v4102_v48  ;;  %v4295_v3 = vor.u32 %v4965_v5, %v4294_v56  ;;  %v4799_v38 = vor.u32 %v5091_v30, %v4798_v29  ;;  %v5085_v48 = vld [vmem:[#allocation13 + $0x8c4] sm:$0xf0]  ;;  %v4842_v56 = vld [vmem:[#allocation13 + $0x134] sm:$0xf] }
 0x6d2   :  { %3256 = vmatpush.bf16.msra.mxu2 %v4199_v63  ;;  %3270 = vmatpush.bf16.msra.mxu3 %v4391_v50  ;;  %v2929_v51 = vadd.f32 %v2928_v44, %v2915_v22  ;;  %v4815_v50 = vld [vmem:[#allocation13 + $0x54] sm:$0xf0]  ;;  %v4582_v44 = vld [vmem:[#allocation13 + $0x730] sm:$0xf]  ;;  %v4035_v54 = vor.u32 %v4896_v40, %v4032_v41  ;;  %v4830_v30 = vld [vmem:[#allocation13 + $0xd4] sm:$0xf] }
 0x6d3   :  { %v2917_v60 = vadd.f32 %v2916_v39, %v2903_v43  ;;  %v3695_v11 = vor.u32 %v4815_v50, %v3694_v25  ;;  %v3840_v39 = vld [vmem:[#allocation13 + $0x178] sm:$0xf0]  ;;  %v4008_v25 = vld [vmem:[#allocation13 + $0x2c8] sm:$0xf0]  ;;  %v4702_v40 = vld [vmem:[#allocation13 + $0x820] sm:$0xf] }
 0x6d4   :  { %3229 = vmatpush.bf16.msrb.mxu0 %v3791_v6  ;;  %3243 = vmatpush.bf16.msrb.mxu1 %v3983_v7  ;;  %v2943_v63 = vadd.f32 %v2942_v45, %v2929_v51  ;;  %v4911_v6 = vld [vmem:[#allocation13 + $0x354] sm:$0xf0]  ;;  %v4270_v7 = vld [vmem:[#allocation13 + $0x4c0] sm:$0xf]  ;;  %v5037_v45 = vld [vmem:[#allocation13 + $0x744] sm:$0xf0] }
 0x6d5   :  { %v4583_v2 = vor.u32 %v5037_v45, %v4582_v44  ;;  %v5067_v41 = vld [vmem:[#allocation13 + $0x834] sm:$0xf0]  ;;  %v4824_v45 = vld [vmem:[#allocation13 + $0xa4] sm:$0xf] }
 0x6d6   :  { %3257 = vmatpush.bf16.msra.mxu2 %v4175_v17  ;;  %3271 = vmatpush.bf16.msra.mxu3 %v4367_v18  ;;  %v4857_v18 = vld [vmem:[#allocation13 + $0x1a4] sm:$0xf0] }
 0x6d7   :  { %v3863_v52 = vor.u32 %v4857_v18, %v3862_v16  ;;  %v3984_v18 = vld [vmem:[#allocation13 + $0x298] sm:$0xf0] }
 0x6d8   :  { %3230 = vmatpush.bf16.msrb.mxu0 %v3767_v26  ;;  %3244 = vmatpush.bf16.msrb.mxu1 %v3959_v28  ;;  %v2956_v10 = vpop.f32.mrf.mxu0  ;;  %v2970_v17 = vpop.f32.mrf.mxu1  ;;  %v4079_v26 = vor.u32 %v4911_v6, %v4078_v4  ;;  %v4271_v28 = vor.u32 %v4959_v8, %v4270_v7  ;;  %v5031_v6 = vld [vmem:[#allocation13 + $0x714] sm:$0xf0]  ;;  %v4750_v7 = vld [vmem:[#allocation13 + $0x880] sm:$0xf] }
 0x6d9   :  { %v2930_v13 = vpop.f32.mrf.mxu2  ;;  %v2944_v49 = vpop.f32.mrf.mxu3  ;;  %v2957_v22 = vadd.f32 %v2956_v10, %v2943_v63  ;;  %v5079_v8 = vld [vmem:[#allocation13 + $0x894] sm:$0xf0]  ;;  %v3792_v10 = vld [vmem:[#allocation13 + $0x118] sm:$0xf0] }
 0x6da   :  { %3258 = vmatpush.bf16.msra.mxu2 %v4151_v32  ;;  %3272 = vmatpush.bf16.msra.mxu3 %v4343_v23  ;;  %v2931_v20 = vadd.f32 %v2930_v13, %v2917_v60  ;;  %v4905_v32 = vld [vmem:[#allocation13 + $0x324] sm:$0xf0]  ;;  %v4246_v23 = vld [vmem:[#allocation13 + $0x490] sm:$0xf]  ;;  %v4751_v21 = vor.u32 %v5079_v8, %v4750_v7 }
 0x6db   :  { %v6108_v34 = vadd.f32 %v2970_v17, %v2957_v22  ;;  %v4055_v42 = vor.u32 %v4905_v32, %v4054_v31  ;;  %v4247_v43 = vor.u32 %v4953_v33, %v4246_v23  ;;  %v4884_v17 = vld [vmem:[#allocation13 + $0x284] sm:$0xf]  ;;  %v4534_v13 = vld [vmem:[#allocation13 + $0x6d0] sm:$0xf]  ;;  %v3768_v31 = vld [vmem:[#allocation13 + $0xe8] sm:$0xf0] }
 0x6dc   :  { %3231 = vmatpush.bf16.msrb.mxu0 %v3743_v53  ;;  %3245 = vmatpush.bf16.msrb.mxu1 %v3935_v36  ;;  %v4848_v53 = vld [vmem:[#allocation13 + $0x164] sm:$0xf]  ;;  %v2945_v36 = vadd.f32 %v2944_v49, %v2931_v20  ;;  %v5025_v49 = vld [vmem:[#allocation13 + $0x6e4] sm:$0xf0]  ;;  %v4726_v22 = vld [vmem:[#allocation13 + $0x850] sm:$0xf]  ;;  %v3987_v29 = vor.u32 %v4884_v17, %v3984_v18 }
 0x6dd   :  { %v3843_v51 = vor.u32 %v4848_v53, %v3840_v39  ;;  %v4878_v20 = vld [vmem:[#allocation13 + $0x254] sm:$0xf]  ;;  %v3960_v32 = vld [vmem:[#allocation13 + $0x268] sm:$0xf0]  ;;  %v4510_v53 = vld [vmem:[#allocation13 + $0x6a0] sm:$0xf] }
 0x6de   :  { %3259 = vmatpush.bf16.msra.mxu2 %v4127_v46  ;;  %3273 = vmatpush.bf16.msra.mxu3 %v4319_v47  ;;  %v1440_v46 = vperm.slane %v6101_v55, 1  ;;  %v4774_v47 = vld [vmem:[#allocation13 + $0x8b0] sm:$0xf]  ;;  %v5019_v39 = vld [vmem:[#allocation13 + $0x6b4] sm:$0xf0]  ;;  %v3963_v44 = vor.u32 %v4878_v20, %v3960_v32 }
 0x6df   :  { %v5055_v17 = vld [vmem:[#allocation13 + $0x7d4] sm:$0xf0]  ;;  %v4438_v32 = vld [vmem:[#allocation13 + $0x610] sm:$0xf] }
 0x6e0   :  { %3232 = vmatpush.bf16.msrb.mxu0 %v3719_v62  ;;  %3246 = vmatpush.bf16.msrb.mxu1 %v3911_v27  ;;  %v2958_v5 = vpop.f32.mrf.mxu0  ;;  %v2972_v60 = vpop.f32.mrf.mxu1  ;;  %v3816_v62 = vld [vmem:[#allocation13 + $0x148] sm:$0xf0]  ;;  %v4890_v27 = vld [vmem:[#allocation13 + $0x2b4] sm:$0xf] }
 0x6e1   :  { %v2959_v63 = vadd.f32 %v2958_v5, %v2945_v36  ;;  %v2984_v50 = vpop.f32.mrf.mxu2  ;;  %v2998_v1 = vpop.f32.mrf.mxu3  ;;  %v4011_v14 = vor.u32 %v4890_v27, %v4008_v25  ;;  %v4511_v5 = vor.u32 %v5019_v39, %v4510_v53  ;;  %v4678_v27 = vld [vmem:[#allocation13 + $0x7f0] sm:$0xf]  ;;  %v5061_v25 = vld [vmem:[#allocation13 + $0x804] sm:$0xf0]  ;;  %v4224_v53 = vld [vmem:[#allocation13 + $0x478] sm:$0xf0] }
 0x6e2   :  { %3260 = vmatpush.bf16.msra.mxu2 %v4103_v0  ;;  %3274 = vmatpush.bf16.msra.mxu3 %v4295_v3  ;;  %v4775_v0 = vor.u32 %v5085_v48, %v4774_v47  ;;  %v4558_v3 = vld [vmem:[#allocation13 + $0x700] sm:$0xf]  ;;  %v2985_v4 = vadd.f32 %v2984_v50, %v1440_v46  ;;  %v3744_v48 = vld [vmem:[#allocation13 + $0xb8] sm:$0xf0]  ;;  %v4679_v8 = vor.u32 %v5061_v25, %v4678_v27 }
 0x6e3   :  { %v4559_v19 = vor.u32 %v5031_v6, %v4558_v3  ;;  %v3912_v3 = vld [vmem:[#allocation13 + $0x208] sm:$0xf0]  ;;  %v4416_v39 = vld [vmem:[#allocation13 + $0x5f8] sm:$0xf0] }
 0x6e4   :  { %3233 = vmatpush.bf16.msrb.mxu0 %v3695_v11  ;;  %3247 = vmatpush.bf16.msrb.mxu1 %v3887_v12  ;;  %v6115_v11 = vadd.f32 %v2972_v60, %v2959_v63  ;;  %v3819_v12 = vor.u32 %v4842_v56, %v3816_v62  ;;  %v2999_v16 = vadd.f32 %v2998_v1, %v2985_v4  ;;  %v4486_v60 = vld [vmem:[#allocation13 + $0x670] sm:$0xf]  ;;  %v5013_v62 = vld [vmem:[#allocation13 + $0x684] sm:$0xf0]  ;;  %v4818_v1 = vld [vmem:[#allocation13 + $0x74] sm:$0xf] }
 0x6e5   :  { %v3747_v63 = vor.u32 %v4824_v45, %v3744_v48  ;;  %v4487_v7 = vor.u32 %v5013_v62, %v4486_v60  ;;  %v5040_v48 = vld [vmem:[#allocation13 + $0x764] sm:$0xf]  ;;  %v4800_v60 = vld [vmem:[#allocation13 + $0x8f8] sm:$0xf0] }
 0x6e6   :  { %3261 = vmatpush.bf16.msra.mxu2 %v4079_v26  ;;  %3275 = vmatpush.bf16.msra.mxu3 %v4271_v28  ;;  %v5073_v26 = vld [vmem:[#allocation13 + $0x864] sm:$0xf0]  ;;  %v3795_v28 = vor.u32 %v4836_v15, %v3792_v10  ;;  %v4654_v10 = vld [vmem:[#allocation13 + $0x7c0] sm:$0xf] }
 0x6e7   :  { %v4655_v20 = vor.u32 %v5055_v17, %v4654_v10  ;;  %v4176_v10 = vld [vmem:[#allocation13 + $0x418] sm:$0xf0]  ;;  %v4980_v17 = vld [vmem:[#allocation13 + $0x584] sm:$0xf] }
 0x6e8   :  { %3234 = vmatpush.bf16.msrb.mxu0 %v3671_v35  ;;  %3248 = vmatpush.bf16.msrb.mxu1 %v3863_v52  ;;  %v4535_v35 = vor.u32 %v5025_v49, %v4534_v13  ;;  %v4727_v52 = vor.u32 %v5073_v26, %v4726_v22  ;;  %v4812_v13 = vld [vmem:[#allocation13 + $0x44] sm:$0xf]  ;;  %v3696_v26 = vld [vmem:[#allocation13 + $0x58] sm:$0xf0] }
 0x6e9   :  { %v2986_v23 = vpop.f32.mrf.mxu2  ;;  %v3000_v33 = vpop.f32.mrf.mxu3 }
 0x6ea   :  { %3262 = vmatpush.bf16.msra.mxu2 %v4055_v42  ;;  %3276 = vmatpush.bf16.msra.mxu3 %v4247_v43  ;;  %v2987_v36 = vadd.f32 %v2986_v23, %v1440_v46  ;;  %v3771_v43 = vor.u32 %v4830_v30, %v3768_v31  ;;  %v4703_v46 = vor.u32 %v5067_v41, %v4702_v40  ;;  %v5001_v23 = vld [vmem:[#allocation13 + $0x624] sm:$0xf0]  ;;  %v4806_v40 = vld [vmem:[#allocation13 + $0x14] sm:$0xf]  ;;  %v3672_v41 = vld [vmem:[#allocation13 + $0x28] sm:$0xf0] }
 0x6eb   :  { %3235 = vmatmul.bf16.vlgmr.msrb.gmra.mxu0 %v6067_v57  ;;  %3249 = vmatmul.bf16.vlgmr.msrb.gmra.mxu1 %v6069_v24  ;;  %v4439_v45 = vor.u32 %v5001_v23, %v4438_v32  ;;  %v3675_v27 = vor.u32 %v4806_v40, %v3672_v41  ;;  %v4152_v32 = vld [vmem:[#allocation13 + $0x3e8] sm:$0xf0]  ;;  %v4974_v23 = vld [vmem:[#allocation13 + $0x554] sm:$0xf] }
 0x6ec   :  { %3283 = vmatpush.bf16.msra.mxu0 %v4607_v37  ;;  %3297 = vmatpush.bf16.msra.mxu1 %v4799_v38  ;;  %v3012_v37 = vpop.f32.mrf.mxu0  ;;  %v3026_v38 = vpop.f32.mrf.mxu1  ;;  %v3001_v47 = vadd.f32 %v3000_v33, %v2987_v36  ;;  %v4630_v33 = vld [vmem:[#allocation13 + $0x790] sm:$0xf]  ;;  %v3699_v36 = vor.u32 %v4812_v13, %v3696_v26  ;;  %v5028_v13 = vld [vmem:[#allocation13 + $0x704] sm:$0xf] }
 0x6ed   :  { %3263 = vmatmul.bf16.vlgmr.msra.gmra.mxu2 %v6071_v9  ;;  %3277 = vmatmul.bf16.vlgmr.msra.gmra.mxu3 %v6073_v61  ;;  %v3013_v42 = vadd.f32 %v3012_v37, %v2999_v16  ;;  %v5007_v16 = vld [vmem:[#allocation13 + $0x654] sm:$0xf0]  ;;  %v5076_v26 = vld [vmem:[#allocation13 + $0x884] sm:$0xf] }
 0x6ee   :  { %3311 = vmatpush.bf16.msrb.mxu2 %v3843_v51  ;;  %3325 = vmatpush.bf16.msrb.mxu3 %v4035_v54  ;;  %v4872_v51 = vld [vmem:[#allocation13 + $0x224] sm:$0xf]  ;;  %v3936_v54 = vld [vmem:[#allocation13 + $0x238] sm:$0xf0] }
 0x6ef   :  { %v3027_v56 = vadd.f32 %v3026_v38, %v3013_v42  ;;  %v3939_v50 = vor.u32 %v4872_v51, %v3936_v54  ;;  %v4992_v38 = vld [vmem:[#allocation13 + $0x5e4] sm:$0xf]  ;;  %v4854_v42 = vld [vmem:[#allocation13 + $0x194] sm:$0xf] }
 0x6f0   :  { %3284 = vmatpush.bf16.msra.mxu0 %v4583_v2  ;;  %3298 = vmatpush.bf16.msra.mxu1 %v4775_v0  ;;  %v3720_v2 = vld [vmem:[#allocation13 + $0x88] sm:$0xf0]  ;;  %v4866_v0 = vld [vmem:[#allocation13 + $0x1f4] sm:$0xf] }
 0x6f1   :  { %v3040_v4 = vpop.f32.mrf.mxu2  ;;  %v3054_v6 = vpop.f32.mrf.mxu3 }
 0x6f2   :  { %3312 = vmatpush.bf16.msrb.mxu2 %v3819_v12  ;;  %3326 = vmatpush.bf16.msrb.mxu3 %v4011_v14  ;;  %v4462_v12 = vld [vmem:[#allocation13 + $0x640] sm:$0xf]  ;;  %v3041_v15 = vadd.f32 %v3040_v4, %v3027_v56  ;;  %v4419_v56 = vor.u32 %v4992_v38, %v4416_v39  ;;  %v5070_v38 = vld [vmem:[#allocation13 + $0x854] sm:$0xf]  ;;  %v4728_v39 = vld [vmem:[#allocation13 + $0x868] sm:$0xf0] }
 0x6f3   :  { %v4463_v31 = vor.u32 %v5007_v16, %v4462_v12  ;;  %v4776_v12 = vld [vmem:[#allocation13 + $0x8c8] sm:$0xf0]  ;;  %v4932_v16 = vld [vmem:[#allocation13 + $0x404] sm:$0xf] }
 0x6f4   :  { %3285 = vmatpush.bf16.msra.mxu0 %v4559_v19  ;;  %3299 = vmatpush.bf16.msra.mxu1 %v4751_v21  ;;  %v3014_v14 = vpop.f32.mrf.mxu0  ;;  %v3723_v19 = vor.u32 %v4818_v1, %v3720_v2  ;;  %v3915_v21 = vor.u32 %v4866_v0, %v3912_v3  ;;  %v3028_v49 = vpop.f32.mrf.mxu1  ;;  %v6121_v22 = vadd.f32 %v3054_v6, %v3041_v15  ;;  %v4200_v1 = vld [vmem:[#allocation13 + $0x448] sm:$0xf0]  ;;  %v4986_v2 = vld [vmem:[#allocation13 + $0x5b4] sm:$0xf] }
 0x6f5   :  { %v3015_v18 = vadd.f32 %v3014_v14, %v3001_v47  ;;  %v4392_v0 = vld [vmem:[#allocation13 + $0x5c8] sm:$0xf0]  ;;  %v5034_v6 = vld [vmem:[#allocation13 + $0x734] sm:$0xf] }
 0x6f6   :  { %3313 = vmatpush.bf16.msrb.mxu2 %v3795_v28  ;;  %3327 = vmatpush.bf16.msrb.mxu3 %v3987_v29  ;;  %v4860_v28 = vld [vmem:[#allocation13 + $0x1c4] sm:$0xf]  ;;  %v3888_v29 = vld [vmem:[#allocation13 + $0x1d8] sm:$0xf0]  ;;  %v4395_v15 = vor.u32 %v4986_v2, %v4392_v0 }
 0x6f7   :  { %v3029_v30 = vadd.f32 %v3028_v49, %v3015_v18  ;;  %v3891_v37 = vor.u32 %v4860_v28, %v3888_v29  ;;  %v4368_v18 = vld [vmem:[#allocation13 + $0x598] sm:$0xf0]  ;;  %v1441_v29 = vperm.slane %v6101_v55, 2 }
 0x6f8   :  { %3286 = vmatpush.bf16.msra.mxu0 %v4535_v35  ;;  %3300 = vmatpush.bf16.msra.mxu1 %v4727_v52  ;;  %v5049_v35 = vld [vmem:[#allocation13 + $0x7a4] sm:$0xf0]  ;;  %v4944_v52 = vld [vmem:[#allocation13 + $0x464] sm:$0xf]  ;;  %v4560_v49 = vld [vmem:[#allocation13 + $0x718] sm:$0xf0] }
 0x6f9   :  { %v4631_v47 = vor.u32 %v5049_v35, %v4630_v33  ;;  %v4227_v54 = vor.u32 %v4944_v52, %v4224_v53  ;;  %v3056_v62 = vpop.f32.mrf.mxu3  ;;  %v4752_v28 = vld [vmem:[#allocation13 + $0x898] sm:$0xf0]  ;;  %v4344_v33 = vld [vmem:[#allocation13 + $0x568] sm:$0xf0]  ;;  %v4563_v35 = vor.u32 %v5028_v13, %v4560_v49  ;;  %v4956_v49 = vld [vmem:[#allocation13 + $0x4c4] sm:$0xf] }
 0x6fa   :  { %3314 = vmatpush.bf16.msrb.mxu2 %v3771_v43  ;;  %3328 = vmatpush.bf16.msrb.mxu3 %v3963_v44  ;;  %v3864_v43 = vld [vmem:[#allocation13 + $0x1a8] sm:$0xf0]  ;;  %v3042_v44 = vpop.f32.mrf.mxu2  ;;  %v4755_v52 = vor.u32 %v5076_v26, %v4752_v28  ;;  %v4347_v41 = vor.u32 %v4974_v23, %v4344_v33  ;;  %v4080_v13 = vld [vmem:[#allocation13 + $0x358] sm:$0xf0] }
 0x6fb   :  { %v3043_v51 = vadd.f32 %v3042_v44, %v3029_v30  ;;  %v3867_v25 = vor.u32 %v4854_v42, %v3864_v43  ;;  %v4179_v30 = vor.u32 %v4932_v16, %v4176_v10  ;;  %v4920_v42 = vld [vmem:[#allocation13 + $0x3a4] sm:$0xf]  ;;  %v4128_v44 = vld [vmem:[#allocation13 + $0x3b8] sm:$0xf0] }
 0x6fc   :  { %3287 = vmatpush.bf16.msra.mxu0 %v4511_v5  ;;  %3301 = vmatpush.bf16.msra.mxu1 %v4703_v46  ;;  %v4608_v5 = vld [vmem:[#allocation13 + $0x778] sm:$0xf0]  ;;  %v5088_v46 = vld [vmem:[#allocation13 + $0x8e4] sm:$0xf] }
 0x6fd   :  { %v4611_v3 = vor.u32 %v5040_v48, %v4608_v5  ;;  %v4803_v4 = vor.u32 %v5088_v46, %v4800_v60  ;;  %v5064_v5 = vld [vmem:[#allocation13 + $0x824] sm:$0xf]  ;;  %v4704_v46 = vld [vmem:[#allocation13 + $0x838] sm:$0xf0]  ;;  %v4131_v60 = vor.u32 %v4920_v42, %v4128_v44  ;;  %v4632_v42 = vld [vmem:[#allocation13 + $0x7a8] sm:$0xf0] }
 0x6fe   :  { %3315 = vmatpush.bf16.msrb.mxu2 %v3747_v63  ;;  %3329 = vmatpush.bf16.msrb.mxu3 %v3939_v50  ;;  %v4938_v63 = vld [vmem:[#allocation13 + $0x434] sm:$0xf]  ;;  %v6123_v50 = vadd.f32 %v3056_v62, %v3043_v51  ;;  %v4731_v51 = vor.u32 %v5070_v38, %v4728_v39  ;;  %v4707_v0 = vor.u32 %v5064_v5, %v4704_v46  ;;  %v4272_v26 = vld [vmem:[#allocation13 + $0x4d8] sm:$0xf0] }
 0x6ff   :  { %v4203_v14 = vor.u32 %v4938_v63, %v4200_v1  ;;  %v4962_v63 = vld [vmem:[#allocation13 + $0x4f4] sm:$0xf]  ;;  %v4296_v1 = vld [vmem:[#allocation13 + $0x508] sm:$0xf0]  ;;  %v4656_v23 = vld [vmem:[#allocation13 + $0x7d8] sm:$0xf0] }
 0x700   :  { %3288 = vmatpush.bf16.msra.mxu0 %v4487_v7  ;;  %3302 = vmatpush.bf16.msra.mxu1 %v4679_v8  ;;  %v4584_v7 = vld [vmem:[#allocation13 + $0x748] sm:$0xf0]  ;;  %v5082_v8 = vld [vmem:[#allocation13 + $0x8b4] sm:$0xf] }
 0x701   :  { %v4998_v38 = vld [vmem:[#allocation13 + $0x614] sm:$0xf] }
 0x702   :  { %3316 = vmatpush.bf16.msrb.mxu2 %v3723_v19  ;;  %3330 = vmatpush.bf16.msrb.mxu3 %v3915_v21  ;;  %v4587_v19 = vor.u32 %v5034_v6, %v4584_v7  ;;  %v4779_v21 = vor.u32 %v5082_v8, %v4776_v12  ;;  %v4488_v12 = vld [vmem:[#allocation13 + $0x688] sm:$0xf0] }
 0x704   :  { %3289 = vmatpush.bf16.msra.mxu0 %v4463_v31  ;;  %3303 = vmatpush.bf16.msra.mxu1 %v4655_v20  ;;  %v4371_v31 = vor.u32 %v4980_v17, %v4368_v18  ;;  %v4926_v20 = vld [vmem:[#allocation13 + $0x3d4] sm:$0xf]  ;;  %v4299_v18 = vor.u32 %v4962_v63, %v4296_v1 }
 0x705   :  { %v4155_v40 = vor.u32 %v4926_v20, %v4152_v32  ;;  %v4464_v20 = vld [vmem:[#allocation13 + $0x658] sm:$0xf0]  ;;  %v5052_v32 = vld [vmem:[#allocation13 + $0x7c4] sm:$0xf] }
 0x706   :  { %3317 = vmatpush.bf16.msrb.mxu2 %v3699_v36  ;;  %3331 = vmatpush.bf16.msrb.mxu3 %v3891_v37  ;;  %v5022_v36 = vld [vmem:[#allocation13 + $0x6d4] sm:$0xf]  ;;  %v4536_v37 = vld [vmem:[#allocation13 + $0x6e8] sm:$0xf0] }
 0x707   :  { %v4539_v48 = vor.u32 %v5022_v36, %v4536_v37  ;;  %v4248_v36 = vld [vmem:[#allocation13 + $0x4a8] sm:$0xf0]  ;;  %v4659_v37 = vor.u32 %v5052_v32, %v4656_v23 }
 0x708   :  { %3290 = vmatpush.bf16.msra.mxu0 %v4439_v45  ;;  %3304 = vmatpush.bf16.msra.mxu1 %v4631_v47  ;;  %v3068_v53 = vpop.f32.mrf.mxu0  ;;  %v4968_v45 = vld [vmem:[#allocation13 + $0x524] sm:$0xf]  ;;  %v4320_v47 = vld [vmem:[#allocation13 + $0x538] sm:$0xf0] }
 0x709   :  { %v4323_v62 = vor.u32 %v4968_v45, %v4320_v47 }
 0x70a   :  { %3318 = vmatpush.bf16.msrb.mxu2 %v3675_v27  ;;  %3332 = vmatpush.bf16.msrb.mxu3 %v3867_v25  ;;  %v4914_v27 = vld [vmem:[#allocation13 + $0x374] sm:$0xf]  ;;  %v4104_v25 = vld [vmem:[#allocation13 + $0x388] sm:$0xf0] }
 0x70b   :  { %3291 = vmatmul.bf16.vlgmr.msra.gmra.mxu0 %v6081_v58  ;;  %3305 = vmatmul.bf16.vlgmr.msra.gmra.mxu1 %v6083_v59  ;;  %v4107_v17 = vor.u32 %v4914_v27, %v4104_v25 }
 0x70c   :  { %3339 = vmatpush.bf16.msrb.mxu0 %v4227_v54  ;;  %3353 = vmatpush.bf16.msrb.mxu1 %v4419_v56  ;;  %v5016_v54 = vld [vmem:[#allocation13 + $0x6a4] sm:$0xf]  ;;  %v4512_v56 = vld [vmem:[#allocation13 + $0x6b8] sm:$0xf0] }
 0x70d   :  { %3319 = vmatmul.bf16.vlgmr.msrb.gmra.mxu2 %v6067_v57  ;;  %3333 = vmatmul.bf16.vlgmr.msrb.gmra.mxu3 %v6069_v24  ;;  %v3082_v57 = vpop.f32.mrf.mxu1  ;;  %v3069_v24 = vadd.f32 %v3068_v53, %v1441_v29  ;;  %v4515_v2 = vor.u32 %v5016_v54, %v4512_v56  ;;  %v4056_v53 = vld [vmem:[#allocation13 + $0x328] sm:$0xf0] }
 0x70e   :  { %3367 = vmatpush.bf16.msra.mxu2 %v4611_v3  ;;  %3381 = vmatpush.bf16.msra.mxu3 %v4803_v4  ;;  %v5010_v4 = vld [vmem:[#allocation13 + $0x674] sm:$0xf] }
 0x70f   :  { %v3083_v43 = vadd.f32 %v3082_v57, %v3069_v24  ;;  %v4950_v57 = vld [vmem:[#allocation13 + $0x494] sm:$0xf] }
 0x710   :  { %3340 = vmatpush.bf16.msrb.mxu0 %v4203_v14  ;;  %3354 = vmatpush.bf16.msrb.mxu1 %v4395_v15  ;;  %v3070_v3 = vpop.f32.mrf.mxu0  ;;  %v3096_v7 = vpop.f32.mrf.mxu2  ;;  %v5058_v14 = vld [vmem:[#allocation13 + $0x7f4] sm:$0xf]  ;;  %v4680_v15 = vld [vmem:[#allocation13 + $0x808] sm:$0xf0]  ;;  %v4251_v45 = vor.u32 %v4950_v57, %v4248_v36 }
 0x711   :  { %v3071_v6 = vadd.f32 %v3070_v3, %v1441_v29  ;;  %v3110_v8 = vpop.f32.mrf.mxu3  ;;  %v3097_v10 = vadd.f32 %v3096_v7, %v3083_v43  ;;  %v4491_v29 = vor.u32 %v5010_v4, %v4488_v12 }
 0x712   :  { %3368 = vmatpush.bf16.msra.mxu2 %v4587_v19  ;;  %3382 = vmatpush.bf16.msra.mxu3 %v4779_v21  ;;  %v4908_v19 = vld [vmem:[#allocation13 + $0x344] sm:$0xf] }
 0x713   :  { %v6130_v28 = vadd.f32 %v3110_v8, %v3097_v10  ;;  %v4083_v33 = vor.u32 %v4908_v19, %v4080_v13  ;;  %v1443_v19 = vperm.slane %v6101_v55, 4 }
 0x714   :  { %3341 = vmatpush.bf16.msrb.mxu0 %v4179_v30  ;;  %3355 = vmatpush.bf16.msrb.mxu1 %v4371_v31  ;;  %v4683_v30 = vor.u32 %v5058_v14, %v4680_v15  ;;  %v5004_v31 = vld [vmem:[#allocation13 + $0x644] sm:$0xf] }
 0x715   :  { %v3084_v16 = vpop.f32.mrf.mxu1  ;;  %v4467_v24 = vor.u32 %v5004_v31, %v4464_v20  ;;  %v1444_v31 = vperm.slane %v6101_v55, 5 }
 0x716   :  { %3369 = vmatpush.bf16.msra.mxu2 %v4563_v35  ;;  %3383 = vmatpush.bf16.msra.mxu3 %v4755_v52  ;;  %v3085_v21 = vadd.f32 %v3084_v16, %v3071_v6  ;;  %v4275_v35 = vor.u32 %v4956_v49, %v4272_v26  ;;  %v4902_v52 = vld [vmem:[#allocation13 + $0x314] sm:$0xf] }
 0x717   :  { %v4059_v44 = vor.u32 %v4902_v52, %v4056_v53 }
 0x718   :  { %3342 = vmatpush.bf16.msrb.mxu0 %v4155_v40  ;;  %3356 = vmatpush.bf16.msrb.mxu1 %v4347_v41  ;;  %v3098_v39 = vpop.f32.mrf.mxu2  ;;  %v4440_v40 = vld [vmem:[#allocation13 + $0x628] sm:$0xf0]  ;;  %v5046_v41 = vld [vmem:[#allocation13 + $0x794] sm:$0xf] }
 0x719   :  { %v3099_v43 = vadd.f32 %v3098_v39, %v3085_v21  ;;  %v3112_v47 = vpop.f32.mrf.mxu3  ;;  %v4635_v54 = vor.u32 %v5046_v41, %v4632_v42 }
 0x71a   :  { %3370 = vmatpush.bf16.msra.mxu2 %v4539_v48  ;;  %3384 = vmatpush.bf16.msra.mxu3 %v4731_v51  ;;  %v4443_v51 = vor.u32 %v4998_v38, %v4440_v40 }
 0x71b   :  { %v6132_v48 = vadd.f32 %v3112_v47, %v3099_v43 }
 0x71c   :  { %3343 = vmatpush.bf16.msrb.mxu0 %v4131_v60  ;;  %3357 = vmatpush.bf16.msrb.mxu1 %v4323_v62 }
 0x71e   :  { %3371 = vmatpush.bf16.msra.mxu2 %v4515_v2  ;;  %3385 = vmatpush.bf16.msra.mxu3 %v4707_v0 }
 0x720   :  { %3344 = vmatpush.bf16.msrb.mxu0 %v4107_v17  ;;  %3358 = vmatpush.bf16.msrb.mxu1 %v4299_v18  ;;  %v1442_v17 = vperm.slane %v6101_v55, 3 }
 0x722   :  { %3372 = vmatpush.bf16.msra.mxu2 %v4491_v29  ;;  %3386 = vmatpush.bf16.msra.mxu3 %v4683_v30 }
 0x724   :  { %3345 = vmatpush.bf16.msrb.mxu0 %v4083_v33  ;;  %3359 = vmatpush.bf16.msrb.mxu1 %v4275_v35 }
 0x726   :  { %3373 = vmatpush.bf16.msra.mxu2 %v4467_v24  ;;  %3387 = vmatpush.bf16.msra.mxu3 %v4659_v37 }
 0x728   :  { %3346 = vmatpush.bf16.msrb.mxu0 %v4059_v44  ;;  %3360 = vmatpush.bf16.msrb.mxu1 %v4251_v45  ;;  %v3124_v56 = vpop.f32.mrf.mxu0  ;;  %v3138_v5 = vpop.f32.mrf.mxu1 }
 0x729   :  { %v3125_v53 = vadd.f32 %v3124_v56, %v6130_v28 }
 0x72a   :  { %3374 = vmatpush.bf16.msra.mxu2 %v4443_v51  ;;  %3388 = vmatpush.bf16.msra.mxu3 %v4635_v54  ;;  %v3395_v51 = vadd.f32 %v6121_v22, %v6108_v34 }
 0x72b   :  { %3347 = vmatmul.bf16.vlgmr.msrb.gmra.mxu0 %v6071_v9  ;;  %3361 = vmatmul.bf16.vlgmr.msrb.gmra.mxu1 %v6073_v61  ;;  %v3139_v43 = vadd.f32 %v3138_v5, %v3125_v53 }
 0x72d   :  { %3375 = vmatmul.bf16.vlgmr.msra.gmra.mxu2 %v6081_v58  ;;  %3389 = vmatmul.bf16.vlgmr.msra.gmra.mxu3 %v6083_v59 }
 0x730   :  { %v3152_v46 = vpop.f32.mrf.mxu2  ;;  %v3166_v60 = vpop.f32.mrf.mxu3 }
 0x731   :  { %v3126_v62 = vpop.f32.mrf.mxu0  ;;  %v6138_v27 = vpop.f32.mrf.mxu1  ;;  %v3153_v21 = vadd.f32 %v3152_v46, %v1442_v17 }
 0x733   :  { %v3167_v30 = vadd.f32 %v3166_v60, %v3153_v21  ;;  %v3396_v60 = vadd.f32 %v3395_v51, %v3139_v43 }
 0x738   :  { %v3154_v63 = vpop.f32.mrf.mxu2  ;;  %v3168_v1 = vpop.f32.mrf.mxu3 }
 0x739   :  { %v3155_v33 = vadd.f32 %v3154_v63, %v1442_v17 }
 0x73b   :  { %v3169_v40 = vadd.f32 %v3168_v1, %v3155_v33 }
 0x748   :  { %v3180_v25 = vpop.f32.mrf.mxu0  ;;  %v3194_v2 = vpop.f32.mrf.mxu1 }
 0x749   :  { %v3181_v20 = vadd.f32 %v3180_v25, %v3167_v30  ;;  %v3127_v25 = vadd.f32 %v3126_v62, %v6132_v48  ;;  %v3402_v48 = vadd.f32 %v6123_v50, %v6115_v11 }
 0x74b   :  { %v3195_v57 = vadd.f32 %v3194_v2, %v3181_v20 }
 0x750   :  { %v3208_v0 = vpop.f32.mrf.mxu2  ;;  %v3222_v3 = vpop.f32.mrf.mxu3 }
 0x751   :  { %v3182_v9 = vpop.f32.mrf.mxu0  ;;  %v3196_v4 = vpop.f32.mrf.mxu1  ;;  %v3209_v37 = vadd.f32 %v3208_v0, %v3195_v57 }
 0x752   :  { %v3183_v44 = vadd.f32 %v3182_v9, %v3169_v40 }
 0x753   :  { %v3223_v54 = vadd.f32 %v3222_v3, %v3209_v37 }
 0x754   :  { %v3197_v63 = vadd.f32 %v3196_v4, %v3183_v44 }
 0x758   :  { %v3210_v6 = vpop.f32.mrf.mxu2  ;;  %v6140_v58 = vpop.f32.mrf.mxu3 }
 0x768   :  { %v3236_v61 = vpop.f32.mrf.mxu0  ;;  %v3250_v59 = vpop.f32.mrf.mxu1 }
 0x769   :  { %v3237_v26 = vadd.f32 %v3236_v61, %v1443_v19  ;;  %v3397_v61 = vadd.f32 %v3396_v60, %v3223_v54 }
 0x76b   :  { %v3251_v32 = vadd.f32 %v3250_v59, %v3237_v26  ;;  %v3211_v59 = vadd.f32 %v3210_v6, %v3197_v63 }
 0x76d   :  { %v3225_v62 = vadd.f32 %v6140_v58, %v3211_v59 }
 0x770   :  { %v3264_v7 = vpop.f32.mrf.mxu2  ;;  %v3278_v8 = vpop.f32.mrf.mxu3 }
 0x771   :  { %v3238_v12 = vpop.f32.mrf.mxu0  ;;  %v3252_v14 = vpop.f32.mrf.mxu1  ;;  %v3265_v35 = vadd.f32 %v3264_v7, %v3251_v32 }
 0x772   :  { %v3239_v36 = vadd.f32 %v3238_v12, %v1443_v19 }
 0x773   :  { %v3279_v41 = vadd.f32 %v3278_v8, %v3265_v35 }
 0x774   :  { %v3253_v55 = vadd.f32 %v3252_v14, %v3239_v36  ;;  %v3141_v14 = vadd.f32 %v6138_v27, %v3127_v25 }
 0x776   :  { %v3403_v19 = vadd.f32 %v3402_v48, %v3141_v14 }
 0x778   :  { %v3266_v16 = vpop.f32.mrf.mxu2  ;;  %v3280_v10 = vpop.f32.mrf.mxu3 }
 0x779   :  { %v3267_v28 = vadd.f32 %v3266_v16, %v3253_v55 }
 0x77b   :  { %v3281_v7 = vadd.f32 %v3280_v10, %v3267_v28  ;;  %v3404_v10 = vadd.f32 %v3403_v19, %v3225_v62  ;;  %v6217_v19 = vld [vmem:[#allocation16] sm:$0x3f] }
 0x788   :  { %v3292_v15 = vpop.f32.mrf.mxu0  ;;  %v3306_v18 = vpop.f32.mrf.mxu1 }
 0x789   :  { %v3293_v45 = vadd.f32 %v3292_v15, %v3279_v41 }
 0x78b   :  { %v3307_v2 = vadd.f32 %v3306_v18, %v3293_v45 }
 0x78d   :  { %v3398_v3 = vadd.f32 %v3397_v61, %v3307_v2 }
 0x790   :  { %v3320_v13 = vpop.f32.mrf.mxu2  ;;  %v3334_v49 = vpop.f32.mrf.mxu3 }
 0x791   :  { %v3294_v29 = vpop.f32.mrf.mxu0  ;;  %v3308_v23 = vpop.f32.mrf.mxu1  ;;  %v3321_v52 = vadd.f32 %v3320_v13, %v1444_v31 }
 0x792   :  { %v3295_v15 = vadd.f32 %v3294_v29, %v3281_v7 }
 0x793   :  { %v3335_v42 = vadd.f32 %v3334_v49, %v3321_v52 }
 0x794   :  { %v3309_v21 = vadd.f32 %v3308_v23, %v3295_v15 }
 0x796   :  { %v3405_v27 = vadd.f32 %v3404_v10, %v3309_v21 }
 0x798   :  { %v3322_v38 = vpop.f32.mrf.mxu2  ;;  %v3336_v39 = vpop.f32.mrf.mxu3 }
 0x799   :  { %v3323_v56 = vadd.f32 %v3322_v38, %v1444_v31  ;;  %v5504_v31 = vmov 768.0  }
 0x79a   :  { %5139 = vrcp.f32 %v5504_v31 }
 0x79b   :  { %v3337_v8 = vadd.f32 %v3336_v39, %v3323_v56 }
 0x7a0   :  { %v5140_v20 = vpop.eup %5139 }
 0x7a1   :  { %v3410_v32 = vmul.f32 768.0, %v5140_v20  ;;  %vm3414_vm9 = vweird.f32 %v5140_v20 }
 0x7a3   :  { %v3411_v33 = vsub.f32 1.0, %v3410_v32  ;;  %v3499_v32 = vperm.slane %v6217_v19, 5 }
 0x7a5   :  { %v3412_v58 = vmul.f32 %v5140_v20, %v3411_v33 }
 0x7a7   :  { %v3413_v35 = vadd.f32 %v5140_v20, %v3412_v58 }
 0x7a8   :  { %v3348_v24 = vpop.f32.mrf.mxu0  ;;  %v3362_v46 = vpop.f32.mrf.mxu1 }
 0x7a9   :  { %v3349_v47 = vadd.f32 %v3348_v24, %v3335_v42  ;;  %v3415_v52 = vsel %vm3414_vm9, %v5140_v20, %v3413_v35 }
 0x7ab   :  { %v3363_v1 = vadd.f32 %v3362_v46, %v3349_v47 }
 0x7b0   :  { %v3350_v0 = vpop.f32.mrf.mxu0  ;;  %v3376_v5 = vpop.f32.mrf.mxu2 }
 0x7b1   :  { %v3390_v9 = vpop.f32.mrf.mxu3  ;;  %v3377_v12 = vadd.f32 %v3376_v5, %v3363_v1  ;;  %v3351_v16 = vadd.f32 %v3350_v0, %v3337_v8  ;;  %v3364_v18 = vpop.f32.mrf.mxu1 }
 0x7b3   :  { %v3391_v17 = vadd.f32 %v3390_v9, %v3377_v12  ;;  %v3365_v13 = vadd.f32 %v3364_v18, %v3351_v16 }
 0x7b5   :  { %v3399_v4 = vadd.f32 %v3398_v3, %v3391_v17 }
 0x7b7   :  { %3400 = vadd.xlane.f32.xlu1 %v3399_v4 }
 0x7b8   :  { %v3378_v6 = vpop.f32.mrf.mxu2 }
 0x7b9   :  { %v3379_v49 = vadd.f32 %v3378_v6, %v3365_v13  ;;  %v3392_v26 = vpop.f32.mrf.mxu3  ;;  %v6219_v13 = vld [vmem:[#allocation17] sm:$0x3f] }
 0x7ba   :  { %v3520_v33 = vperm.slane %v6219_v13, 0  ;;  %v3521_v58 = vperm.slane %v6219_v13, 1  ;;  %v3522_v35 = vperm.slane %v6219_v13, 2 }
 0x7bb   :  { %v3393_v30 = vadd.f32 %v3392_v26, %v3379_v49  ;;  %v3494_v49 = vperm.slane %v6217_v19, 0  ;;  %v3495_v26 = vperm.slane %v6217_v19, 1 }
 0x7bd   :  { %v3406_v29 = vadd.f32 %v3405_v27, %v3393_v30  ;;  %v3496_v27 = vperm.slane %v6217_v19, 2 }
 0x7bf   :  { %3407 = vadd.xlane.f32.xlu2 %v3406_v29  ;;  %v3498_v29 = vperm.slane %v6217_v19, 4 }
 0x82a   :  { %v3401_v23 = vpop.xlane.xlu1 %3400 }
 0x82b   :  { %v3416_v53 = vmul.f32 %v3415_v52, %v3401_v23  ;;  %v3524_v23 = vperm.slane %v6219_v13, 4 }
 0x82d   :  { %v6154_v57 = vsub.f32 %v6108_v34, %v3416_v53  ;;  %v6157_v36 = vsub.f32 %v6121_v22, %v3416_v53  ;;  %v6159_v24 = vsub.f32 %v3139_v43, %v3416_v53  ;;  %v6161_v37 = vsub.f32 %v3223_v54, %v3416_v53 }
 0x82e   :  { %v6167_v40 = vsub.f32 %v3307_v2, %v3416_v53  ;;  %v6171_v44 = vsub.f32 %v3391_v17, %v3416_v53 }
 0x82f   :  { %v3430_v38 = vmul.f32 %v6154_v57, %v6154_v57  ;;  %v3431_v39 = vmul.f32 %v6157_v36, %v6157_v36  ;;  %v3432_v41 = vmul.f32 %v6159_v24, %v6159_v24  ;;  %v3433_v43 = vmul.f32 %v6161_v37, %v6161_v37 }
 0x830   :  { %v3434_v45 = vmul.f32 %v6167_v40, %v6167_v40  ;;  %v3435_v28 = vmul.f32 %v6171_v44, %v6171_v44 }
 0x831   :  { %v3442_v34 = vadd.f32 %v3431_v39, %v3430_v38 }
 0x832   :  { %v3408_v42 = vpop.xlane.xlu2 %3407 }
 0x833   :  { %v3417_v22 = vmul.f32 %v3415_v52, %v3408_v42  ;;  %v3443_v55 = vadd.f32 %v3442_v34, %v3432_v41 }
 0x835   :  { %v3444_v47 = vadd.f32 %v3443_v55, %v3433_v43  ;;  %v6178_v51 = vsub.f32 %v6115_v11, %v3417_v22  ;;  %v6181_v54 = vsub.f32 %v6123_v50, %v3417_v22  ;;  %v6183_v46 = vsub.f32 %v3141_v14, %v3417_v22 }
 0x836   :  { %v6187_v60 = vsub.f32 %v3225_v62, %v3417_v22  ;;  %v6193_v11 = vsub.f32 %v3309_v21, %v3417_v22  ;;  %v6197_v0 = vsub.f32 %v3393_v30, %v3417_v22  ;;  %v3497_v30 = vperm.slane %v6217_v19, 3 }
 0x837   :  { %v3445_v56 = vadd.f32 %v3444_v47, %v3434_v45  ;;  %v3436_v25 = vmul.f32 %v6178_v51, %v6178_v51  ;;  %v3437_v63 = vmul.f32 %v6181_v54, %v6181_v54  ;;  %v3438_v50 = vmul.f32 %v6183_v46, %v6183_v46 }
 0x838   :  { %v3439_v61 = vmul.f32 %v6187_v60, %v6187_v60  ;;  %v3440_v9 = vmul.f32 %v6193_v11, %v6193_v11  ;;  %v3441_v7 = vmul.f32 %v6197_v0, %v6197_v0  ;;  %v3525_v22 = vperm.slane %v6219_v13, 5 }
 0x839   :  { %v3446_v2 = vadd.f32 %v3445_v56, %v3435_v28  ;;  %v3449_v1 = vadd.f32 %v3437_v63, %v3436_v25 }
 0x83b   :  { %3447 = vadd.xlane.f32.xlu0 %v3446_v2  ;;  %v3450_v5 = vadd.f32 %v3449_v1, %v3438_v50 }
 0x83d   :  { %v3451_v59 = vadd.f32 %v3450_v5, %v3439_v61 }
 0x83f   :  { %v3452_v8 = vadd.f32 %v3451_v59, %v3440_v9 }
 0x841   :  { %v3453_v12 = vadd.f32 %v3452_v8, %v3441_v7 }
 0x843   :  { %3454 = vadd.xlane.f32.xlu2 %v3453_v12 }
 0x8ae   :  { %v3448_v14 = vpop.xlane.xlu0 %3447 }
 0x8af   :  { %v3456_v3 = vmul.f32 %v3448_v14, %v3415_v52 }
 0x8b1   :  { %v3458_v15 = vadd.f32 1e-12, %v3456_v3 }
 0x8b3   :  { %5141 = vrsqrt.f32 %v3458_v15  ;;  %vm3466_vm11 = vweird.f32 %v3458_v15 }
 0x8b6   :  { %v3455_v16 = vpop.xlane.xlu2 %3454 }
 0x8b7   :  { %v3457_v17 = vmul.f32 %v3455_v16, %v3415_v52  ;;  %v3523_v52 = vperm.slane %v6219_v13, 3 }
 0x8b9   :  { %v5142_v48 = vpop.eup %5141  ;;  %v3459_v62 = vadd.f32 1e-12, %v3457_v17 }
 0x8ba   :  { %v3461_v4 = vmul.f32 %v5142_v48, %v3458_v15  ;;  %vm3467_vm10 = vweird.f32 %v5142_v48 }
 0x8bb   :  { %5143 = vrsqrt.f32 %v3459_v62  ;;  %vm3468_vm12 = vmor %vm3466_vm11, %vm3467_vm10  ;;  %vm3476_vm14 = vweird.f32 %v3459_v62 }
 0x8bc   :  { %v3462_v18 = vmul.f32 %v5142_v48, %v3461_v4 }
 0x8be   :  { %v3463_v21 = vmul.f32 0.5, %v3462_v18 }
 0x8c0   :  { %v3464_v6 = vsub.f32 1.5, %v3463_v21 }
 0x8c1   :  { %v5144_v10 = vpop.eup %5143 }
 0x8c2   :  { %v3465_v31 = vmul.f32 %v5142_v48, %v3464_v6  ;;  %v3471_v20 = vmul.f32 %v5144_v10, %v3459_v62  ;;  %vm3477_vm13 = vweird.f32 %v5144_v10 }
 0x8c3   :  { %vm3478_vm15 = vmor %vm3476_vm14, %vm3477_vm13 }
 0x8c4   :  { %v3469_v53 = vsel %vm3468_vm12, %v5142_v48, %v3465_v31  ;;  %v3472_v38 = vmul.f32 %v5144_v10, %v3471_v20 }
 0x8c5   :  { %v3480_v39 = vmul.f32 %v3469_v53, %v6154_v57  ;;  %v3481_v41 = vmul.f32 %v3469_v53, %v6157_v36  ;;  %v3482_v34 = vmul.f32 %v3469_v53, %v6159_v24  ;;  %v3483_v42 = vmul.f32 %v3469_v53, %v6161_v37 }
 0x8c6   :  { %v3484_v43 = vmul.f32 %v3469_v53, %v6167_v40  ;;  %v3485_v55 = vmul.f32 %v3469_v53, %v6171_v44  ;;  %v3473_v45 = vmul.f32 0.5, %v3472_v38 }
 0x8c7   :  { %v3506_v47 = vmul.f32 %v3494_v49, %v3480_v39  ;;  %v3507_v28 = vmul.f32 %v3495_v26, %v3481_v41  ;;  %v3508_v56 = vmul.f32 %v3496_v27, %v3482_v34  ;;  %v3509_v25 = vmul.f32 %v3497_v30, %v3483_v42 }
 0x8c8   :  { %v3510_v63 = vmul.f32 %v3498_v29, %v3484_v43  ;;  %v3511_v2 = vmul.f32 %v3499_v32, %v3485_v55  ;;  %v3474_v57 = vsub.f32 1.5, %v3473_v45 }
 0x8c9   :  { %v3532_v36 = vadd.f32 %v3520_v33, %v3506_v47  ;;  %v3533_v50 = vadd.f32 %v3521_v58, %v3507_v28  ;;  %v3534_v24 = vadd.f32 %v3522_v35, %v3508_v56  ;;  %v3535_v1 = vadd.f32 %v3523_v52, %v3509_v25 }
 0x8ca   :  { %v3475_v37 = vmul.f32 %v5144_v10, %v3474_v57  ;;  %v3536_v61 = vadd.f32 %v3524_v23, %v3510_v63  ;;  %v3537_v40 = vadd.f32 %v3525_v22, %v3511_v2 }
 0x8cb   :  { %3544 = vst [vmem:[#allocation19] sm:$0xff] %v3532_v36 }
 0x8cc   :  { %3545 = vst [vmem:[#allocation19 + $0x8] sm:$0xff] %v3533_v50  ;;  %v3479_v44 = vsel %vm3478_vm15, %v5144_v10, %v3475_v37 }
 0x8cd   :  { %3546 = vst [vmem:[#allocation19 + $0x10] sm:$0xff] %v3534_v24  ;;  %v3486_v5 = vmul.f32 %v3479_v44, %v6178_v51  ;;  %v3487_v9 = vmul.f32 %v3479_v44, %v6181_v54  ;;  %v3488_v59 = vmul.f32 %v3479_v44, %v6183_v46  ;;  %v3489_v7 = vmul.f32 %v3479_v44, %v6187_v60 }
 0x8ce   :  { %3547 = vst [vmem:[#allocation19 + $0x18] sm:$0xff] %v3535_v1  ;;  %v3490_v8 = vmul.f32 %v3479_v44, %v6193_v11  ;;  %v3491_v12 = vmul.f32 %v3479_v44, %v6197_v0 }
 0x8cf   :  { %3548 = vst [vmem:[#allocation19 + $0x20] sm:$0xff] %v3536_v61  ;;  %v3512_v14 = vmul.f32 %v3494_v49, %v3486_v5  ;;  %v3513_v3 = vmul.f32 %v3495_v26, %v3487_v9  ;;  %v3514_v15 = vmul.f32 %v3496_v27, %v3488_v59  ;;  %v3515_v16 = vmul.f32 %v3497_v30, %v3489_v7 }
 0x8d0   :  { %3549 = vst [vmem:[#allocation19 + $0x28] sm:$0xff] %v3537_v40  ;;  %v3516_v17 = vmul.f32 %v3498_v29, %v3490_v8  ;;  %v3517_v48 = vmul.f32 %v3499_v32, %v3491_v12 }
 0x8d1   :  { %v3538_v51 = vadd.f32 %v3520_v33, %v3512_v14  ;;  %v3539_v62 = vadd.f32 %v3521_v58, %v3513_v3  ;;  %v3540_v54 = vadd.f32 %v3522_v35, %v3514_v15  ;;  %v3541_v4 = vadd.f32 %v3523_v52, %v3515_v16 }
 0x8d2   :  { %v3542_v46 = vadd.f32 %v3524_v23, %v3516_v17  ;;  %v3543_v60 = vadd.f32 %v3525_v22, %v3517_v48 }
 0x8d3   :  { %3550 = vst [vmem:[#allocation19 + $0x30] sm:$0xff] %v3538_v51 }
 0x8d4   :  { %3551 = vst [vmem:[#allocation19 + $0x38] sm:$0xff] %v3539_v62 }
 0x8d5   :  { %3552 = vst [vmem:[#allocation19 + $0x40] sm:$0xff] %v3540_v54 }
 0x8d6   :  { %3553 = vst [vmem:[#allocation19 + $0x48] sm:$0xff] %v3541_v4 }
 0x8d7   :  { %3554 = vst [vmem:[#allocation19 + $0x50] sm:$0xff] %v3542_v46 }
 0x8d8   :  { %3555 = vst [vmem:[#allocation19 + $0x58] sm:$0xff] %v3543_v60 }
 0x8d9   :  { %3568 = dma.vmem_to_hbm [thread:$0]  %s3561_s15, 1536, %s3563_s10, [#allocation4], %s5492_s1, %s5492_s1, %s5493_s6  }
 0x8da   :  { %5481 = dma.done.wait [#allocation4], 1536  }
 0x8db   :  { %5482 = vsyncadd [#allocation4], 4294965760 }
 0x8dc   :  { %5483 = dma.done.wait [#allocation21], 512  }
 0x8dd   :  { %5484 = vsyncadd [#allocation21], 4294966784 }
 0x8de   :  { %3607 = vsyncpa [#allocation3], 1 }
 0x8df   :  { %3608 = vsyncpa [#allocation6], 1 }
 0x8e0   :  { %3609 = vsyncpa [#allocation9], 1 }
 0x8e1   :  { %3610 = vsyncpa [#allocation12], 1 }
 0x8e2   :  { %3611 = vsyncpa [#allocation15], 1 }
 0x8e3   :  { %3612 = vsyncpa [#allocation18], 1 }
 0x8e4   :  { %3613 = vsyncpa [#allocation4], 1 }
 0x8e5   :  { %3614 = vsyncpa [#allocation21], 1 }

</bundles_post_ra>
